<compile_context>
chip_gen: v7x
topology: tpu7x:2x2x1
jax: 0.10.0
libtpu: 0.0.40
codegen_flags: <defaults>
</compile_context>

<pallas_src>
import functools

import jax
import jax.numpy as jnp
from jax.experimental import pallas as pl
from jax.experimental.pallas import tpu as pltpu

INPUT_DIMS = (64, 128, 64)       # per-modality flattened dims (sum = 256)
NUM_CLASSES = 2
FEATURE_DIM = 512
U_HIDDEN = 512                   # uncertainty_estimator hidden width
C_HIDDEN = 256                   # confidence_estimator hidden width
SLAB_LANES = 128                 # lane-dense packed small-output slab width
SUB = 16                         # batch-row rounding (bf16 sublane packing)
MIN_SPLIT_ROWS = 128             # once B >= 2*this, force >= 2 grid steps (v7x 2 TCs)


def _round_up(x, m):
    return (x + m - 1) // m * m


# ----------------------------------------------------------------------------
# Kernel: whole forward pass fused.  One grid axis over batch tiles; all
# weights are whole-array VMEM-resident blocks (constant index_map).
# ----------------------------------------------------------------------------
def _fusion_kernel(
    x_ref,                                   # (bb, total) bf16
    w1_ref, b1_ref,                          # fused first layer (total, 768) bf16 / (1, 768) f32
    wtail_ref,                               # fused block-diag tail (768, 128) bf16
    wcp_ref,                                 # lane-padded classifier (feature_dim, 128) bf16
    bsm_ref,                                 # packed tiny biases (2, 128) f32
    wf1_ref, bf1_ref, wf2_ref, bf2_ref,      # fusion_net weights bf16 / biases f32
    feat_ref, slab_ref,
    *, input_dims, num_classes,
):
    M = len(input_dims)
    C = num_classes

    x_bf = x_ref[...]                                     # (bb, total) bf16

    # ---- fused first layer: [uncertainty Linear(512) | confidence Linear(256)] + ReLU
    h_all = jnp.dot(x_bf, w1_ref[...], preferred_element_type=jnp.float32) + b1_ref[...]
    h_all = jnp.maximum(h_all, 0.0)                       # (bb, 768) f32

    bsm = bsm_ref[...]                                    # (2, 128) f32

    # ---- fused block-diagonal tail matmul: lanes 0:M = uncertainty logits,
    #      lane M = confidence logit, remaining lanes 0 (zero weight cols, zero bias).
    tail = jnp.dot(h_all.astype(jnp.bfloat16), wtail_ref[...],
                   preferred_element_type=jnp.float32) + bsm[0:1, :]   # (bb, 128)

    lane = jax.lax.broadcasted_iota(jnp.int32, tail.shape, 1)
    umask = lane < M

    # Exact masked softmax over lanes 0:M (padded batch rows see bias-only logits:
    # finite values, sliced away in the wrapper — do not add logs/masks that NaN there).
    rowmax = jnp.max(jnp.where(umask, tail, -1e30), axis=1, keepdims=True)
    e = jnp.where(umask, jnp.exp(tail - rowmax), 0.0)
    uw_full = e / jnp.sum(e, axis=1, keepdims=True)       # (bb, 128), nonzero lanes 0:M

    # Exact sigmoid of the confidence logit (lane M).
    conf_full = jnp.where(lane == M, 1.0 / (1.0 + jnp.exp(-tail)), 0.0)

    # ---- per-modality reweighting on the VPU (no one-hot matmul):
    #      scale[b, j] = uncertainty_weight[b, modality(j)]
    colx = jax.lax.broadcasted_iota(jnp.int32, x_bf.shape, 1)
    scale = jnp.broadcast_to(uw_full[:, 0:1], x_bf.shape)
    off = 0
    for i in range(1, M):                                 # static unroll over modalities
        off += input_dims[i - 1]
        scale = jnp.where(colx >= off,
                          jnp.broadcast_to(uw_full[:, i:i + 1], x_bf.shape), scale)
    xw = (x_bf.astype(jnp.float32) * scale).astype(jnp.bfloat16)

    # ---- fusion net: Linear(1024) -> ReLU -> (Dropout=id) -> Linear(feature_dim) -> ReLU
    h1 = jnp.maximum(
        jnp.dot(xw, wf1_ref[...], preferred_element_type=jnp.float32) + bf1_ref[...], 0.0)
    feat = jnp.maximum(
        jnp.dot(h1.astype(jnp.bfloat16), wf2_ref[...],
                preferred_element_type=jnp.float32) + bf2_ref[...], 0.0)
    feat_ref[...] = feat.astype(feat_ref.dtype)           # bf16 writeback (halves HBM bytes)

    # ---- classifier, lane-padded so its output lands at slab lanes M+1:M+1+C
    out_full = jnp.dot(feat.astype(jnp.bfloat16), wcp_ref[...],
                       preferred_element_type=jnp.float32) + bsm[1:2, :]

    # ---- ONE full-width lane-dense slab store: [uw (0:M) | conf (M) | output | zeros]
    slab_ref[...] = uw_full + conf_full + out_full


# ----------------------------------------------------------------------------
# Parameter construction (deterministic, PyTorch-nn.Linear-style uniform init).
# Weights stored transposed (fan_in, fan_out) so the kernel does x @ W.
# ----------------------------------------------------------------------------
def _linear_init(key, fan_in, fan_out):
    kw, kb = jax.random.split(key)
    bound = 1.0 / (fan_in ** 0.5)
    w = jax.random.uniform(kw, (fan_in, fan_out), jnp.float32, -bound, bound)
    b = jax.random.uniform(kb, (1, fan_out), jnp.float32, -bound, bound)
    return w, b


def init_params(key, input_dims=INPUT_DIMS, num_classes=NUM_CLASSES, feature_dim=FEATURE_DIM):
    total = sum(input_dims)
    M = len(input_dims)
    keys = jax.random.split(key, 7)
    wu1, bu1 = _linear_init(keys[0], total, U_HIDDEN)
    wu2, bu2 = _linear_init(keys[1], U_HIDDEN, M)
    wf1, bf1 = _linear_init(keys[2], total, 1024)
    wf2, bf2 = _linear_init(keys[3], 1024, feature_dim)
    wc,  bc  = _linear_init(keys[4], feature_dim, num_classes)
    wk1, bk1 = _linear_init(keys[5], total, C_HIDDEN)
    wk2, bk2 = _linear_init(keys[6], C_HIDDEN, 1)
    return (wu1, bu1, wu2, bu2, wf1, bf1, wf2, bf2, wc, bc, wk1, bk1, wk2, bk2)


def _pack_params(params, input_dims, num_classes):
    """Fuse first layer, build block-diag tail + lane-padded classifier, cast to bf16."""
    (wu1, bu1, wu2, bu2, wf1, bf1, wf2, bf2, wc, bc, wk1, bk1, wk2, bk2) = params
    M = len(input_dims)
    C = num_classes
    feature_dim = wc.shape[0]
    assert M + 1 + C <= SLAB_LANES, "packed output slab too narrow"

    # fused first layer: [wu1 | wk1]
    w1 = jnp.concatenate([wu1, wk1], axis=1).astype(jnp.bfloat16)     # (total, 768)
    b1 = jnp.concatenate([bu1, bk1], axis=1).astype(jnp.float32)      # (1, 768)

    # fused block-diagonal tail: lanes 0:M <- wu2 (from h_u rows), lane M <- wk2 (h_c rows)
    wtail = jnp.zeros((U_HIDDEN + C_HIDDEN, SLAB_LANES), jnp.float32)
    wtail = wtail.at[:U_HIDDEN, 0:M].set(wu2)
    wtail = wtail.at[U_HIDDEN:, M:M + 1].set(wk2)
    wtail = wtail.astype(jnp.bfloat16)                                # (768, 128)

    # classifier weight padded into slab lane positions M+1 : M+1+C
    wcp = jnp.zeros((feature_dim, SLAB_LANES), jnp.float32)
    wcp = wcp.at[:, M + 1:M + 1 + C].set(wc)
    wcp = wcp.astype(jnp.bfloat16)                                    # (feature_dim, 128)

    # packed tiny biases: row 0 -> tail matmul (bu2 @ 0:M, bk2 @ M); row 1 -> classifier
    bsm = jnp.zeros((2, SLAB_LANES), jnp.float32)
    bsm = bsm.at[0, 0:M].set(bu2[0])
    bsm = bsm.at[0, M].set(bk2[0, 0])
    bsm = bsm.at[1, M + 1:M + 1 + C].set(bc[0])

    return (
        w1, b1, wtail, wcp, bsm,
        wf1.astype(jnp.bfloat16), bf1.astype(jnp.float32),
        wf2.astype(jnp.bfloat16), bf2.astype(jnp.float32),
    )


# ----------------------------------------------------------------------------
# Wrapper: flatten/concat stay in plain JAX; the hot path is the fused kernel.
# ----------------------------------------------------------------------------
def dynamic_fusion_forward(features_list, params, input_dims=INPUT_DIMS, block_b=512):
    flat = [f.reshape(f.shape[0], -1) if f.ndim > 2 else f for f in features_list]
    x = jnp.concatenate(flat, axis=1)                                 # (B, total)
    B, total = x.shape
    M = len(input_dims)
    num_classes = params[9].shape[1]      # bc
    feature_dim = params[7].shape[1]      # bf2
    C = num_classes

    packed = _pack_params(params, input_dims, num_classes)

    # Stream x as bf16: it feeds bf16 matmuls anyway; halves input HBM traffic.
    x_bf = x.astype(jnp.bfloat16)

    # Batch tiling (rows rounded to SUB=16 for bf16 sublane packing).
    bb = min(block_b, _round_up(B, SUB))
    if B >= 2 * MIN_SPLIT_ROWS:
        # cap so the grid has >= 2 steps: lets the "parallel" batch axis shard
        # across v7x's two TensorCores instead of pinning all rows to one TC.
        bb = min(bb, _round_up((B + 1) // 2, SUB))
    bb = _round_up(bb, SUB)
    B_pad = _round_up(B, bb)
    x_p = jnp.pad(x_bf, ((0, B_pad - B), (0, 0))) if B_pad != B else x_bf
    nb = B_pad // bb

    kernel = functools.partial(_fusion_kernel,
                               input_dims=tuple(input_dims),
                               num_classes=num_classes)

    def act_spec(width):
        return pl.BlockSpec((bb, width), lambda i: (i, 0))

    def resident(a):
        # whole-array block, same block index every grid step -> stays VMEM-resident
        return pl.BlockSpec(a.shape, lambda i: (0, 0))

    out_shape = (
        jax.ShapeDtypeStruct((B_pad, feature_dim), jnp.bfloat16),     # features (bf16 writeback)
        jax.ShapeDtypeStruct((B_pad, SLAB_LANES), jnp.float32),       # packed small outputs
    )

    feat_p, slab = pl.pallas_call(
        kernel,
        out_shape=out_shape,
        grid=(nb,),
        in_specs=[act_spec(total)] + [resident(a) for a in packed],
        out_specs=(act_spec(feature_dim), act_spec(SLAB_LANES)),
        compiler_params=pltpu.CompilerParams(
            dimension_semantics=("parallel",),
            vmem_limit_bytes=48 * 1024 * 1024,
        ),
    )(x_p, *packed)

    return {
        'output': slab[:B, M + 1:M + 1 + C],
        'features': feat_p[:B].astype(jnp.float32),
        'confidence': slab[:B, M:M + 1],
        'uncertainty_weights': slab[:B, 0:M],
        'component_features': flat,
    }


# ----------------------------------------------------------------------------
# Pure-JAX f32 reference for validation.
# ----------------------------------------------------------------------------
def reference_forward(features_list, params, input_dims=INPUT_DIMS):
    (wu1, bu1, wu2, bu2, wf1, bf1, wf2, bf2, wc, bc, wk1, bk1, wk2, bk2) = params
    flat = [f.reshape(f.shape[0], -1) if f.ndim > 2 else f for f in features_list]
    x = jnp.concatenate(flat, axis=1).astype(jnp.float32)
    uw = jax.nn.softmax(jnp.maximum(x @ wu1 + bu1, 0.0) @ wu2 + bu2, axis=1)
    weighted = [f * uw[:, i:i + 1] for i, f in enumerate(flat)]
    xw = jnp.concatenate(weighted, axis=1)
    feat = jnp.maximum(jnp.maximum(xw @ wf1 + bf1, 0.0) @ wf2 + bf2, 0.0)
    out = feat @ wc + bc
    conf = jax.nn.sigmoid(jnp.maximum(x @ wk1 + bk1, 0.0) @ wk2 + bk2)
    return {'output': out, 'features': feat, 'confidence': conf,
            'uncertainty_weights': uw, 'component_features': flat}


if __name__ == "__main__":
    key = jax.random.PRNGKey(0)
    k_params, k0, k1, k2 = jax.random.split(key, 4)

    params = init_params(k_params)

    # Three modalities; first arrives as a 4D tensor and is flattened
    # (2, 4, 4, 4) -> (2, 64), matching the torch forward().
    batch = 2
    feat0 = jax.random.normal(k0, (batch, 4, 4, 4), jnp.float32)   # -> 64
    feat1 = jax.random.normal(k1, (batch, 128), jnp.float32)       # -> 128
    feat2 = jax.random.normal(k2, (batch, 64), jnp.float32)        # -> 64
    features_list = [feat0, feat1, feat2]

    result = dynamic_fusion_forward(features_list, params)
    jax.block_until_ready(result)

    # bf16 weights/activations (f32 MXU accumulate) loosen agreement vs. the pure-f32
    # reference; validate with a correspondingly relaxed tolerance.
    ref = reference_forward(features_list, params)
    for k in ('output', 'features', 'confidence', 'uncertainty_weights'):
        assert result[k].shape == ref[k].shape, f"shape mismatch in {k}"
        assert jnp.allclose(result[k], ref[k], rtol=5e-2, atol=5e-2), f"mismatch in {k}"

    print("KERNEL_OK")
</pallas_src>

<mosaic_0001>
module attributes {stable_mosaic.version = 11 : i64} {
  func.func @_fusion_kernel(%arg0: i32, %arg1: memref<16x256xbf16, #tpu.memory_space<vmem>>, %arg2: memref<256x768xbf16, #tpu.memory_space<vmem>>, %arg3: memref<1x768xf32, #tpu.memory_space<vmem>>, %arg4: memref<768x128xbf16, #tpu.memory_space<vmem>>, %arg5: memref<512x128xbf16, #tpu.memory_space<vmem>>, %arg6: memref<2x128xf32, #tpu.memory_space<vmem>>, %arg7: memref<256x1024xbf16, #tpu.memory_space<vmem>>, %arg8: memref<1x1024xf32, #tpu.memory_space<vmem>>, %arg9: memref<1024x512xbf16, #tpu.memory_space<vmem>>, %arg10: memref<1x512xf32, #tpu.memory_space<vmem>>, %arg11: memref<16x512xbf16, #tpu.memory_space<vmem>>, %arg12: memref<16x128xf32, #tpu.memory_space<vmem>>) attributes {dimension_semantics = [#tpu.dimension_semantics<parallel>], iteration_bounds = array<i64: 1>, scalar_prefetch = 0 : i64, scratch_operands = 0 : i64, tpu.core_type = #tpu.core_type<tc>, window_params = [{transform_indices = @transform_0, window_bounds = array<i64: 16, 256>}, {pipeline_mode = #tpu.pipeline_mode<synchronous>, transform_indices = @transform_1, window_bounds = array<i64: 256, 768>}, {pipeline_mode = #tpu.pipeline_mode<synchronous>, transform_indices = @transform_2, window_bounds = array<i64: 1, 768>}, {pipeline_mode = #tpu.pipeline_mode<synchronous>, transform_indices = @transform_3, window_bounds = array<i64: 768, 128>}, {pipeline_mode = #tpu.pipeline_mode<synchronous>, transform_indices = @transform_4, window_bounds = array<i64: 512, 128>}, {pipeline_mode = #tpu.pipeline_mode<synchronous>, transform_indices = @transform_5, window_bounds = array<i64: 2, 128>}, {pipeline_mode = #tpu.pipeline_mode<synchronous>, transform_indices = @transform_6, window_bounds = array<i64: 256, 1024>}, {pipeline_mode = #tpu.pipeline_mode<synchronous>, transform_indices = @transform_7, window_bounds = array<i64: 1, 1024>}, {pipeline_mode = #tpu.pipeline_mode<synchronous>, transform_indices = @transform_8, window_bounds = array<i64: 1024, 512>}, {pipeline_mode = #tpu.pipeline_mode<synchronous>, transform_indices = @transform_9, window_bounds = array<i64: 1, 512>}, {transform_indices = @transform_10, window_bounds = array<i64: 16, 512>}, {transform_indices = @transform_11, window_bounds = array<i64: 16, 128>}]} {
    %c0 = arith.constant 0 : index
    %c0_0 = arith.constant 0 : index
    %0 = vector.load %arg1[%c0, %c0_0] : memref<16x256xbf16, #tpu.memory_space<vmem>>, vector<16x256xbf16>
    %c0_1 = arith.constant 0 : index
    %c0_2 = arith.constant 0 : index
    %1 = vector.load %arg2[%c0_1, %c0_2] : memref<256x768xbf16, #tpu.memory_space<vmem>>, vector<256x768xbf16>
    %cst = arith.constant dense<0.000000e+00> : vector<16x768xf32>
    %2 = tpu.matmul %0, %1, %cst {dimension_numbers = #tpu.dot_dimension_numbers<[1], [0], [0], [1], [0, 0, 1, 1], [], []>} : vector<16x256xbf16>, vector<256x768xbf16>, vector<16x768xf32> -> vector<16x768xf32>
    %c0_3 = arith.constant 0 : index
    %c0_4 = arith.constant 0 : index
    %3 = vector.load %arg3[%c0_3, %c0_4] : memref<1x768xf32, #tpu.memory_space<vmem>>, vector<1x768xf32>
    %4 = vector.broadcast %3 : vector<1x768xf32> to vector<16x768xf32>
    %5 = arith.addf %2, %4 : vector<16x768xf32>
    %cst_5 = arith.constant 0.000000e+00 : f32
    %6 = vector.broadcast %cst_5 : f32 to vector<16x768xf32>
    %7 = arith.maximumf %5, %6 : vector<16x768xf32>
    %c0_6 = arith.constant 0 : index
    %c0_7 = arith.constant 0 : index
    %8 = vector.load %arg6[%c0_6, %c0_7] : memref<2x128xf32, #tpu.memory_space<vmem>>, vector<2x128xf32>
    %9 = arith.truncf %7 : vector<16x768xf32> to vector<16x768xbf16>
    %c0_8 = arith.constant 0 : index
    %c0_9 = arith.constant 0 : index
    %10 = vector.load %arg4[%c0_8, %c0_9] : memref<768x128xbf16, #tpu.memory_space<vmem>>, vector<768x128xbf16>
    %cst_10 = arith.constant dense<0.000000e+00> : vector<16x128xf32>
    %11 = tpu.matmul %9, %10, %cst_10 {dimension_numbers = #tpu.dot_dimension_numbers<[1], [0], [0], [1], [0, 0, 1, 1], [], []>} : vector<16x768xbf16>, vector<768x128xbf16>, vector<16x128xf32> -> vector<16x128xf32>
    %12 = vector.extract_strided_slice %8 {offsets = [0, 0], sizes = [1, 128], strides = [1, 1]} : vector<2x128xf32> to vector<1x128xf32>
    %13 = vector.broadcast %12 : vector<1x128xf32> to vector<16x128xf32>
    %14 = arith.addf %11, %13 : vector<16x128xf32>
    %15 = tpu.iota {dimensions = array<i32: 1>} : vector<16x128xi32>
    %c3_i32 = arith.constant 3 : i32
    %16 = vector.broadcast %c3_i32 : i32 to vector<16x128xi32>
    %17 = arith.cmpi slt, %15, %16 : vector<16x128xi32>
    %cst_11 = arith.constant -1.000000e+30 : f32
    %18 = vector.broadcast %cst_11 : f32 to vector<16x128xf32>
    %19 = arith.select %17, %14, %18 : vector<16x128xi1>, vector<16x128xf32>
    %cst_12 = arith.constant dense<0xFF800000> : vector<16xf32>
    %20 = vector.multi_reduction <maximumf>, %19, %cst_12 [1] : vector<16x128xf32> to vector<16xf32>
    %21 = vector.shape_cast %20 : vector<16xf32> to vector<16x1xf32>
    %22 = vector.broadcast %21 : vector<16x1xf32> to vector<16x128xf32>
    %23 = arith.subf %14, %22 : vector<16x128xf32>
    %24 = math.exp %23 : vector<16x128xf32>
    %cst_13 = arith.constant 0.000000e+00 : f32
    %25 = vector.broadcast %cst_13 : f32 to vector<16x128xf32>
    %26 = arith.select %17, %24, %25 : vector<16x128xi1>, vector<16x128xf32>
    %cst_14 = arith.constant dense<0.000000e+00> : vector<16xf32>
    %27 = vector.multi_reduction <add>, %26, %cst_14 [1] : vector<16x128xf32> to vector<16xf32>
    %28 = vector.shape_cast %27 : vector<16xf32> to vector<16x1xf32>
    %29 = vector.broadcast %28 : vector<16x1xf32> to vector<16x128xf32>
    %30 = arith.divf %26, %29 : vector<16x128xf32>
    %c3_i32_15 = arith.constant 3 : i32
    %31 = vector.broadcast %c3_i32_15 : i32 to vector<16x128xi32>
    %32 = arith.cmpi eq, %15, %31 : vector<16x128xi32>
    %cst_16 = arith.constant 0.000000e+00 : f32
    %33 = vector.broadcast %cst_16 : f32 to vector<16x128xf32>
    %34 = arith.subf %33, %14 : vector<16x128xf32>
    %35 = math.exp %34 : vector<16x128xf32>
    %cst_17 = arith.constant 1.000000e+00 : f32
    %36 = vector.broadcast %cst_17 : f32 to vector<16x128xf32>
    %37 = arith.addf %36, %35 : vector<16x128xf32>
    %cst_18 = arith.constant 1.000000e+00 : f32
    %38 = vector.broadcast %cst_18 : f32 to vector<16x128xf32>
    %39 = arith.divf %38, %37 : vector<16x128xf32>
    %cst_19 = arith.constant 0.000000e+00 : f32
    %40 = vector.broadcast %cst_19 : f32 to vector<16x128xf32>
    %41 = arith.select %32, %39, %40 : vector<16x128xi1>, vector<16x128xf32>
    %42 = tpu.iota {dimensions = array<i32: 1>} : vector<16x256xi32>
    %43 = vector.extract_strided_slice %30 {offsets = [0, 0], sizes = [16, 1], strides = [1, 1]} : vector<16x128xf32> to vector<16x1xf32>
    %44 = vector.shape_cast %43 : vector<16x1xf32> to vector<16x1xf32>
    %45 = vector.broadcast %44 : vector<16x1xf32> to vector<16x256xf32>
    %c64_i32 = arith.constant 64 : i32
    %46 = vector.broadcast %c64_i32 : i32 to vector<16x256xi32>
    %47 = arith.cmpi sge, %42, %46 : vector<16x256xi32>
    %48 = vector.extract_strided_slice %30 {offsets = [0, 1], sizes = [16, 1], strides = [1, 1]} : vector<16x128xf32> to vector<16x1xf32>
    %49 = vector.shape_cast %48 : vector<16x1xf32> to vector<16x1xf32>
    %50 = vector.broadcast %49 : vector<16x1xf32> to vector<16x256xf32>
    %51 = arith.select %47, %50, %45 : vector<16x256xi1>, vector<16x256xf32>
    %c192_i32 = arith.constant 192 : i32
    %52 = vector.broadcast %c192_i32 : i32 to vector<16x256xi32>
    %53 = arith.cmpi sge, %42, %52 : vector<16x256xi32>
    %54 = vector.extract_strided_slice %30 {offsets = [0, 2], sizes = [16, 1], strides = [1, 1]} : vector<16x128xf32> to vector<16x1xf32>
    %55 = vector.shape_cast %54 : vector<16x1xf32> to vector<16x1xf32>
    %56 = vector.broadcast %55 : vector<16x1xf32> to vector<16x256xf32>
    %57 = arith.select %53, %56, %51 : vector<16x256xi1>, vector<16x256xf32>
    %58 = arith.extf %0 : vector<16x256xbf16> to vector<16x256xf32>
    %59 = arith.mulf %58, %57 : vector<16x256xf32>
    %60 = arith.truncf %59 : vector<16x256xf32> to vector<16x256xbf16>
    %c0_20 = arith.constant 0 : index
    %c0_21 = arith.constant 0 : index
    %61 = vector.load %arg7[%c0_20, %c0_21] : memref<256x1024xbf16, #tpu.memory_space<vmem>>, vector<256x1024xbf16>
    %cst_22 = arith.constant dense<0.000000e+00> : vector<16x1024xf32>
    %62 = tpu.matmul %60, %61, %cst_22 {dimension_numbers = #tpu.dot_dimension_numbers<[1], [0], [0], [1], [0, 0, 1, 1], [], []>} : vector<16x256xbf16>, vector<256x1024xbf16>, vector<16x1024xf32> -> vector<16x1024xf32>
    %c0_23 = arith.constant 0 : index
    %c0_24 = arith.constant 0 : index
    %63 = vector.load %arg8[%c0_23, %c0_24] : memref<1x1024xf32, #tpu.memory_space<vmem>>, vector<1x1024xf32>
    %64 = vector.broadcast %63 : vector<1x1024xf32> to vector<16x1024xf32>
    %65 = arith.addf %62, %64 : vector<16x1024xf32>
    %cst_25 = arith.constant 0.000000e+00 : f32
    %66 = vector.broadcast %cst_25 : f32 to vector<16x1024xf32>
    %67 = arith.maximumf %65, %66 : vector<16x1024xf32>
    %68 = arith.truncf %67 : vector<16x1024xf32> to vector<16x1024xbf16>
    %c0_26 = arith.constant 0 : index
    %c0_27 = arith.constant 0 : index
    %69 = vector.load %arg9[%c0_26, %c0_27] : memref<1024x512xbf16, #tpu.memory_space<vmem>>, vector<1024x512xbf16>
    %cst_28 = arith.constant dense<0.000000e+00> : vector<16x512xf32>
    %70 = tpu.matmul %68, %69, %cst_28 {dimension_numbers = #tpu.dot_dimension_numbers<[1], [0], [0], [1], [0, 0, 1, 1], [], []>} : vector<16x1024xbf16>, vector<1024x512xbf16>, vector<16x512xf32> -> vector<16x512xf32>
    %c0_29 = arith.constant 0 : index
    %c0_30 = arith.constant 0 : index
    %71 = vector.load %arg10[%c0_29, %c0_30] : memref<1x512xf32, #tpu.memory_space<vmem>>, vector<1x512xf32>
    %72 = vector.broadcast %71 : vector<1x512xf32> to vector<16x512xf32>
    %73 = arith.addf %70, %72 : vector<16x512xf32>
    %cst_31 = arith.constant 0.000000e+00 : f32
    %74 = vector.broadcast %cst_31 : f32 to vector<16x512xf32>
    %75 = arith.maximumf %73, %74 : vector<16x512xf32>
    %76 = arith.truncf %75 : vector<16x512xf32> to vector<16x512xbf16>
    %c0_32 = arith.constant 0 : index
    %c0_33 = arith.constant 0 : index
    %77 = vector.load %arg11[%c0_32, %c0_33] : memref<16x512xbf16, #tpu.memory_space<vmem>>, vector<16x512xbf16>
    tpu.vector_store %arg11[%c0_32, %c0_33], %76 {strides = array<i32>} : memref<16x512xbf16, #tpu.memory_space<vmem>>, vector<16x512xbf16>,
    %78 = arith.truncf %75 : vector<16x512xf32> to vector<16x512xbf16>
    %c0_34 = arith.constant 0 : index
    %c0_35 = arith.constant 0 : index
    %79 = vector.load %arg5[%c0_34, %c0_35] : memref<512x128xbf16, #tpu.memory_space<vmem>>, vector<512x128xbf16>
    %cst_36 = arith.constant dense<0.000000e+00> : vector<16x128xf32>
    %80 = tpu.matmul %78, %79, %cst_36 {dimension_numbers = #tpu.dot_dimension_numbers<[1], [0], [0], [1], [0, 0, 1, 1], [], []>} : vector<16x512xbf16>, vector<512x128xbf16>, vector<16x128xf32> -> vector<16x128xf32>
    %81 = vector.extract_strided_slice %8 {offsets = [1, 0], sizes = [1, 128], strides = [1, 1]} : vector<2x128xf32> to vector<1x128xf32>
    %82 = vector.broadcast %81 : vector<1x128xf32> to vector<16x128xf32>
    %83 = arith.addf %80, %82 : vector<16x128xf32>
    %84 = arith.addf %30, %41 : vector<16x128xf32>
    %85 = arith.addf %84, %83 : vector<16x128xf32>
    %c0_37 = arith.constant 0 : index
    %c0_38 = arith.constant 0 : index
    %86 = vector.load %arg12[%c0_37, %c0_38] : memref<16x128xf32, #tpu.memory_space<vmem>>, vector<16x128xf32>
    tpu.vector_store %arg12[%c0_37, %c0_38], %85 {strides = array<i32>} : memref<16x128xf32, #tpu.memory_space<vmem>>, vector<16x128xf32>,
    return
  }
  func.func @transform_0(%arg0: i32) -> (i32, i32) {
    %c0_i32 = arith.constant 0 : i32
    %c0_i32_0 = arith.constant 0 : i32
    return %arg0, %c0_i32 : i32, i32
  }
  func.func @transform_1(%arg0: i32) -> (i32, i32) {
    %c0_i32 = arith.constant 0 : i32
    %c0_i32_0 = arith.constant 0 : i32
    %c0_i32_1 = arith.constant 0 : i32
    return %c0_i32, %c0_i32_0 : i32, i32
  }
  func.func @transform_2(%arg0: i32) -> (i32, i32) {
    %c0_i32 = arith.constant 0 : i32
    %c0_i32_0 = arith.constant 0 : i32
    %c0_i32_1 = arith.constant 0 : i32
    return %c0_i32, %c0_i32_0 : i32, i32
  }
  func.func @transform_3(%arg0: i32) -> (i32, i32) {
    %c0_i32 = arith.constant 0 : i32
    %c0_i32_0 = arith.constant 0 : i32
    %c0_i32_1 = arith.constant 0 : i32
    return %c0_i32, %c0_i32_0 : i32, i32
  }
  func.func @transform_4(%arg0: i32) -> (i32, i32) {
    %c0_i32 = arith.constant 0 : i32
    %c0_i32_0 = arith.constant 0 : i32
    %c0_i32_1 = arith.constant 0 : i32
    return %c0_i32, %c0_i32_0 : i32, i32
  }
  func.func @transform_5(%arg0: i32) -> (i32, i32) {
    %c0_i32 = arith.constant 0 : i32
    %c0_i32_0 = arith.constant 0 : i32
    %c0_i32_1 = arith.constant 0 : i32
    return %c0_i32, %c0_i32_0 : i32, i32
  }
  func.func @transform_6(%arg0: i32) -> (i32, i32) {
    %c0_i32 = arith.constant 0 : i32
    %c0_i32_0 = arith.constant 0 : i32
    %c0_i32_1 = arith.constant 0 : i32
    return %c0_i32, %c0_i32_0 : i32, i32
  }
  func.func @transform_7(%arg0: i32) -> (i32, i32) {
    %c0_i32 = arith.constant 0 : i32
    %c0_i32_0 = arith.constant 0 : i32
    %c0_i32_1 = arith.constant 0 : i32
    return %c0_i32, %c0_i32_0 : i32, i32
  }
  func.func @transform_8(%arg0: i32) -> (i32, i32) {
    %c0_i32 = arith.constant 0 : i32
    %c0_i32_0 = arith.constant 0 : i32
    %c0_i32_1 = arith.constant 0 : i32
    return %c0_i32, %c0_i32_0 : i32, i32
  }
  func.func @transform_9(%arg0: i32) -> (i32, i32) {
    %c0_i32 = arith.constant 0 : i32
    %c0_i32_0 = arith.constant 0 : i32
    %c0_i32_1 = arith.constant 0 : i32
    return %c0_i32, %c0_i32_0 : i32, i32
  }
  func.func @transform_10(%arg0: i32) -> (i32, i32) {
    %c0_i32 = arith.constant 0 : i32
    %c0_i32_0 = arith.constant 0 : i32
    return %arg0, %c0_i32 : i32, i32
  }
  func.func @transform_11(%arg0: i32) -> (i32, i32) {
    %c0_i32 = arith.constant 0 : i32
    %c0_i32_0 = arith.constant 0 : i32
    return %arg0, %c0_i32 : i32, i32
  }
}

</mosaic_0001>

<bundles_post_ra>
// kernel: tpu_custom_call.1
= control target key start
LH: loop header
LB: loop body
LE: loop exit
PB: predicated region body
PF: predicated region fallthrough
CT: control target
= control target key end

     0   :  { %17 = vsyncpa [#allocation3], 0  ;;  %s6767_s0 = inlined_call_operand.hbm [shape: bf16[16,256], index: 0, kind: input, shape index: {}]   ;;  %s6768_s1 = inlined_call_operand.hbm [shape: bf16[256,768], index: 1, kind: input, shape index: {}]   ;;  %s6769_s2 = inlined_call_operand.vmem [shape: f32[1,768], index: 2, kind: input, shape index: {}]   ;;  %s6770_s3 = inlined_call_operand.hbm [shape: bf16[768,128], index: 3, kind: input, shape index: {}]   ;;  %s6771_s4 = inlined_call_operand.hbm [shape: bf16[512,128], index: 4, kind: input, shape index: {}]   ;;  %s6772_s5 = inlined_call_operand.hbm [shape: f32[2,128], index: 5, kind: input, shape index: {}]   ;;  %s6773_s6 = inlined_call_operand.hbm [shape: bf16[256,1024], index: 6, kind: input, shape index: {}]   ;;  %s6774_s7 = inlined_call_operand.vmem [shape: f32[1,1024], index: 7, kind: input, shape index: {}]   ;;  %s6775_s8 = inlined_call_operand.hbm [shape: bf16[1024,512], index: 8, kind: input, shape index: {}]   ;;  %s6776_s9 = inlined_call_operand.vmem [shape: f32[1,512], index: 9, kind: input, shape index: {}]   ;;  %s6777_s10 = inlined_call_operand.hbm [shape: bf16[16,512], index: 10, kind: output, shape index: {0}]   ;;  %s6778_s11 = inlined_call_operand.hbm [shape: f32[16,128], index: 11, kind: output, shape index: {1}]  }
   0x1   :  { %18 = vsyncpa [#allocation6], 0 }
   0x2   :  { %19 = vsyncpa [#allocation9], 0 }
   0x3   :  { %20 = vsyncpa [#allocation12], 0 }
   0x4   :  { %21 = vsyncpa [#allocation4], 0 }
   0x5   :  { %22 = vsyncpa [#allocation16], 0  ;;  %s6409_s17 = smov [#allocation5]   ;;  %s6199_s21 = scalar_lea.hbm %s6768_s1, 12288 }
   0x6   :  { %s40_s18 = sshll.u32 %s6409_s17, 4  ;;  %p6200_p0 = scmp.ne.s32.totalorder %s6768_s1, %s6199_s21  ;;  %s41_s18 = int_to_ptr.vmem [resolvable:$true] %s40_s18 }
   0x7   :  { %p6203_p1 = scmp.lt.u32.totalorder %s6199_s21, %s6768_s1 }
   0x9   :  { %p6205_p2 = pnand %p6203_p1, %p6200_p0 }
   0xb   :  { %6208 = shalt.err (!%p6205_p2)
}
   0xc   :  { %s6209_s26 = scalar_lea.vmem %s41_s18, 12288  ;;  %p6214_p4 = scmp.lt.s32.totalorder %s41_s18, %s41_s18 }
   0xd   :  { %p6210_p3 = scmp.ne.s32.totalorder %s41_s18, %s6209_s26  ;;  %p6215_p5 = scmp.lt.s32.totalorder %s6209_s26, %s6209_s26 }
   0xf   :  { %p6216_p6 = por %p6215_p5, %p6214_p4 }
  0x11   :  { %p6217_p7 = pnand %p6216_p6, %p6210_p3 }
  0x13   :  { %6220 = shalt.err (!%p6217_p7)
}
  0x14   :  { %s6410_s27 = smov 384   ;;  %s6411_s28 = smov 24  }
  0x15   :  { %46 = dma.hbm_to_vmem [thread:$0]  %s6768_s1, 12288, %s41_s18, [#allocation6], %s6410_s27, %s6410_s27, %s6411_s28  }
  0x16   :  { %s6412_s12 = smov [#allocation8]   ;;  %s6413_s14 = smov [#allocation11]  }
  0x17   :  { %s66_s13 = sshll.u32 %s6412_s12, 4  ;;  %s88_s15 = sshll.u32 %s6413_s14, 4  ;;  %s67_s13 = int_to_ptr.vmem [resolvable:$true] %s66_s13  ;;  %s89_s15 = int_to_ptr.vmem [resolvable:$true] %s88_s15 }
  0x18   :  { %s6221_s19 = scalar_lea.hbm %s6771_s4, 4096 }
  0x19   :  { %p6222_p8 = scmp.ne.s32.totalorder %s6771_s4, %s6221_s19  ;;  %p6225_p9 = scmp.lt.u32.totalorder %s6221_s19, %s6771_s4 }
  0x1b   :  { %p6227_p10 = pnand %p6225_p9, %p6222_p8 }
  0x1d   :  { %6230 = shalt.err (!%p6227_p10)
}
  0x1e   :  { %s6231_s1 = scalar_lea.vmem %s67_s13, 4096  ;;  %p6236_p12 = scmp.lt.s32.totalorder %s67_s13, %s67_s13 }
  0x1f   :  { %p6232_p11 = scmp.ne.s32.totalorder %s67_s13, %s6231_s1  ;;  %p6237_p13 = scmp.lt.s32.totalorder %s6231_s1, %s6231_s1 }
  0x21   :  { %p6238_p0 = por %p6237_p13, %p6236_p12 }
  0x23   :  { %p6239_p1 = pnand %p6238_p0, %p6232_p11 }
  0x25   :  { %6242 = shalt.err (!%p6239_p1)
}
  0x26   :  { %s6414_s18 = smov 64   ;;  %s6415_s24 = smov 4  }
  0x27   :  { %72 = dma.hbm_to_vmem [thread:$0]  %s6771_s4, 4096, %s67_s13, [#allocation9], %s6414_s18, %s6414_s18, %s6415_s24  }
  0x28   :  { %s6243_s29 = scalar_lea.hbm %s6773_s6, 16384 }
  0x29   :  { %p6244_p2 = scmp.ne.s32.totalorder %s6773_s6, %s6243_s29  ;;  %p6247_p3 = scmp.lt.u32.totalorder %s6243_s29, %s6773_s6 }
  0x2b   :  { %p6249_p4 = pnand %p6247_p3, %p6244_p2 }
  0x2d   :  { %6252 = shalt.err (!%p6249_p4)
}
  0x2e   :  { %s6253_s17 = scalar_lea.vmem %s89_s15, 16384  ;;  %p6258_p6 = scmp.lt.s32.totalorder %s89_s15, %s89_s15 }
  0x2f   :  { %p6254_p5 = scmp.ne.s32.totalorder %s89_s15, %s6253_s17  ;;  %p6259_p7 = scmp.lt.s32.totalorder %s6253_s17, %s6253_s17 }
  0x31   :  { %p6260_p8 = por %p6259_p7, %p6258_p6 }
  0x33   :  { %p6261_p9 = pnand %p6260_p8, %p6254_p5 }
  0x35   :  { %6264 = shalt.err (!%p6261_p9)
}
  0x36   :  { %s6416_s4 = smov 512   ;;  %s6417_s13 = smov 32  }
  0x37   :  { %94 = dma.hbm_to_vmem [thread:$0]  %s6773_s6, 16384, %s89_s15, [#allocation12], %s6416_s4, %s6416_s4, %s6417_s13  }
  0x38   :  { %s6418_s21 = smov [#allocation2]   ;;  %s6265_s25 = scalar_lea.hbm %s6767_s0, 256 }
  0x39   :  { %s28_s22 = sshll.u32 %s6418_s21, 4  ;;  %p6266_p10 = scmp.ne.s32.totalorder %s6767_s0, %s6265_s25  ;;  %s29_s22 = int_to_ptr.vmem [resolvable:$true] %s28_s22 }
  0x3a   :  { %p6269_p11 = scmp.lt.u32.totalorder %s6265_s25, %s6767_s0 }
  0x3c   :  { %p6271_p12 = pnand %p6269_p11, %p6266_p10 }
  0x3e   :  { %6274 = shalt.err (!%p6271_p12)
}
  0x3f   :  { %s6275_s30 = scalar_lea.vmem %s29_s22, 256  ;;  %p6280_p0 = scmp.lt.s32.totalorder %s29_s22, %s29_s22 }
  0x40   :  { %p6276_p13 = scmp.ne.s32.totalorder %s29_s22, %s6275_s30  ;;  %p6281_p1 = scmp.lt.s32.totalorder %s6275_s30, %s6275_s30 }
  0x42   :  { %p6282_p2 = por %p6281_p1, %p6280_p0 }
  0x44   :  { %p6283_p3 = pnand %p6282_p2, %p6276_p13 }
  0x46   :  { %6286 = shalt.err (!%p6283_p3)
}
  0x47   :  { %s6419_s6 = smov 128   ;;  %s6420_s15 = smov 8  }
  0x48   :  { %34 = dma.hbm_to_vmem [thread:$0]  %s6767_s0, 256, %s29_s22, [#allocation3], %s6419_s6, %s6419_s6, %s6420_s15  }
  0x49   :  { %s6421_s16 = smov [#allocation7]   ;;  %s6422_s4 = smov [#allocation10]  }
  0x4a   :  { %s54_s17 = sshll.u32 %s6421_s16, 4  ;;  %s79_s13 = sshll.u32 %s6422_s4, 4  ;;  %s55_s17 = int_to_ptr.vmem [resolvable:$true] %s54_s17  ;;  %s80_s13 = int_to_ptr.vmem [resolvable:$true] %s79_s13 }
  0x4b   :  { %s6287_s21 = scalar_lea.hbm %s6770_s3, 6144 }
  0x4c   :  { %p6288_p4 = scmp.ne.s32.totalorder %s6770_s3, %s6287_s21  ;;  %p6291_p5 = scmp.lt.u32.totalorder %s6287_s21, %s6770_s3 }
  0x4e   :  { %p6293_p6 = pnand %p6291_p5, %p6288_p4 }
  0x50   :  { %6296 = shalt.err (!%p6293_p6)
}
  0x51   :  { %s6297_s0 = scalar_lea.vmem %s55_s17, 6144  ;;  %p6302_p8 = scmp.lt.s32.totalorder %s55_s17, %s55_s17 }
  0x52   :  { %p6298_p7 = scmp.ne.s32.totalorder %s55_s17, %s6297_s0  ;;  %p6303_p9 = scmp.lt.s32.totalorder %s6297_s0, %s6297_s0 }
  0x54   :  { %p6304_p10 = por %p6303_p9, %p6302_p8 }
  0x56   :  { %p6305_p11 = pnand %p6304_p10, %p6298_p7 }
  0x58   :  { %6308 = shalt.err (!%p6305_p11)
}
  0x59   :  { %60 = dma.hbm_to_vmem [thread:$0]  %s6770_s3, 6144, %s55_s17, [#allocation6], %s6414_s18, %s6414_s18, %s6415_s24  }
  0x5a   :  { %s6309_s30 = scalar_lea.hbm %s6772_s5, 32 }
  0x5b   :  { %p6310_p12 = scmp.ne.s32.totalorder %s6772_s5, %s6309_s30  ;;  %p6313_p13 = scmp.lt.u32.totalorder %s6309_s30, %s6772_s5 }
  0x5d   :  { %p6315_p0 = pnand %p6313_p13, %p6310_p12 }
  0x5f   :  { %6318 = shalt.err (!%p6315_p0)
}
  0x60   :  { %s6319_s19 = scalar_lea.vmem %s80_s13, 32  ;;  %p6324_p2 = scmp.lt.s32.totalorder %s80_s13, %s80_s13 }
  0x61   :  { %p6320_p1 = scmp.ne.s32.totalorder %s80_s13, %s6319_s19  ;;  %p6325_p3 = scmp.lt.s32.totalorder %s6319_s19, %s6319_s19 }
  0x63   :  { %p6326_p4 = por %p6325_p3, %p6324_p2 }
  0x65   :  { %p6327_p5 = pnand %p6326_p4, %p6320_p1 }
  0x67   :  { %6330 = shalt.err (!%p6327_p5)
}
  0x68   :  { %82 = dma.hbm_to_vmem [thread:$0]  %s6772_s5, 32, %s80_s13, [#allocation9]  }
  0x69   :  { %s6423_s24 = smov [#allocation13]   ;;  %s6331_s23 = scalar_lea.hbm %s6775_s8, 32768 }
  0x6a   :  { %s102_s17 = sshll.u32 %s6423_s24, 4  ;;  %p6332_p6 = scmp.ne.s32.totalorder %s6775_s8, %s6331_s23  ;;  %s103_s17 = int_to_ptr.vmem [resolvable:$true] %s102_s17 }
  0x6b   :  { %p6335_p7 = scmp.lt.u32.totalorder %s6331_s23, %s6775_s8 }
  0x6d   :  { %p6337_p8 = pnand %p6335_p7, %p6332_p6 }
  0x6f   :  { %6340 = shalt.err (!%p6337_p8)
}
  0x70   :  { %s6341_s22 = scalar_lea.vmem %s103_s17, 32768  ;;  %p6346_p10 = scmp.lt.s32.totalorder %s103_s17, %s103_s17 }
  0x71   :  { %p6342_p9 = scmp.ne.s32.totalorder %s103_s17, %s6341_s22  ;;  %p6347_p11 = scmp.lt.s32.totalorder %s6341_s22, %s6341_s22 }
  0x73   :  { %p6348_p12 = por %p6347_p11, %p6346_p10 }
  0x75   :  { %p6349_p13 = pnand %p6348_p12, %p6342_p9 }
  0x77   :  { %6352 = shalt.err (!%p6349_p13)
}
  0x78   :  { %s6424_s5 = smov 256   ;;  %s6425_s13 = smov 16  }
  0x79   :  { %108 = dma.hbm_to_vmem [thread:$0]  %s6775_s8, 32768, %s103_s17, [#allocation12], %s6424_s5, %s6424_s5, %s6425_s13  }
  0x7a   :  { %6397 = dma.done.wait [#allocation3], 256  }
  0x7b   :  { %6398 = vsyncadd [#allocation3], 4294967040 }
  0x7c   :  { %6399 = dma.done.wait [#allocation6], 18432  }
  0x7d   :  { %6400 = vsyncadd [#allocation6], 4294948864 }
  0x7e   :  { %6401 = dma.done.wait [#allocation9], 4128  }
  0x7f   :  { %6402 = vsyncadd [#allocation9], 4294963168 }
  0x80   :  { %6403 = dma.done.wait [#allocation12], 49152  }
  0x81   :  { %6404 = vsyncadd [#allocation12], 4294918144  ;;  %v5570_v0 = vld [vmem:[#allocation5 + $0x4] ss:$24 sps:$4 sm:$0xff]   ;;  %v5572_v1 = vld [vmem:[#allocation5] ss:$24 sps:$4 sm:$0xff]  }
  0x82   :  { %753 = vmatprep.subr.bf16.mxu0 %v5570_v0  ;;  %v5573_v2 = vld [vmem:[#allocation5 + $0x34] ss:$24 sps:$4 sm:$0xff]   ;;  %v5575_v3 = vld [vmem:[#allocation5 + $0x30] ss:$24 sps:$4 sm:$0xff]   ;;  %v5576_v4 = vld [vmem:[#allocation5 + $0x64] ss:$24 sps:$4 sm:$0xff]  }
  0x83   :  { %754 = vmatpush1.bf16.msra.mxu0 %v5572_v1  ;;  %v5578_v5 = vld [vmem:[#allocation5 + $0x60] ss:$24 sps:$4 sm:$0xff]   ;;  %v5579_v6 = vld [vmem:[#allocation5 + $0x94] ss:$24 sps:$4 sm:$0xff]   ;;  %v5581_v7 = vld [vmem:[#allocation5 + $0x90] ss:$24 sps:$4 sm:$0xff]  }
  0x84   :  { %755 = vmatprep.subr.bf16.mxu0 %v5573_v2  ;;  %v5594_v8 = vld [vmem:[#allocation5 + $0xc] ss:$24 sps:$4 sm:$0xff]   ;;  %v5598_v10 = vld [vmem:[#allocation5 + $0x8] ss:$24 sps:$4 sm:$0xff]   ;;  %v5600_v11 = vld [vmem:[#allocation5 + $0x3c] ss:$24 sps:$4 sm:$0xff]  }
  0x85   :  { %v5582_v9 = vld [vmem:[#allocation5 + $0xc4] ss:$24 sps:$4 sm:$0xff]   ;;  %796 = vmatprep.subr.bf16.mxu1 %v5594_v8  ;;  %v5584_v12 = vld [vmem:[#allocation5 + $0xc0] ss:$24 sps:$4 sm:$0xff]   ;;  %v5585_v13 = vld [vmem:[#allocation5 + $0xf4] ss:$24 sps:$4 sm:$0xff]  }
  0x86   :  { %797 = vmatpush1.bf16.msra.mxu1 %v5598_v10  ;;  %v5604_v14 = vld [vmem:[#allocation5 + $0x38] ss:$24 sps:$4 sm:$0xff]   ;;  %v5606_v15 = vld [vmem:[#allocation5 + $0x6c] ss:$24 sps:$4 sm:$0xff]   ;;  %v5610_v17 = vld [vmem:[#allocation5 + $0x68] ss:$24 sps:$4 sm:$0xff]  }
  0x87   :  { %756 = vmatpush1.bf16.msra.mxu0 %v5575_v3  ;;  %798 = vmatprep.subr.bf16.mxu1 %v5600_v11  ;;  %v5587_v16 = vld [vmem:[#allocation5 + $0xf0] ss:$24 sps:$4 sm:$0xff]   ;;  %v5612_v18 = vld [vmem:[#allocation5 + $0x9c] ss:$24 sps:$4 sm:$0xff]   ;;  %v5590_v21 = vld [vmem:[#allocation5 + $0x120] ss:$24 sps:$4 sm:$0xff]  }
  0x88   :  { %757 = vmatprep.subr.bf16.mxu0 %v5576_v4  ;;  %v5588_v19 = vld [vmem:[#allocation5 + $0x124] ss:$24 sps:$4 sm:$0xff]   ;;  %v5616_v20 = vld [vmem:[#allocation5 + $0x98] ss:$24 sps:$4 sm:$0xff]   ;;  %v5591_v23 = vld [vmem:[#allocation5 + $0x154] ss:$24 sps:$4 sm:$0xff]  }
  0x89   :  { %v5618_v22 = vld [vmem:[#allocation5 + $0xcc] ss:$24 sps:$4 sm:$0xff]   ;;  %v5593_v24 = vld [vmem:[#allocation5 + $0x150] ss:$24 sps:$4 sm:$0xff]   ;;  %v5624_v26 = vld [vmem:[#allocation5 + $0xfc] ss:$24 sps:$4 sm:$0xff]  }
  0x8a   :  { %799 = vmatpush1.bf16.msra.mxu1 %v5604_v14  ;;  %v5622_v25 = vld [vmem:[#allocation5 + $0xc8] ss:$24 sps:$4 sm:$0xff]   ;;  %v5596_v27 = vld [vmem:[#allocation5 + $0x184] ss:$24 sps:$4 sm:$0xff]   ;;  %v5628_v28 = vld [vmem:[#allocation5 + $0xf8] ss:$24 sps:$4 sm:$0xff]  }
  0x8b   :  { %758 = vmatpush1.bf16.msra.mxu0 %v5578_v5  ;;  %800 = vmatprep.subr.bf16.mxu1 %v5606_v15  ;;  %v5599_v29 = vld [vmem:[#allocation5 + $0x180] ss:$24 sps:$4 sm:$0xff]   ;;  %v5602_v30 = vld [vmem:[#allocation5 + $0x1b4] ss:$24 sps:$4 sm:$0xff]   ;;  %v5605_v34 = vld [vmem:[#allocation5 + $0x1b0] ss:$24 sps:$4 sm:$0xff]  }
  0x8c   :  { %759 = vmatprep.subr.bf16.mxu0 %v5579_v6  ;;  %v5630_v31 = vld [vmem:[#allocation5 + $0x12c] ss:$24 sps:$4 sm:$0xff]   ;;  %v133_v32 = vld [vmem:[#allocation2] sm:$0xff]  ;;  %v134_v33 = vld [vmem:[#allocation2 + $0x8] sm:$0xff] }
  0x8d   :  { %v6587_v35 = vcombine.high %v133_v32, %v134_v33  ;;  %v5634_v36 = vld [vmem:[#allocation5 + $0x128] ss:$24 sps:$4 sm:$0xff]   ;;  %v5636_v37 = vld [vmem:[#allocation5 + $0x15c] ss:$24 sps:$4 sm:$0xff]   ;;  %v5640_v40 = vld [vmem:[#allocation5 + $0x158] ss:$24 sps:$4 sm:$0xff]   ;;  %v6591_v0 = vcombine.low %v133_v32, %v134_v33 }
  0x8e   :  { %801 = vmatpush1.bf16.msra.mxu1 %v5610_v17  ;;  %v5608_v38 = vld [vmem:[#allocation5 + $0x1e4] ss:$24 sps:$4 sm:$0xff]   ;;  %v5611_v39 = vld [vmem:[#allocation5 + $0x1e0] ss:$24 sps:$4 sm:$0xff]   ;;  %v5614_v42 = vld [vmem:[#allocation5 + $0x214] ss:$24 sps:$4 sm:$0xff]  }
  0x8f   :  { %760 = vmatpush1.bf16.msra.mxu0 %v5581_v7  ;;  %802 = vmatprep.subr.bf16.mxu1 %v5612_v18  ;;  %v5643_v41 = vld [vmem:[#allocation5 + $0x18c] ss:$24 sps:$4 sm:$0xff]   ;;  %v5617_v43 = vld [vmem:[#allocation5 + $0x210] ss:$24 sps:$4 sm:$0xff]   ;;  %v5650_v45 = vld [vmem:[#allocation5 + $0x1bc] ss:$24 sps:$4 sm:$0xff]  }
  0x90   :  { %761 = vmatprep.subr.bf16.mxu0 %v5582_v9  ;;  %785 = vmatprep.mubr.bf16.mxu0 %v6587_v35  ;;  %v5646_v44 = vld [vmem:[#allocation5 + $0x188] ss:$24 sps:$4 sm:$0xff]   ;;  %v5620_v46 = vld [vmem:[#allocation5 + $0x244] ss:$24 sps:$4 sm:$0xff]   ;;  %v5652_v48 = vld [vmem:[#allocation5 + $0x1b8] ss:$24 sps:$4 sm:$0xff]  }
  0x91   :  { %828 = vmatprep.mubr.bf16.mxu1 %v6587_v35  ;;  %v5623_v47 = vld [vmem:[#allocation5 + $0x240] ss:$24 sps:$4 sm:$0xff]   ;;  %v5656_v49 = vld [vmem:[#allocation5 + $0x1ec] ss:$24 sps:$4 sm:$0xff]   ;;  %v5629_v51 = vld [vmem:[#allocation5 + $0x270] ss:$24 sps:$4 sm:$0xff]  }
  0x92   :  { %803 = vmatpush1.bf16.msra.mxu1 %v5616_v20  ;;  %v5626_v50 = vld [vmem:[#allocation5 + $0x274] ss:$24 sps:$4 sm:$0xff]   ;;  %v5658_v52 = vld [vmem:[#allocation5 + $0x1e8] ss:$24 sps:$4 sm:$0xff]   ;;  %v5632_v54 = vld [vmem:[#allocation5 + $0x2a4] ss:$24 sps:$4 sm:$0xff]  }
  0x93   :  { %762 = vmatpush1.bf16.msra.mxu0 %v5584_v12  ;;  %804 = vmatprep.subr.bf16.mxu1 %v5618_v22  ;;  %v5662_v53 = vld [vmem:[#allocation5 + $0x21c] ss:$24 sps:$4 sm:$0xff]   ;;  %v5635_v55 = vld [vmem:[#allocation5 + $0x2a0] ss:$24 sps:$4 sm:$0xff]   ;;  %v5668_v57 = vld [vmem:[#allocation5 + $0x24c] ss:$24 sps:$4 sm:$0xff]  }
  0x94   :  { %763 = vmatprep.subr.bf16.mxu0 %v5585_v13  ;;  %v5664_v56 = vld [vmem:[#allocation5 + $0x218] ss:$24 sps:$4 sm:$0xff]   ;;  %v5638_v58 = vld [vmem:[#allocation5 + $0x2d4] ss:$24 sps:$4 sm:$0xff]   ;;  %v5670_v60 = vld [vmem:[#allocation5 + $0x248] ss:$24 sps:$4 sm:$0xff]  }
  0x95   :  { %v5641_v59 = vld [vmem:[#allocation5 + $0x2d0] ss:$24 sps:$4 sm:$0xff]   ;;  %v5674_v61 = vld [vmem:[#allocation5 + $0x27c] ss:$24 sps:$4 sm:$0xff]   ;;  %v5680_v2 = vld [vmem:[#allocation5 + $0x2ac] ss:$24 sps:$4 sm:$0xff]  }
  0x96   :  { %805 = vmatpush1.bf16.msra.mxu1 %v5622_v25  ;;  %v5649_v62 = vld [vmem:[#allocation5 + $0x14] ss:$24 sps:$4 sm:$0xff]   ;;  %v5647_v63 = vld [vmem:[#allocation5 + $0x10] ss:$24 sps:$4 sm:$0xff]   ;;  %v5655_v3 = vld [vmem:[#allocation5 + $0x44] ss:$24 sps:$4 sm:$0xff]  }
  0x97   :  { %764 = vmatpush1.bf16.msra.mxu0 %v5587_v16  ;;  %806 = vmatprep.subr.bf16.mxu1 %v5624_v26  ;;  %v5676_v1 = vld [vmem:[#allocation5 + $0x278] ss:$24 sps:$4 sm:$0xff]   ;;  %v5682_v5 = vld [vmem:[#allocation5 + $0x2a8] ss:$24 sps:$4 sm:$0xff]   ;;  %v5686_v6 = vld [vmem:[#allocation5 + $0x2dc] ss:$24 sps:$4 sm:$0xff]  }
  0x98   :  { %765 = vmatprep.subr.bf16.mxu0 %v5588_v19  ;;  %v5653_v4 = vld [vmem:[#allocation5 + $0x40] ss:$24 sps:$4 sm:$0xff]   ;;  %v5661_v7 = vld [vmem:[#allocation5 + $0x74] ss:$24 sps:$4 sm:$0xff]   ;;  %v5659_v8 = vld [vmem:[#allocation5 + $0x70] ss:$24 sps:$4 sm:$0xff]  }
  0x99   :  { %v5688_v9 = vld [vmem:[#allocation5 + $0x2d8] ss:$24 sps:$4 sm:$0xff]   ;;  %v5716_v10 = vld [vmem:[#allocation7 + $0x40] sm:$0xff]   ;;  %v5718_v14 = vld [vmem:[#allocation7 + $0x48] sm:$0xff]  }
  0x9a   :  { %807 = vmatpush1.bf16.msra.mxu1 %v5628_v28  ;;  %v5667_v11 = vld [vmem:[#allocation5 + $0xa4] ss:$24 sps:$4 sm:$0xff]   ;;  %v5665_v12 = vld [vmem:[#allocation5 + $0xa0] ss:$24 sps:$4 sm:$0xff]   ;;  %v5673_v15 = vld [vmem:[#allocation5 + $0xd4] ss:$24 sps:$4 sm:$0xff]  }
  0x9b   :  { %766 = vmatpush1.bf16.msra.mxu0 %v5590_v21  ;;  %808 = vmatprep.subr.bf16.mxu1 %v5630_v31  ;;  %v5717_v13 = vld [vmem:[#allocation7] sm:$0xff]   ;;  %v5719_v16 = vld [vmem:[#allocation7 + $0x8] sm:$0xff]   ;;  %v5720_v18 = vld [vmem:[#allocation7 + $0x50] sm:$0xff]  }
  0x9c   :  { %767 = vmatprep.subr.bf16.mxu0 %v5591_v23  ;;  %v5671_v17 = vld [vmem:[#allocation5 + $0xd0] ss:$24 sps:$4 sm:$0xff]   ;;  %v5679_v19 = vld [vmem:[#allocation5 + $0x104] ss:$24 sps:$4 sm:$0xff]   ;;  %v5677_v21 = vld [vmem:[#allocation5 + $0x100] ss:$24 sps:$4 sm:$0xff]  }
  0x9d   :  { %v5721_v20 = vld [vmem:[#allocation7 + $0x10] sm:$0xff]   ;;  %v5722_v22 = vld [vmem:[#allocation7 + $0x58] sm:$0xff]   ;;  %v5724_v26 = vld [vmem:[#allocation7 + $0x60] sm:$0xff]  }
  0x9e   :  { %809 = vmatpush1.bf16.msra.mxu1 %v5634_v36  ;;  %v5685_v23 = vld [vmem:[#allocation5 + $0x134] ss:$24 sps:$4 sm:$0xff]   ;;  %v5683_v25 = vld [vmem:[#allocation5 + $0x130] ss:$24 sps:$4 sm:$0xff]   ;;  %v5725_v28 = vld [vmem:[#allocation7 + $0x20] sm:$0xff]  }
  0x9f   :  { %768 = vmatpush1.bf16.msra.mxu0 %v5593_v24  ;;  %810 = vmatprep.subr.bf16.mxu1 %v5636_v37  ;;  %v5723_v24 = vld [vmem:[#allocation7 + $0x18] sm:$0xff]   ;;  %v5694_v31 = vld [vmem:[#allocation5 + $0x194] ss:$24 sps:$4 sm:$0xff]   ;;  %v5692_v33 = vld [vmem:[#allocation5 + $0x190] ss:$24 sps:$4 sm:$0xff]  }
  0xa0   :  { %769 = vmatprep.subr.bf16.mxu0 %v5596_v27  ;;  %v5691_v27 = vld [vmem:[#allocation5 + $0x164] ss:$24 sps:$4 sm:$0xff]   ;;  %v5727_v32 = vld [vmem:[#allocation7 + $0x28] sm:$0xff]  }
  0xa1   :  { %v5700_v36 = vld [vmem:[#allocation5 + $0x1f4] ss:$24 sps:$4 sm:$0xff]   ;;  %v5698_v37 = vld [vmem:[#allocation5 + $0x1f0] ss:$24 sps:$4 sm:$0xff]  }
  0xa2   :  { %811 = vmatpush1.bf16.msra.mxu1 %v5640_v40  ;;  %v5706_v40 = vld [vmem:[#allocation5 + $0x254] ss:$24 sps:$4 sm:$0xff]  }
  0xa3   :  { %770 = vmatpush1.bf16.msra.mxu0 %v5599_v29  ;;  %812 = vmatprep.subr.bf16.mxu1 %v5643_v41  ;;  %v5689_v29 = vld [vmem:[#allocation5 + $0x160] ss:$24 sps:$4 sm:$0xff]   ;;  %v5704_v41 = vld [vmem:[#allocation5 + $0x250] ss:$24 sps:$4 sm:$0xff]  }
  0xa4   :  { %771 = vmatprep.subr.bf16.mxu0 %v5602_v30  ;;  %v5726_v30 = vld [vmem:[#allocation7 + $0x68] sm:$0xff]  }
  0xa6   :  { %813 = vmatpush1.bf16.msra.mxu1 %v5646_v44  ;;  %v5712_v44 = vld [vmem:[#allocation5 + $0x2b4] ss:$24 sps:$4 sm:$0xff]  }
  0xa7   :  { %772 = vmatpush1.bf16.msra.mxu0 %v5605_v34  ;;  %814 = vmatprep.subr.bf16.mxu1 %v5650_v45  ;;  %v5697_v34 = vld [vmem:[#allocation5 + $0x1c4] ss:$24 sps:$4 sm:$0xff]   ;;  %v5710_v45 = vld [vmem:[#allocation5 + $0x2b0] ss:$24 sps:$4 sm:$0xff]  }
  0xa8   :  { %773 = vmatprep.subr.bf16.mxu0 %v5608_v38  ;;  %v5703_v38 = vld [vmem:[#allocation5 + $0x224] ss:$24 sps:$4 sm:$0xff]  }
  0xaa   :  { %815 = vmatpush1.bf16.msra.mxu1 %v5652_v48  ;;  %v5728_v48 = vld [vmem:[#allocation7 + $0x70] sm:$0xff]  }
  0xab   :  { %774 = vmatpush1.bf16.msra.mxu0 %v5611_v39  ;;  %816 = vmatprep.subr.bf16.mxu1 %v5656_v49  ;;  %v5701_v39 = vld [vmem:[#allocation5 + $0x220] ss:$24 sps:$4 sm:$0xff]   ;;  %v5729_v49 = vld [vmem:[#allocation7 + $0x30] sm:$0xff]  }
  0xac   :  { %775 = vmatprep.subr.bf16.mxu0 %v5614_v42  ;;  %v5709_v42 = vld [vmem:[#allocation5 + $0x284] ss:$24 sps:$4 sm:$0xff]  }
  0xae   :  { %817 = vmatpush1.bf16.msra.mxu1 %v5658_v52  ;;  %v5732_v52 = vld [vmem:[#allocation7 + $0xc0] sm:$0xff]  }
  0xaf   :  { %776 = vmatpush1.bf16.msra.mxu0 %v5617_v43  ;;  %818 = vmatprep.subr.bf16.mxu1 %v5662_v53  ;;  %v5707_v43 = vld [vmem:[#allocation5 + $0x280] ss:$24 sps:$4 sm:$0xff]  }
  0xb0   :  { %777 = vmatprep.subr.bf16.mxu0 %v5620_v46  ;;  %v5715_v46 = vld [vmem:[#allocation5 + $0x2e4] ss:$24 sps:$4 sm:$0xff]  }
  0xb1   :  { %v5748_v53 = vld [vmem:[#allocation7 + $0x140] sm:$0xff]  }
  0xb2   :  { %819 = vmatpush1.bf16.msra.mxu1 %v5664_v56  ;;  %v5751_v56 = vld [vmem:[#allocation7 + $0x108] sm:$0xff]  }
  0xb3   :  { %778 = vmatpush1.bf16.msra.mxu0 %v5623_v47  ;;  %820 = vmatprep.subr.bf16.mxu1 %v5668_v57  ;;  %v5713_v47 = vld [vmem:[#allocation5 + $0x2e0] ss:$24 sps:$4 sm:$0xff]   ;;  %v5752_v57 = vld [vmem:[#allocation7 + $0x150] sm:$0xff]  }
  0xb4   :  { %779 = vmatprep.subr.bf16.mxu0 %v5626_v50  ;;  %v5730_v50 = vld [vmem:[#allocation7 + $0x78] sm:$0xff]  }
  0xb6   :  { %821 = vmatpush1.bf16.msra.mxu1 %v5670_v60  ;;  %v5755_v60 = vld [vmem:[#allocation7 + $0x118] sm:$0xff]  }
  0xb7   :  { %780 = vmatpush1.bf16.msra.mxu0 %v5629_v51  ;;  %822 = vmatprep.subr.bf16.mxu1 %v5674_v61  ;;  %v5731_v51 = vld [vmem:[#allocation7 + $0x38] sm:$0xff]   ;;  %v5756_v61 = vld [vmem:[#allocation7 + $0x160] sm:$0xff]  }
  0xb8   :  { %781 = vmatprep.subr.bf16.mxu0 %v5632_v54  ;;  %v5749_v54 = vld [vmem:[#allocation7 + $0x100] sm:$0xff]  }
  0xba   :  { %823 = vmatpush1.bf16.msra.mxu1 %v5676_v1  ;;  %v5760_v1 = vld [vmem:[#allocation7 + $0x170] sm:$0xff]  }
  0xbb   :  { %782 = vmatpush1.bf16.msra.mxu0 %v5635_v55  ;;  %824 = vmatprep.subr.bf16.mxu1 %v5680_v2  ;;  %v5750_v55 = vld [vmem:[#allocation7 + $0x148] sm:$0xff]   ;;  %v5761_v2 = vld [vmem:[#allocation7 + $0x130] sm:$0xff]  }
  0xbc   :  { %783 = vmatprep.subr.bf16.mxu0 %v5638_v58  ;;  %v5753_v58 = vld [vmem:[#allocation7 + $0x110] sm:$0xff]  }
  0xbe   :  { %825 = vmatpush1.bf16.msra.mxu1 %v5682_v5  ;;  %v233_v5 = vlaneseq }
  0xbf   :  { %784 = vmatpush1.bf16.msra.mxu0 %v5641_v59  ;;  %826 = vmatprep.subr.bf16.mxu1 %v5686_v6  ;;  %v5754_v59 = vld [vmem:[#allocation7 + $0x158] sm:$0xff]  }
  0xc0   :  { %839 = vmatprep.subr.bf16.mxu0 %v5649_v62  ;;  %v5757_v62 = vld [vmem:[#allocation7 + $0x120] sm:$0xff]   ;;  %v6598_v6 = vshrl.u32 %v233_v5, 7 }
  0xc2   :  { %786 = vmatmul.mubr.bf16.vlgmr.msra.gmra.mrb[0].mxu0 %v6591_v0  ;;  %827 = vmatpush1.bf16.msra.mxu1 %v5688_v9  ;;  %v6609_v9 = vsub.s32 1, %v6598_v6 }
  0xc3   :  { %840 = vmatpush1.bf16.msra.mxu0 %v5647_v63  ;;  %871 = vmatprep.mubr.bf16.mxu0 %v6587_v35  ;;  %v5695_v35 = vld [vmem:[#allocation5 + $0x1c0] ss:$24 sps:$4 sm:$0xff]   ;;  %v5758_v63 = vld [vmem:[#allocation7 + $0x168] sm:$0xff]  }
  0xc4   :  { %841 = vmatprep.subr.bf16.mxu0 %v5655_v3  ;;  %5399 = vmatprep.subr.bf16.mxu1 %v5716_v10  ;;  %v5762_v3 = vld [vmem:[#allocation7 + $0x178] sm:$0xff]  }
  0xc5   :  { %829 = vmatmul.mubr.bf16.vlgmr.msra.gmra.mrb[0].mxu1 %v6591_v0 }
  0xc6   :  { %5400 = vmatpush3.bf16.msra.mxu1 %v5717_v13 }
  0xc7   :  { %842 = vmatpush1.bf16.msra.mxu0 %v5653_v4  ;;  %5401 = vmatprep.subr.bf16.mxu1 %v5718_v14  ;;  %v5763_v4 = vld [vmem:[#allocation7 + $0x138] sm:$0xff]  }
  0xc8   :  { %843 = vmatprep.subr.bf16.mxu0 %v5661_v7  ;;  %v6601_v7 = vsub.s32 0, %v6598_v6 }
  0xca   :  { %5402 = vmatpush3.bf16.msra.mxu1 %v5719_v16 }
  0xcb   :  { %844 = vmatpush1.bf16.msra.mxu0 %v5659_v8  ;;  %5403 = vmatprep.subr.bf16.mxu1 %v5720_v18  ;;  %v6606_v8 = vld [vmem:[%s6769_s2] sm:$0x3f] }
  0xcc   :  { %845 = vmatprep.subr.bf16.mxu0 %v5667_v11  ;;  %v236_v10 = vrot.slane %v6606_v8, %v6601_v7  ;;  %v240_v11 = vrot.slane %v6606_v8, %v6609_v9 }
  0xce   :  { %5404 = vmatpush3.bf16.msra.mxu1 %v5721_v20 }
  0xcf   :  { %846 = vmatpush1.bf16.msra.mxu0 %v5665_v12  ;;  %5405 = vmatprep.subr.bf16.mxu1 %v5722_v22 }
  0xd0   :  { %847 = vmatprep.subr.bf16.mxu0 %v5673_v15 }
  0xd2   :  { %5406 = vmatpush3.bf16.msra.mxu1 %v5723_v24 }
  0xd3   :  { %848 = vmatpush1.bf16.msra.mxu0 %v5671_v17  ;;  %5407 = vmatprep.subr.bf16.mxu1 %v5724_v26 }
  0xd4   :  { %849 = vmatprep.subr.bf16.mxu0 %v5679_v19 }
  0xd6   :  { %5408 = vmatpush3.bf16.msra.mxu1 %v5725_v28  ;;  %v5733_v28 = vld [vmem:[#allocation7 + $0x80] sm:$0xff]  }
  0xd7   :  { %850 = vmatpush1.bf16.msra.mxu0 %v5677_v21  ;;  %5409 = vmatprep.subr.bf16.mxu1 %v5726_v30  ;;  %v6616_v21 = vsub.s32 2, %v6598_v6  ;;  %v5734_v30 = vld [vmem:[#allocation7 + $0xc8] sm:$0xff]  }
  0xd8   :  { %851 = vmatprep.subr.bf16.mxu0 %v5685_v23  ;;  %v6619_v23 = vsub.s32 3, %v6598_v6 }
  0xda   :  { %5410 = vmatpush3.bf16.msra.mxu1 %v5727_v32 }
  0xdb   :  { %852 = vmatpush1.bf16.msra.mxu0 %v5683_v25  ;;  %5411 = vmatprep.subr.bf16.mxu1 %v5728_v48 }
  0xdc   :  { %853 = vmatprep.subr.bf16.mxu0 %v5691_v27 }
  0xde   :  { %5412 = vmatpush3.bf16.msra.mxu1 %v5729_v49 }
  0xdf   :  { %854 = vmatpush1.bf16.msra.mxu0 %v5689_v29  ;;  %5413 = vmatprep.subr.bf16.mxu1 %v5730_v50  ;;  %v244_v29 = vrot.slane %v6606_v8, %v6616_v21  ;;  %v5739_v50 = vld [vmem:[#allocation7 + $0x98] sm:$0xff]  }
  0xe0   :  { %855 = vmatprep.subr.bf16.mxu0 %v5694_v31  ;;  %v248_v31 = vrot.slane %v6606_v8, %v6619_v23 }
  0xe2   :  { %5414 = vmatpush3.bf16.msra.mxu1 %v5731_v51  ;;  %v5740_v51 = vld [vmem:[#allocation7 + $0xe0] sm:$0xff]  }
  0xe3   :  { %856 = vmatpush1.bf16.msra.mxu0 %v5692_v33  ;;  %5421 = vmatprep.subr.bf16.mxu1 %v5732_v52  ;;  %v5735_v33 = vld [vmem:[#allocation7 + $0x88] sm:$0xff]   ;;  %v5741_v52 = vld [vmem:[#allocation7 + $0xa0] sm:$0xff]  }
  0xe4   :  { %857 = vmatprep.subr.bf16.mxu0 %v5697_v34 }
  0xe7   :  { %858 = vmatpush1.bf16.msra.mxu0 %v5695_v35 }
  0xe8   :  { %859 = vmatprep.subr.bf16.mxu0 %v5700_v36  ;;  %v5736_v36 = vld [vmem:[#allocation7 + $0xd0] sm:$0xff]  }
  0xeb   :  { %860 = vmatpush1.bf16.msra.mxu0 %v5698_v37 }
  0xec   :  { %861 = vmatprep.subr.bf16.mxu0 %v5703_v38 }
  0xef   :  { %862 = vmatpush1.bf16.msra.mxu0 %v5701_v39 }
  0xf0   :  { %863 = vmatprep.subr.bf16.mxu0 %v5706_v40 }
  0xf3   :  { %864 = vmatpush1.bf16.msra.mxu0 %v5704_v41 }
  0xf4   :  { %865 = vmatprep.subr.bf16.mxu0 %v5709_v42 }
  0xf7   :  { %866 = vmatpush1.bf16.msra.mxu0 %v5707_v43 }
  0xf8   :  { %867 = vmatprep.subr.bf16.mxu0 %v5712_v44  ;;  %v5737_v44 = vld [vmem:[#allocation7 + $0x90] sm:$0xff]  }
  0xfb   :  { %868 = vmatpush1.bf16.msra.mxu0 %v5710_v45 }
  0xfc   :  { %869 = vmatprep.subr.bf16.mxu0 %v5715_v46  ;;  %v5738_v46 = vld [vmem:[#allocation7 + $0xd8] sm:$0xff]  }
  0xff   :  { %870 = vmatpush1.bf16.msra.mxu0 %v5713_v47 }
 0x100   :  { %5443 = vmatprep.subr.bf16.mxu0 %v5748_v53  ;;  %v5742_v53 = vld [vmem:[#allocation7 + $0xe8] sm:$0xff]  }
 0x102   :  { %872 = vmatmul.mubr.bf16.vlgmr.msra.gmra.mrb[4].mxu0 %v6591_v0  ;;  %v5759_v0 = vld [vmem:[#allocation7 + $0x128] sm:$0xff]  }
 0x103   :  { %5444 = vmatpush3.bf16.msra.mxu0 %v5749_v54  ;;  %v5743_v54 = vld [vmem:[#allocation7 + $0xa8] sm:$0xff]  }
 0x104   :  { %5445 = vmatprep.subr.bf16.mxu0 %v5750_v55  ;;  %v5744_v55 = vld [vmem:[#allocation7 + $0xf0] sm:$0xff]  }
 0x107   :  { %5446 = vmatpush3.bf16.msra.mxu0 %v5751_v56  ;;  %v5745_v56 = vld [vmem:[#allocation7 + $0xb0] sm:$0xff]  }
 0x108   :  { %5447 = vmatprep.subr.bf16.mxu0 %v5752_v57  ;;  %v5746_v57 = vld [vmem:[#allocation7 + $0xf8] sm:$0xff]  }
 0x10b   :  { %5448 = vmatpush3.bf16.msra.mxu0 %v5753_v58  ;;  %v5747_v58 = vld [vmem:[#allocation7 + $0xb8] sm:$0xff]  }
 0x10c   :  { %5449 = vmatprep.subr.bf16.mxu0 %v5754_v59  ;;  %v251_v59 = vsub.s32 4, %v6598_v6 }
 0x10f   :  { %5450 = vmatpush3.bf16.msra.mxu0 %v5755_v60  ;;  %v255_v60 = vsub.s32 5, %v6598_v6 }
 0x110   :  { %5451 = vmatprep.subr.bf16.mxu0 %v5756_v61  ;;  %v252_v61 = vrot.slane %v6606_v8, %v251_v59 }
 0x113   :  { %5452 = vmatpush3.bf16.msra.mxu0 %v5757_v62  ;;  %v256_v62 = vrot.slane %v6606_v8, %v255_v60 }
 0x114   :  { %5453 = vmatprep.subr.bf16.mxu0 %v5758_v63 }
 0x117   :  { %5454 = vmatpush3.bf16.msra.mxu0 %v5759_v0 }
 0x118   :  { %5455 = vmatprep.subr.bf16.mxu0 %v5760_v1 }
 0x11b   :  { %5456 = vmatpush3.bf16.msra.mxu0 %v5761_v2 }
 0x11c   :  { %5457 = vmatprep.subr.bf16.mxu0 %v5762_v3 }
 0x11f   :  { %5458 = vmatpush3.bf16.msra.mxu0 %v5763_v4 }
 0x195   :  { %v787_v12 = vpop.f32.mrb[0].mxu0 }
 0x196   :  { %v788_v13 = vadd.f32 %v787_v12, %v236_v10  ;;  %v789_v14 = vpop.f32.mrb[1].mxu0 }
 0x197   :  { %v790_v15 = vadd.f32 %v789_v14, %v240_v11  ;;  %v791_v16 = vpop.f32.mrb[2].mxu0 }
 0x198   :  { %v882_v17 = vmax.f32 %v788_v13, 0.0  ;;  %v792_v18 = vadd.f32 %v791_v16, %v236_v10  ;;  %v793_v19 = vpop.f32.mrb[3].mxu0  ;;  %v830_v32 = vpop.f32.mrb[0].mxu1 }
 0x199   :  { %v794_v20 = vadd.f32 %v793_v19, %v240_v11  ;;  %v883_v24 = vmax.f32 %v790_v15, 0.0  ;;  %v831_v34 = vadd.f32 %v830_v32, %v244_v29  ;;  %v832_v35 = vpop.f32.mrb[1].mxu1 }
 0x19a   :  { %v888_v22 = vmax.f32 %v792_v18, 0.0  ;;  %v833_v37 = vadd.f32 %v832_v35, %v248_v31  ;;  %v834_v38 = vpop.f32.mrb[2].mxu1 }
 0x19b   :  { %v889_v25 = vmax.f32 %v794_v20, 0.0  ;;  %v884_v39 = vmax.f32 %v831_v34, 0.0  ;;  %v835_v40 = vadd.f32 %v834_v38, %v244_v29  ;;  %v836_v41 = vpop.f32.mrb[3].mxu1 }
 0x19c   :  { %v895_v26 = vpack.c.bf16 %v888_v22, %v882_v17  ;;  %v885_v42 = vmax.f32 %v833_v37, 0.0  ;;  %v837_v43 = vadd.f32 %v836_v41, %v248_v31  ;;  %v6635_v37 = vand.u32 127, %v233_v5 }
 0x19d   :  { %v896_v27 = vpack.c.bf16 %v889_v25, %v883_v24  ;;  %v890_v45 = vmax.f32 %v835_v40, 0.0  ;;  %v894_v25 = vld [vmem:[#allocation10] sm:$0x3] }
 0x19e   :  { %v891_v47 = vmax.f32 %v837_v43, 0.0  ;;  %vm1414_vm0 = vcmp.lt.s32.totalorder %v6635_v37, 3  ;;  %vm1463_vm2 = vcmp.ge.s32.totalorder %v6635_v37, 64 }
 0x19f   :  { %1321 = vmatprep.mubr.bf16.mxu1 %v896_v27  ;;  %v897_v48 = vpack.c.bf16 %v890_v45, %v884_v39 }
 0x1a0   :  { %1322 = vmatmul.mubr.bf16.vlgmr.msra.gmra.mrb[4].mxu1 %v895_v26  ;;  %v898_v49 = vpack.c.bf16 %v891_v47, %v885_v42  ;;  %v1000_v26 = vrot.slane %v894_v25, %v6601_v7  ;;  %v1525_v25 = vld [vmem:[#allocation11 + $0xc0] sm:$0xff] }
 0x1a1   :  { %5422 = vmatpush3.bf16.msra.mxu1 %v5733_v28 }
 0x1a2   :  { %5423 = vmatprep.subr.bf16.mxu1 %v5734_v30  ;;  %1362 = vmatprep.mubr.bf16.mxu1 %v898_v49 }
 0x1a5   :  { %5424 = vmatpush3.bf16.msra.mxu1 %v5735_v33 }
 0x1a6   :  { %5425 = vmatprep.subr.bf16.mxu1 %v5736_v36 }
 0x1a9   :  { %5426 = vmatpush3.bf16.msra.mxu1 %v5737_v44 }
 0x1aa   :  { %5427 = vmatprep.subr.bf16.mxu1 %v5738_v46 }
 0x1ad   :  { %5428 = vmatpush3.bf16.msra.mxu1 %v5739_v50 }
 0x1ae   :  { %5429 = vmatprep.subr.bf16.mxu1 %v5740_v51 }
 0x1b1   :  { %5430 = vmatpush3.bf16.msra.mxu1 %v5741_v52 }
 0x1b2   :  { %5431 = vmatprep.subr.bf16.mxu1 %v5742_v53 }
 0x1b5   :  { %5432 = vmatpush3.bf16.msra.mxu1 %v5743_v54 }
 0x1b6   :  { %5433 = vmatprep.subr.bf16.mxu1 %v5744_v55 }
 0x1b9   :  { %5434 = vmatpush3.bf16.msra.mxu1 %v5745_v56 }
 0x1ba   :  { %5435 = vmatprep.subr.bf16.mxu1 %v5746_v57  ;;  %v6426_v57 = vmov 2  }
 0x1bb   :  { %5564 = vset.pattern.permute.xlu1 %v6426_v57 }
 0x1bd   :  { %5436 = vmatpush3.bf16.msra.mxu1 %v5747_v58  ;;  %v6427_v58 = vmov 1  }
 0x1be   :  { %5563 = vset.pattern.permute.xlu0 %v6427_v58 }
 0x1c0   :  { %1363 = vmatmul.mubr.bf16.vlgmr.msra.gmra.mrb[8].mxu1 %v897_v48 }
 0x1d5   :  { %v873_v63 = vpop.f32.mrb[4].mxu0 }
 0x1d6   :  { %v874_v0 = vadd.f32 %v873_v63, %v252_v61  ;;  %v875_v1 = vpop.f32.mrb[5].mxu0  ;;  %v1502_v63 = vld [vmem:[#allocation11 + $0x8] sm:$0xff] }
 0x1d7   :  { %v876_v2 = vadd.f32 %v875_v1, %v256_v62  ;;  %v877_v3 = vpop.f32.mrb[6].mxu0 }
 0x1d8   :  { %v878_v4 = vadd.f32 %v877_v3, %v252_v61  ;;  %v879_v10 = vpop.f32.mrb[7].mxu0  ;;  %v886_v12 = vmax.f32 %v874_v0, 0.0  ;;  %v1501_v61 = vld [vmem:[#allocation11] sm:$0xff] }
 0x1d9   :  { %v880_v11 = vadd.f32 %v879_v10, %v256_v62  ;;  %v887_v14 = vmax.f32 %v876_v2, 0.0  ;;  %v1505_v62 = vld [vmem:[#allocation11 + $0x20] sm:$0xff]  ;;  %v1506_v2 = vld [vmem:[#allocation11 + $0x28] sm:$0xff] }
 0x1da   :  { %v892_v13 = vmax.f32 %v878_v4, 0.0  ;;  %v4975_v0 = vcombine.low %v1501_v61, %v1505_v62  ;;  %v4976_v1 = vcombine.high %v1501_v61, %v1505_v62  ;;  %v1509_v3 = vld [vmem:[#allocation11 + $0x40] sm:$0xff]  ;;  %v4977_v10 = vcombine.low %v1502_v63, %v1506_v2 }
 0x1db   :  { %v893_v15 = vmax.f32 %v880_v11, 0.0  ;;  %v1513_v4 = vld [vmem:[#allocation11 + $0x60] sm:$0xff]  ;;  %v4978_v11 = vcombine.high %v1502_v63, %v1506_v2 }
 0x1dc   :  { %v899_v16 = vpack.c.bf16 %v892_v13, %v886_v12  ;;  %v4984_v12 = vcombine.high %v1509_v3, %v1513_v4  ;;  %v1510_v13 = vld [vmem:[#allocation11 + $0x48] sm:$0xff]  ;;  %2311 = vmatprep.subr.bf16.mxu1 %v4976_v1  ;;  %v1557_v1 = vld [vmem:[#allocation11 + $0x1c0] sm:$0xff] }
 0x1dd   :  { %v900_v17 = vpack.c.bf16 %v893_v15, %v887_v14  ;;  %v1514_v14 = vld [vmem:[#allocation11 + $0x68] sm:$0xff]  ;;  %v1517_v15 = vld [vmem:[#allocation11 + $0x80] sm:$0xff]  ;;  %2354 = vmatprep.subr.bf16.mxu0 %v4978_v11  ;;  %2312 = vmatpush1.bf16.msra.mxu1 %v4975_v0 }
 0x1de   :  { %2313 = vmatprep.subr.bf16.mxu1 %v4984_v12  ;;  %v1561_v2 = vld [vmem:[#allocation11 + $0x1e0] sm:$0xff] }
 0x1df   :  { %1403 = vmatprep.mubr.bf16.mxu0 %v900_v17  ;;  %v1521_v17 = vld [vmem:[#allocation11 + $0xa0] sm:$0xff]  ;;  %v5032_v12 = vcombine.high %v1557_v1, %v1561_v2 }
 0x1e0   :  { %1404 = vmatmul.mubr.bf16.vlgmr.msra.gmra.mrb[8].mxu0 %v899_v16  ;;  %v4986_v16 = vcombine.high %v1510_v13, %v1514_v14 }
 0x1e1   :  { %2355 = vmatpush1.bf16.msra.mxu0 %v4977_v10 }
 0x1e2   :  { %2356 = vmatprep.subr.bf16.mxu0 %v4986_v16  ;;  %v1566_v16 = vld [vmem:[#allocation11 + $0x208] sm:$0xff] }
 0x273   :  { %v5415_v18 = vpop.f32.mrb[4].mxu1 }
 0x274   :  { %v5416_v19 = vpop.f32.mrb[5].mxu1 }
 0x275   :  { %v5417_v20 = vadd.f32 %v5416_v19, %v5415_v18  ;;  %v5418_v8 = vpop.f32.mrb[6].mxu1  ;;  %v1518_v18 = vld [vmem:[#allocation11 + $0x88] sm:$0xff] }
 0x276   :  { %v5419_v22 = vpop.f32.mrb[7].mxu1  ;;  %v1522_v19 = vld [vmem:[#allocation11 + $0xa8] sm:$0xff] }
 0x277   :  { %v5420_v24 = vadd.f32 %v5419_v22, %v5418_v8  ;;  %v1324_v29 = vadd.f32 %v5417_v20, %v1000_v26  ;;  %v4983_v20 = vcombine.low %v1509_v3, %v1513_v4  ;;  %v4985_v8 = vcombine.low %v1510_v13, %v1514_v14  ;;  %v1558_v3 = vld [vmem:[#allocation11 + $0x1c8] sm:$0xff]  ;;  %v1565_v14 = vld [vmem:[#allocation11 + $0x200] sm:$0xff] }
 0x278   :  { %v4992_v22 = vcombine.high %v1517_v15, %v1521_v17  ;;  %v1562_v4 = vld [vmem:[#allocation11 + $0x1e8] sm:$0xff] }
 0x279   :  { %v1327_v33 = vadd.f32 %v5420_v24, %v1000_v26  ;;  %v4994_v24 = vcombine.high %v1518_v18, %v1522_v19  ;;  %v1529_v26 = vld [vmem:[#allocation11 + $0xe0] sm:$0xff]  ;;  %2314 = vmatpush1.bf16.msra.mxu1 %v4983_v20  ;;  %2357 = vmatpush1.bf16.msra.mxu0 %v4985_v8  ;;  %v5034_v13 = vcombine.high %v1558_v3, %v1562_v4 }
 0x27a   :  { %2315 = vmatprep.subr.bf16.mxu1 %v4992_v22  ;;  %v1573_v22 = vld [vmem:[#allocation11 + $0x240] sm:$0xff] }
 0x27b   :  { %2358 = vmatprep.subr.bf16.mxu0 %v4994_v24  ;;  %v1577_v24 = vld [vmem:[#allocation11 + $0x260] sm:$0xff] }
 0x293   :  { %v5437_v27 = vpop.f32.mrb[8].mxu1 }
 0x294   :  { %v5438_v28 = vpop.f32.mrb[9].mxu1 }
 0x295   :  { %v5439_v30 = vadd.f32 %v5438_v28, %v5437_v27  ;;  %v5440_v31 = vpop.f32.mrb[10].mxu1  ;;  %v1526_v27 = vld [vmem:[#allocation11 + $0xc8] sm:$0xff] }
 0x296   :  { %v5441_v32 = vpop.f32.mrb[11].mxu1  ;;  %v1530_v28 = vld [vmem:[#allocation11 + $0xe8] sm:$0xff] }
 0x297   :  { %v1365_v34 = vadd.f32 %v5439_v30, %v1324_v29  ;;  %v5442_v35 = vadd.f32 %v5441_v32, %v5440_v31  ;;  %v4991_v29 = vcombine.low %v1517_v15, %v1521_v17  ;;  %v4993_v30 = vcombine.low %v1518_v18, %v1522_v19  ;;  %v1569_v15 = vld [vmem:[#allocation11 + $0x220] sm:$0xff]  ;;  %v1570_v17 = vld [vmem:[#allocation11 + $0x228] sm:$0xff] }
 0x298   :  { %v5000_v31 = vcombine.high %v1525_v25, %v1529_v26  ;;  %v5002_v32 = vcombine.high %v1526_v27, %v1530_v28  ;;  %v5031_v18 = vcombine.low %v1557_v1, %v1561_v2  ;;  %v5033_v19 = vcombine.low %v1558_v3, %v1562_v4  ;;  %v1602_v3 = vld [vmem:[#allocation11 + $0x328] sm:$0xff] }
 0x299   :  { %v1368_v36 = vadd.f32 %v5442_v35, %v1327_v33  ;;  %v1533_v33 = vld [vmem:[#allocation11 + $0x100] sm:$0xff]  ;;  %v1534_v35 = vld [vmem:[#allocation11 + $0x108] sm:$0xff]  ;;  %2316 = vmatpush1.bf16.msra.mxu1 %v4991_v29  ;;  %2359 = vmatpush1.bf16.msra.mxu0 %v4993_v30  ;;  %v5040_v20 = vcombine.high %v1565_v14, %v1569_v15  ;;  %v5042_v8 = vcombine.high %v1566_v16, %v1570_v17 }
 0x29a   :  { %2317 = vmatprep.subr.bf16.mxu1 %v5000_v31  ;;  %2360 = vmatprep.subr.bf16.mxu0 %v5002_v32  ;;  %v5048_v29 = vcombine.high %v1573_v22, %v1577_v24  ;;  %v5047_v31 = vcombine.low %v1573_v22, %v1577_v24  ;;  %v1618_v22 = vld [vmem:[#allocation11 + $0x3a8] sm:$0xff] }
 0x2b3   :  { %v5459_v38 = vpop.f32.mrb[8].mxu0 }
 0x2b4   :  { %v5460_v39 = vpop.f32.mrb[9].mxu0 }
 0x2b5   :  { %v5461_v40 = vadd.f32 %v5460_v39, %v5459_v38  ;;  %v5462_v41 = vpop.f32.mrb[10].mxu0  ;;  %v4999_v38 = vcombine.low %v1525_v25, %v1529_v26  ;;  %v5001_v39 = vcombine.low %v1526_v27, %v1530_v28  ;;  %v1574_v25 = vld [vmem:[#allocation11 + $0x248] sm:$0xff]  ;;  %v5039_v27 = vcombine.low %v1565_v14, %v1569_v15 }
 0x2b6   :  { %v5463_v42 = vpop.f32.mrb[11].mxu0  ;;  %v1578_v26 = vld [vmem:[#allocation11 + $0x268] sm:$0xff]  ;;  %v5041_v28 = vcombine.low %v1566_v16, %v1570_v17 }
 0x2b7   :  { %v6638_v43 = vadd.f32 %v5461_v40, %v1365_v34  ;;  %v5464_v44 = vadd.f32 %v5463_v42, %v5462_v41  ;;  %v1537_v34 = vld [vmem:[#allocation11 + $0x120] sm:$0xff]  ;;  %2318 = vmatpush1.bf16.msra.mxu1 %v4999_v38  ;;  %2361 = vmatpush1.bf16.msra.mxu0 %v5001_v39  ;;  %v5050_v30 = vcombine.high %v1574_v25, %v1578_v26  ;;  %v1606_v14 = vld [vmem:[#allocation11 + $0x348] sm:$0xff] }
 0x2b8   :  { %v5008_v40 = vcombine.high %v1533_v33, %v1537_v34  ;;  %v1541_v42 = vld [vmem:[#allocation11 + $0x140] sm:$0xff]  ;;  %v5049_v32 = vcombine.low %v1574_v25, %v1578_v26  ;;  %v1610_v16 = vld [vmem:[#allocation11 + $0x368] sm:$0xff] }
 0x2b9   :  { %v6640_v45 = vadd.f32 %v5464_v44, %v1368_v36  ;;  %v1415_v46 = vsel %vm1414_vm0, %v6638_v43, -1e+30  ;;  %v1538_v36 = vld [vmem:[#allocation11 + $0x128] sm:$0xff]  ;;  %v1545_v44 = vld [vmem:[#allocation11 + $0x160] sm:$0xff] }
 0x2ba   :  { %1417 = vmax.xlane.f32.xlu0 %v1415_v46  ;;  %v5010_v41 = vcombine.high %v1534_v35, %v1538_v36  ;;  %v1542_v46 = vld [vmem:[#allocation11 + $0x148] sm:$0xff]  ;;  %2319 = vmatprep.subr.bf16.mxu1 %v5008_v40  ;;  %v5015_v61 = vcombine.low %v1541_v42, %v1545_v44  ;;  %v1581_v38 = vld [vmem:[#allocation11 + $0x280] sm:$0xff] }
 0x2bb   :  { %v1416_v5 = vsel %vm1414_vm0, %v6640_v45, -1e+30  ;;  %v1585_v39 = vld [vmem:[#allocation11 + $0x2a0] sm:$0xff]  ;;  %v1582_v40 = vld [vmem:[#allocation11 + $0x288] sm:$0xff] }
 0x2bc   :  { %2362 = vmatprep.subr.bf16.mxu0 %v5010_v41  ;;  %v5056_v41 = vcombine.high %v1581_v38, %v1585_v39 }
 0x2be   :  { %1419 = vmax.xlane.f32.xlu0 %v1416_v5  ;;  %v1546_v5 = vld [vmem:[#allocation11 + $0x168] sm:$0xff] }
 0x2bf   :  { %v5017_v62 = vcombine.low %v1542_v46, %v1546_v5 }
 0x347   :  { %v1418_v47 = vpop.xlane.xlu0 %1417 }
 0x348   :  { %v1421_v48 = vsub.f32 %v6638_v43, %v1418_v47  ;;  %v5007_v47 = vcombine.low %v1533_v33, %v1537_v34 }
 0x34a   :  { %v1423_v49 = vmul.f32 1.442695, %v1421_v48  ;;  %v5009_v48 = vcombine.low %v1534_v35, %v1538_v36  ;;  %2320 = vmatpush1.bf16.msra.mxu1 %v5007_v47  ;;  %v1589_v47 = vld [vmem:[#allocation11 + $0x2c0] sm:$0xff] }
 0x34b   :  { %v1420_v50 = vpop.xlane.xlu0 %1419 }
 0x34c   :  { %6180 = vpow2.f32 %v1423_v49  ;;  %v1422_v51 = vsub.f32 %v6640_v45, %v1420_v50  ;;  %v5016_v49 = vcombine.high %v1541_v42, %v1545_v44  ;;  %v5018_v50 = vcombine.high %v1542_v46, %v1546_v5  ;;  %2363 = vmatpush1.bf16.msra.mxu0 %v5009_v48  ;;  %v1586_v42 = vld [vmem:[#allocation11 + $0x2a8] sm:$0xff]  ;;  %v1593_v48 = vld [vmem:[#allocation11 + $0x2e0] sm:$0xff] }
 0x34d   :  { %v5055_v44 = vcombine.low %v1581_v38, %v1585_v39  ;;  %v5057_v46 = vcombine.low %v1582_v40, %v1586_v42  ;;  %v5058_v5 = vcombine.high %v1582_v40, %v1586_v42  ;;  %v1504_v38 = vld [vmem:[#allocation11 + $0x18] sm:$0xff] }
 0x34e   :  { %v1425_v52 = vmul.f32 1.442695, %v1422_v51  ;;  %v1549_v51 = vld [vmem:[#allocation11 + $0x180] sm:$0xff]  ;;  %2321 = vmatprep.subr.bf16.mxu1 %v5016_v49  ;;  %2364 = vmatprep.subr.bf16.mxu0 %v5018_v50  ;;  %v1590_v49 = vld [vmem:[#allocation11 + $0x2c8] sm:$0xff]  ;;  %v5064_v50 = vcombine.high %v1589_v47, %v1593_v48 }
 0x34f   :  { %2322 = vmatpush1.bf16.msra.mxu1 %v5015_v61 }
 0x350   :  { %6182 = vpow2.f32 %v1425_v52  ;;  %v1553_v52 = vld [vmem:[#allocation11 + $0x1a0] sm:$0xff]  ;;  %2365 = vmatpush1.bf16.msra.mxu0 %v5017_v62 }
 0x351   :  { %v5024_v63 = vcombine.high %v1549_v51, %v1553_v52  ;;  %v5023_v10 = vcombine.low %v1549_v51, %v1553_v52  ;;  %v1594_v51 = vld [vmem:[#allocation11 + $0x2e8] sm:$0xff]  ;;  %v1597_v62 = vld [vmem:[#allocation11 + $0x300] sm:$0xff] }
 0x352   :  { %v5065_v52 = vcombine.low %v1590_v49, %v1594_v51 }
 0x353   :  { %2323 = vmatprep.subr.bf16.mxu1 %v5024_v63  ;;  %v1601_v63 = vld [vmem:[#allocation11 + $0x320] sm:$0xff] }
 0x354   :  { %2324 = vmatpush1.bf16.msra.mxu1 %v5023_v10  ;;  %v5071_v1 = vcombine.low %v1597_v62, %v1601_v63  ;;  %v5072_v2 = vcombine.high %v1597_v62, %v1601_v63 }
 0x355   :  { %2325 = vmatprep.subr.bf16.mxu1 %v5032_v12  ;;  %v1605_v12 = vld [vmem:[#allocation11 + $0x340] sm:$0xff] }
 0x356   :  { %v6181_v53 = vpop.eup %6180 }
 0x357   :  { %v6652_v54 = vsel %vm1414_vm0, %v6181_v53, 0.0  ;;  %v1550_v53 = vld [vmem:[#allocation11 + $0x188] sm:$0xff] }
 0x358   :  { %1429 = vadd.xlane.f32.xlu1 %v6652_v54  ;;  %2326 = vmatpush1.bf16.msra.mxu1 %v5031_v18  ;;  %v5082_v18 = vcombine.high %v1606_v14, %v1610_v16 }
 0x359   :  { %2327 = vmatprep.subr.bf16.mxu1 %v5040_v20  ;;  %v1614_v20 = vld [vmem:[#allocation11 + $0x388] sm:$0xff] }
 0x35a   :  { %v6183_v55 = vpop.eup %6182  ;;  %v5089_v25 = vcombine.low %v1614_v20, %v1618_v22  ;;  %v5090_v26 = vcombine.high %v1614_v20, %v1618_v22  ;;  %v1523_v20 = vld [vmem:[#allocation11 + $0xb0] sm:$0xff]  ;;  %v1524_v22 = vld [vmem:[#allocation11 + $0xb8] sm:$0xff] }
 0x35b   :  { %v6657_v56 = vsel %vm1414_vm0, %v6183_v55, 0.0  ;;  %v1554_v55 = vld [vmem:[#allocation11 + $0x1a8] sm:$0xff] }
 0x35c   :  { %1431 = vadd.xlane.f32.xlu1 %v6657_v56  ;;  %v5026_v0 = vcombine.high %v1550_v53, %v1554_v55  ;;  %v5025_v11 = vcombine.low %v1550_v53, %v1554_v55  ;;  %2328 = vmatpush1.bf16.msra.mxu1 %v5039_v27  ;;  %v5066_v53 = vcombine.high %v1590_v49, %v1594_v51  ;;  %v6428_v55 = vmov 0   ;;  %v1621_v27 = vld [vmem:[#allocation11 + $0x3c0] sm:$0xff]  ;;  %v6197_v51 = vld [vmem:[#allocation2 + $0x8] sm:$0xff] }
 0x35d   :  { %2329 = vmatprep.subr.bf16.mxu1 %v5048_v29  ;;  %v1622_v29 = vld [vmem:[#allocation11 + $0x3c8] sm:$0xff] }
 0x35e   :  { %2366 = vmatprep.subr.bf16.mxu0 %v5026_v0  ;;  %v1598_v0 = vld [vmem:[#allocation11 + $0x308] sm:$0xff] }
 0x35f   :  { %2367 = vmatpush1.bf16.msra.mxu0 %v5025_v11  ;;  %v5073_v10 = vcombine.low %v1598_v0, %v1602_v3  ;;  %v5074_v11 = vcombine.high %v1598_v0, %v1602_v3 }
 0x360   :  { %2368 = vmatprep.subr.bf16.mxu0 %v5034_v13  ;;  %2330 = vmatpush1.bf16.msra.mxu1 %v5047_v31  ;;  %v1609_v13 = vld [vmem:[#allocation11 + $0x360] sm:$0xff] }
 0x361   :  { %2331 = vmatprep.subr.bf16.mxu1 %v5056_v41  ;;  %v5080_v15 = vcombine.high %v1605_v12, %v1609_v13  ;;  %v5079_v17 = vcombine.low %v1605_v12, %v1609_v13  ;;  %v1508_v41 = vld [vmem:[#allocation11 + $0x38] sm:$0xff]  ;;  %v1511_v12 = vld [vmem:[#allocation11 + $0x50] sm:$0xff] }
 0x362   :  { %v4981_v42 = vcombine.low %v1504_v38, %v1508_v41 }
 0x363   :  { %2369 = vmatpush1.bf16.msra.mxu0 %v5033_v19  ;;  %v1613_v19 = vld [vmem:[#allocation11 + $0x380] sm:$0xff] }
 0x364   :  { %2370 = vmatprep.subr.bf16.mxu0 %v5042_v8  ;;  %2332 = vmatpush1.bf16.msra.mxu1 %v5055_v44  ;;  %v4982_v44 = vcombine.high %v1504_v38, %v1508_v41  ;;  %v1539_v38 = vld [vmem:[#allocation11 + $0x130] sm:$0xff] }
 0x365   :  { %2333 = vmatprep.subr.bf16.mxu1 %v5064_v50 }
 0x367   :  { %2371 = vmatpush1.bf16.msra.mxu0 %v5041_v28  ;;  %v1625_v28 = vld [vmem:[#allocation11 + $0x3e0] sm:$0xff] }
 0x368   :  { %2372 = vmatprep.subr.bf16.mxu0 %v5050_v30  ;;  %v1626_v30 = vld [vmem:[#allocation11 + $0x3e8] sm:$0xff]  ;;  %v5095_v31 = vcombine.low %v1621_v27, %v1625_v28 }
 0x36b   :  { %2373 = vmatpush1.bf16.msra.mxu0 %v5049_v32  ;;  %v5097_v32 = vcombine.low %v1622_v29, %v1626_v30 }
 0x36c   :  { %2374 = vmatprep.subr.bf16.mxu0 %v5058_v5 }
 0x36f   :  { %2375 = vmatpush1.bf16.msra.mxu0 %v5057_v46 }
 0x370   :  { %2376 = vmatprep.subr.bf16.mxu0 %v5066_v53 }
 0x373   :  { %2377 = vmatpush1.bf16.msra.mxu0 %v5065_v52  ;;  %v1494_v52 = vunpack.c.h.bf16 %v6197_v51 }
 0x374   :  { %2378 = vmatprep.subr.bf16.mxu0 %v5074_v11 }
 0x377   :  { %2379 = vmatpush1.bf16.msra.mxu0 %v5073_v10 }
 0x378   :  { %2380 = vmatprep.subr.bf16.mxu0 %v5082_v18 }
 0x3e5   :  { %v1430_v33 = vpop.xlane.xlu1 %1429 }
 0x3e6   :  { %6184 = vrcp.f32 %v1430_v33  ;;  %v5098_v33 = vcombine.high %v1622_v29, %v1626_v30  ;;  %v1531_v29 = vld [vmem:[#allocation11 + $0xf0] sm:$0xff]  ;;  %v1532_v30 = vld [vmem:[#allocation11 + $0xf8] sm:$0xff] }
 0x3e9   :  { %v1432_v34 = vpop.xlane.xlu1 %1431 }
 0x3ea   :  { %6186 = vrcp.f32 %v1432_v34  ;;  %v1503_v34 = vld [vmem:[#allocation11 + $0x10] sm:$0xff] }
 0x3f0   :  { %v6185_v35 = vpop.eup %6184 }
 0x3f1   :  { %v6663_v36 = vmul.f32 %v6185_v35, %v6652_v54  ;;  %v5063_v54 = vcombine.low %v1589_v47, %v1593_v48  ;;  %v1507_v35 = vld [vmem:[#allocation11 + $0x30] sm:$0xff]  ;;  %v1452_v47 = vadd.s32 128, %v6635_v37 }
 0x3f2   :  { %v4979_v39 = vcombine.low %v1503_v34, %v1507_v35  ;;  %v4980_v40 = vcombine.high %v1503_v34, %v1507_v35  ;;  %v1535_v35 = vld [vmem:[#allocation11 + $0x110] sm:$0xff] }
 0x3f3   :  { %1466 = vperm.xlu0 %5563, %v6663_v36   ;;  %1480 = vperm.xlu1 %5564, %v6663_v36   ;;  %vm1478_vm1 = vcmp.ge.s32.totalorder %v1452_v47, 192  ;;  %v1547_v47 = vld [vmem:[#allocation11 + $0x170] sm:$0xff] }
 0x3f4   :  { %v6187_v61 = vpop.eup %6186  ;;  %2334 = vmatpush1.bf16.msra.mxu1 %v5063_v54  ;;  %v6196_v54 = vld [vmem:[#allocation2] sm:$0xff] }
 0x3f5   :  { %v6670_v4 = vmul.f32 %v6187_v61, %v6657_v56  ;;  %2335 = vmatprep.subr.bf16.mxu1 %v5072_v2  ;;  %v5081_v56 = vcombine.low %v1606_v14, %v1610_v16  ;;  %v1492_v50 = vunpack.c.h.bf16 %v6196_v54  ;;  %v1491_v0 = vunpack.c.l.bf16 %v6196_v54  ;;  %v1512_v16 = vld [vmem:[#allocation11 + $0x58] sm:$0xff] }
 0x3f6   :  { %v5011_v54 = vcombine.low %v1535_v35, %v1539_v38 }
 0x3f7   :  { %5565 = vset.pattern.permute.xlu1 %v6428_v55  ;;  %5569 = vset.pattern.permute.xlu0 %v6426_v57 }
 0x3f8   :  { %1455 = vperm.xlu1 %5565, %v6663_v36   ;;  %2336 = vmatpush1.bf16.msra.mxu1 %v5071_v1  ;;  %v1493_v1 = vunpack.c.l.bf16 %v6197_v51 }
 0x3f9   :  { %2337 = vmatprep.subr.bf16.mxu1 %v5080_v15  ;;  %2381 = vmatpush1.bf16.msra.mxu0 %v5081_v56  ;;  %v1515_v15 = vld [vmem:[#allocation11 + $0x70] sm:$0xff] }
 0x3fa   :  { %2382 = vmatprep.subr.bf16.mxu0 %v5090_v26  ;;  %v1519_v56 = vld [vmem:[#allocation11 + $0x90] sm:$0xff] }
 0x3fb   :  { %v4996_v26 = vcombine.high %v1519_v56, %v1523_v20 }
 0x3fc   :  { %5566 = vset.pattern.permute.xlu1 %v6427_v58  ;;  %v1617_v58 = vld [vmem:[#allocation11 + $0x3a0] sm:$0xff]  ;;  %2338 = vmatpush1.bf16.msra.mxu1 %v5079_v17  ;;  %v1516_v17 = vld [vmem:[#allocation11 + $0x78] sm:$0xff] }
 0x3fd   :  { %1470 = vperm.xlu1 %5566, %v6670_v4   ;;  %v5088_v8 = vcombine.high %v1613_v19, %v1617_v58  ;;  %v5087_v24 = vcombine.low %v1613_v19, %v1617_v58  ;;  %2383 = vmatpush1.bf16.msra.mxu0 %v5089_v25  ;;  %v4988_v19 = vcombine.high %v1511_v12, %v1515_v15 }
 0x3fe   :  { %2384 = vmatprep.subr.bf16.mxu0 %v5098_v33  ;;  %v4990_v58 = vcombine.high %v1512_v16, %v1516_v17  ;;  %v4989_v25 = vcombine.low %v1512_v16, %v1516_v17  ;;  %v1567_v17 = vld [vmem:[#allocation11 + $0x210] sm:$0xff] }
 0x3ff   :  { %2339 = vmatprep.subr.bf16.mxu1 %v5088_v8  ;;  %v1520_v8 = vld [vmem:[#allocation11 + $0x98] sm:$0xff] }
 0x400   :  { %2340 = vmatpush1.bf16.msra.mxu1 %v5087_v24  ;;  %v4987_v24 = vcombine.low %v1511_v12, %v1515_v15  ;;  %v1564_v12 = vld [vmem:[#allocation11 + $0x1f8] sm:$0xff] }
 0x401   :  { %5567 = vset.pattern.permute.xlu1 %v6426_v57  ;;  %v5096_v57 = vcombine.high %v1621_v27, %v1625_v28  ;;  %2385 = vmatpush1.bf16.msra.mxu0 %v5097_v32  ;;  %v4998_v27 = vcombine.high %v1520_v8, %v1524_v22  ;;  %v1527_v28 = vld [vmem:[#allocation11 + $0xd0] sm:$0xff]  ;;  %v4997_v32 = vcombine.low %v1520_v8, %v1524_v22 }
 0x402   :  { %1484 = vperm.xlu1 %5567, %v6670_v4   ;;  %2440 = vmatprep.subr.bf16.mxu0 %v4982_v44  ;;  %v5004_v33 = vcombine.high %v1527_v28, %v1531_v29  ;;  %v5003_v41 = vcombine.low %v1527_v28, %v1531_v29  ;;  %v5012_v44 = vcombine.high %v1535_v35, %v1539_v38  ;;  %v1580_v28 = vld [vmem:[#allocation11 + $0x278] sm:$0xff] }
 0x403   :  { %2341 = vmatprep.subr.bf16.mxu1 %v5096_v57  ;;  %v1528_v57 = vld [vmem:[#allocation11 + $0xd8] sm:$0xff] }
 0x404   :  { %2342 = vmatpush1.bf16.msra.mxu1 %v5095_v31  ;;  %v4995_v31 = vcombine.low %v1519_v56, %v1523_v20  ;;  %v5006_v34 = vcombine.high %v1528_v57, %v1532_v30  ;;  %v1571_v56 = vld [vmem:[#allocation11 + $0x230] sm:$0xff]  ;;  %v1588_v35 = vld [vmem:[#allocation11 + $0x2b8] sm:$0xff] }
 0x405   :  { %2397 = vmatprep.subr.bf16.mxu1 %v4980_v40  ;;  %v1540_v40 = vld [vmem:[#allocation11 + $0x138] sm:$0xff]  ;;  %v5044_v22 = vcombine.high %v1567_v17, %v1571_v56  ;;  %v5043_v29 = vcombine.low %v1567_v17, %v1571_v56 }
 0x406   :  { %5568 = vset.pattern.permute.xlu1 %v6428_v55  ;;  %v1620_v17 = vld [vmem:[#allocation11 + $0x3b8] sm:$0xff] }
 0x407   :  { %1460 = vperm.xlu1 %5568, %v6670_v4  }
 0x472   :  { %v1481_v46 = vpop.permute.xlu1 %1480  ;;  %v1467_v49 = vpop.permute.xlu0 %1466 }
 0x473   :  { %v1488_v53 = vsel %vm1478_vm1, %v1481_v46, %v1467_v49 }
 0x474   :  { %v1496_v62 = vmul.f32 %v1492_v50, %v1488_v53  ;;  %v1551_v53 = vld [vmem:[#allocation11 + $0x190] sm:$0xff] }
 0x477   :  { %v1456_v5 = vpop.permute.xlu1 %1455 }
 0x478   :  { %v1473_v2 = vsel %vm1463_vm2, %v1467_v49, %v1456_v5  ;;  %v1543_v5 = vld [vmem:[#allocation11 + $0x150] sm:$0xff]  ;;  %v1548_v49 = vld [vmem:[#allocation11 + $0x178] sm:$0xff] }
 0x479   :  { %v1495_v13 = vmul.f32 %v1491_v0, %v1473_v2  ;;  %v5020_v51 = vcombine.high %v1543_v5, %v1547_v47 }
 0x47c   :  { %v1471_v48 = vpop.permute.xlu1 %1470 }
 0x481   :  { %v1485_v55 = vpop.permute.xlu1 %1484 }
 0x482   :  { %v1490_v61 = vsel %vm1478_vm1, %v1485_v55, %v1471_v48  ;;  %v1555_v55 = vld [vmem:[#allocation11 + $0x1b0] sm:$0xff] }
 0x483   :  { %v1498_v63 = vmul.f32 %v1494_v52, %v1490_v61  ;;  %v1552_v61 = vld [vmem:[#allocation11 + $0x198] sm:$0xff] }
 0x485   :  { %v1500_v3 = vpack.c.bf16 %v1498_v63, %v1496_v62  ;;  %v1556_v62 = vld [vmem:[#allocation11 + $0x1b8] sm:$0xff]  ;;  %v5019_v63 = vcombine.low %v1543_v5, %v1547_v47 }
 0x486   :  { %v1461_v10 = vpop.permute.xlu1 %1460  ;;  %v5030_v2 = vcombine.high %v1552_v61, %v1556_v62  ;;  %v1596_v5 = vld [vmem:[#allocation11 + $0x2f8] sm:$0xff] }
 0x487   :  { %v1475_v11 = vsel %vm1463_vm2, %v1471_v48, %v1461_v10  ;;  %2343 = vmatprep.mubr.bf16.mxu1 %v1500_v3  ;;  %2386 = vmatprep.mubr.bf16.mxu0 %v1500_v3  ;;  %v1544_v48 = vld [vmem:[#allocation11 + $0x158] sm:$0xff]  ;;  %v1563_v10 = vld [vmem:[#allocation11 + $0x1f0] sm:$0xff] }
 0x488   :  { %v1497_v14 = vmul.f32 %v1493_v1, %v1475_v11  ;;  %v5022_v52 = vcombine.high %v1544_v48, %v1548_v49  ;;  %v5021_v0 = vcombine.low %v1544_v48, %v1548_v49  ;;  %v5028_v1 = vcombine.high %v1551_v53, %v1555_v55  ;;  %v1560_v11 = vld [vmem:[#allocation11 + $0x1d8] sm:$0xff] }
 0x489   :  { %v5038_v16 = vcombine.high %v1560_v11, %v1564_v12  ;;  %v5037_v8 = vcombine.low %v1560_v11, %v1564_v12 }
 0x48a   :  { %v6679_v18 = vpack.c.bf16 %v1497_v14, %v1495_v13  ;;  %v5027_v13 = vcombine.low %v1551_v53, %v1555_v55  ;;  %v5029_v14 = vcombine.low %v1552_v61, %v1556_v62  ;;  %v1604_v53 = vld [vmem:[#allocation11 + $0x338] sm:$0xff] }
 0x48c   :  { %2344 = vmatmul.mubr.bf16.vlgmr.msra.gmra.mrb[12].mxu1 %v6679_v18  ;;  %2387 = vmatmul.mubr.bf16.vlgmr.msra.gmra.mrb[12].mxu0 %v6679_v18 }
 0x48d   :  { %2398 = vmatpush1.bf16.msra.mxu1 %v4979_v39  ;;  %2441 = vmatpush1.bf16.msra.mxu0 %v4981_v42  ;;  %v1536_v39 = vld [vmem:[#allocation11 + $0x118] sm:$0xff]  ;;  %v5005_v42 = vcombine.low %v1528_v57, %v1532_v30 }
 0x48e   :  { %2429 = vmatprep.mubr.bf16.mxu1 %v1500_v3  ;;  %2472 = vmatprep.mubr.bf16.mxu0 %v1500_v3  ;;  %v5014_v46 = vcombine.high %v1536_v39, %v1540_v40  ;;  %v5013_v50 = vcombine.low %v1536_v39, %v1540_v40  ;;  %v1559_v3 = vld [vmem:[#allocation11 + $0x1d0] sm:$0xff] }
 0x48f   :  { %2399 = vmatprep.subr.bf16.mxu1 %v4988_v19  ;;  %2442 = vmatprep.subr.bf16.mxu0 %v4990_v58  ;;  %v5036_v15 = vcombine.high %v1559_v3, %v1563_v10  ;;  %v1568_v19 = vld [vmem:[#allocation11 + $0x218] sm:$0xff]  ;;  %v5035_v20 = vcombine.low %v1559_v3, %v1563_v10 }
 0x490   :  { %v1572_v58 = vld [vmem:[#allocation11 + $0x238] sm:$0xff] }
 0x491   :  { %2400 = vmatpush1.bf16.msra.mxu1 %v4987_v24  ;;  %2443 = vmatpush1.bf16.msra.mxu0 %v4989_v25  ;;  %v5046_v24 = vcombine.high %v1568_v19, %v1572_v58  ;;  %v1575_v25 = vld [vmem:[#allocation11 + $0x250] sm:$0xff]  ;;  %v5045_v57 = vcombine.low %v1568_v19, %v1572_v58  ;;  %v1612_v3 = vld [vmem:[#allocation11 + $0x378] sm:$0xff] }
 0x492   :  { %2401 = vmatprep.subr.bf16.mxu1 %v4996_v26  ;;  %2444 = vmatprep.subr.bf16.mxu0 %v4998_v27  ;;  %v1579_v26 = vld [vmem:[#allocation11 + $0x270] sm:$0xff]  ;;  %v1576_v27 = vld [vmem:[#allocation11 + $0x258] sm:$0xff] }
 0x493   :  { %v5052_v30 = vcombine.high %v1575_v25, %v1579_v26  ;;  %v5051_v38 = vcombine.low %v1575_v25, %v1579_v26  ;;  %v5053_v39 = vcombine.low %v1576_v27, %v1580_v28  ;;  %v1628_v25 = vld [vmem:[#allocation11 + $0x3f8] sm:$0xff] }
 0x495   :  { %2402 = vmatpush1.bf16.msra.mxu1 %v4995_v31  ;;  %2445 = vmatpush1.bf16.msra.mxu0 %v4997_v32  ;;  %v5054_v31 = vcombine.high %v1576_v27, %v1580_v28  ;;  %v1583_v32 = vld [vmem:[#allocation11 + $0x290] sm:$0xff] }
 0x496   :  { %2403 = vmatprep.subr.bf16.mxu1 %v5004_v33  ;;  %2446 = vmatprep.subr.bf16.mxu0 %v5006_v34  ;;  %v1587_v33 = vld [vmem:[#allocation11 + $0x2b0] sm:$0xff]  ;;  %v1584_v34 = vld [vmem:[#allocation11 + $0x298] sm:$0xff] }
 0x497   :  { %v5060_v40 = vcombine.high %v1583_v32, %v1587_v33  ;;  %v5059_v47 = vcombine.low %v1583_v32, %v1587_v33  ;;  %v5061_v48 = vcombine.low %v1584_v34, %v1588_v35  ;;  %v5769_v32 = vld [vmem:[#allocation13 + $0xc] ss:$16 sps:$4 sm:$0xff]   ;;  %v5764_v33 = vld [vmem:[#allocation13] ss:$16 sps:$4 sm:$0xff]  }
 0x499   :  { %2404 = vmatpush1.bf16.msra.mxu1 %v5003_v41  ;;  %2447 = vmatpush1.bf16.msra.mxu0 %v5005_v42  ;;  %v5062_v41 = vcombine.high %v1584_v34, %v1588_v35  ;;  %v1591_v42 = vld [vmem:[#allocation11 + $0x2d0] sm:$0xff]  ;;  %v5767_v34 = vld [vmem:[#allocation13 + $0x8] ss:$16 sps:$4 sm:$0xff]  }
 0x49a   :  { %2405 = vmatprep.subr.bf16.mxu1 %v5012_v44  ;;  %2448 = vmatprep.subr.bf16.mxu0 %v5014_v46  ;;  %v1595_v44 = vld [vmem:[#allocation11 + $0x2f0] sm:$0xff]  ;;  %v1592_v46 = vld [vmem:[#allocation11 + $0x2d8] sm:$0xff] }
 0x49b   :  { %v5068_v49 = vcombine.high %v1591_v42, %v1595_v44  ;;  %v5067_v55 = vcombine.low %v1591_v42, %v1595_v44  ;;  %v5069_v61 = vcombine.low %v1592_v46, %v1596_v5  ;;  %v5772_v35 = vld [vmem:[#allocation13 + $0x24] ss:$16 sps:$4 sm:$0xff]   ;;  %v5781_v42 = vld [vmem:[#allocation13 + $0x4c] ss:$16 sps:$4 sm:$0xff]   ;;  %v5776_v44 = vld [vmem:[#allocation13 + $0x40] ss:$16 sps:$4 sm:$0xff]  }
 0x49d   :  { %2406 = vmatpush1.bf16.msra.mxu1 %v5011_v54  ;;  %2449 = vmatpush1.bf16.msra.mxu0 %v5013_v50  ;;  %v5070_v54 = vcombine.high %v1592_v46, %v1596_v5  ;;  %v1599_v50 = vld [vmem:[#allocation11 + $0x310] sm:$0xff]  ;;  %v5779_v46 = vld [vmem:[#allocation13 + $0x48] ss:$16 sps:$4 sm:$0xff]  }
 0x49e   :  { %2407 = vmatprep.subr.bf16.mxu1 %v5020_v51  ;;  %2450 = vmatprep.subr.bf16.mxu0 %v5022_v52  ;;  %v1603_v51 = vld [vmem:[#allocation11 + $0x330] sm:$0xff]  ;;  %v1600_v52 = vld [vmem:[#allocation11 + $0x318] sm:$0xff] }
 0x49f   :  { %v5076_v62 = vcombine.high %v1599_v50, %v1603_v51  ;;  %v5075_v10 = vcombine.low %v1599_v50, %v1603_v51  ;;  %v5077_v11 = vcombine.low %v1600_v52, %v1604_v53  ;;  %v5784_v5 = vld [vmem:[#allocation13 + $0x64] ss:$16 sps:$4 sm:$0xff]   ;;  %v5788_v50 = vld [vmem:[#allocation13 + $0x80] ss:$16 sps:$4 sm:$0xff]   ;;  %v5791_v51 = vld [vmem:[#allocation13 + $0x88] ss:$16 sps:$4 sm:$0xff]  }
 0x4a1   :  { %2408 = vmatpush1.bf16.msra.mxu1 %v5019_v63  ;;  %2451 = vmatpush1.bf16.msra.mxu0 %v5021_v0  ;;  %v5078_v63 = vcombine.high %v1600_v52, %v1604_v53  ;;  %v1607_v0 = vld [vmem:[#allocation11 + $0x350] sm:$0xff]  ;;  %v5799_v53 = vld [vmem:[#allocation13 + $0xac] ss:$16 sps:$4 sm:$0xff]  }
 0x4a2   :  { %2409 = vmatprep.subr.bf16.mxu1 %v5028_v1  ;;  %2452 = vmatprep.subr.bf16.mxu0 %v5030_v2  ;;  %v1611_v1 = vld [vmem:[#allocation11 + $0x370] sm:$0xff]  ;;  %v1608_v2 = vld [vmem:[#allocation11 + $0x358] sm:$0xff] }
 0x4a3   :  { %v5084_v12 = vcombine.high %v1607_v0, %v1611_v1  ;;  %v5083_v56 = vcombine.low %v1607_v0, %v1611_v1  ;;  %v5085_v19 = vcombine.low %v1608_v2, %v1612_v3  ;;  %v5796_v52 = vld [vmem:[#allocation13 + $0xa4] ss:$16 sps:$4 sm:$0xff]   ;;  %v5800_v0 = vld [vmem:[#allocation13 + $0xc0] ss:$16 sps:$4 sm:$0xff]   ;;  %v5803_v1 = vld [vmem:[#allocation13 + $0xc8] ss:$16 sps:$4 sm:$0xff]  }
 0x4a5   :  { %2410 = vmatpush1.bf16.msra.mxu1 %v5027_v13  ;;  %2453 = vmatpush1.bf16.msra.mxu0 %v5029_v14  ;;  %v5086_v13 = vcombine.high %v1608_v2, %v1612_v3  ;;  %v1615_v14 = vld [vmem:[#allocation11 + $0x390] sm:$0xff]  ;;  %v5811_v3 = vld [vmem:[#allocation13 + $0xec] ss:$16 sps:$4 sm:$0xff]  }
 0x4a6   :  { %2411 = vmatprep.subr.bf16.mxu1 %v5036_v15  ;;  %2454 = vmatprep.subr.bf16.mxu0 %v5038_v16  ;;  %v1619_v15 = vld [vmem:[#allocation11 + $0x3b0] sm:$0xff]  ;;  %v1616_v16 = vld [vmem:[#allocation11 + $0x398] sm:$0xff] }
 0x4a7   :  { %v5092_v58 = vcombine.high %v1615_v14, %v1619_v15  ;;  %v5091_v26 = vcombine.low %v1615_v14, %v1619_v15  ;;  %v5093_v27 = vcombine.low %v1616_v16, %v1620_v17  ;;  %v5808_v2 = vld [vmem:[#allocation13 + $0xe4] ss:$16 sps:$4 sm:$0xff]   ;;  %v5812_v14 = vld [vmem:[#allocation13 + $0x100] ss:$16 sps:$4 sm:$0xff]   ;;  %v5815_v15 = vld [vmem:[#allocation13 + $0x108] ss:$16 sps:$4 sm:$0xff]  }
 0x4a9   :  { %2412 = vmatpush1.bf16.msra.mxu1 %v5035_v20  ;;  %2455 = vmatpush1.bf16.msra.mxu0 %v5037_v8  ;;  %v5094_v20 = vcombine.high %v1616_v16, %v1620_v17  ;;  %v1623_v8 = vld [vmem:[#allocation11 + $0x3d0] sm:$0xff]  ;;  %v5823_v17 = vld [vmem:[#allocation13 + $0x12c] ss:$16 sps:$4 sm:$0xff]  }
 0x4aa   :  { %2413 = vmatprep.subr.bf16.mxu1 %v5044_v22  ;;  %2456 = vmatprep.subr.bf16.mxu0 %v5046_v24  ;;  %v1627_v22 = vld [vmem:[#allocation11 + $0x3f0] sm:$0xff]  ;;  %v1624_v24 = vld [vmem:[#allocation11 + $0x3d8] sm:$0xff] }
 0x4ab   :  { %v5100_v28 = vcombine.high %v1623_v8, %v1627_v22  ;;  %v5820_v16 = vld [vmem:[#allocation13 + $0x124] ss:$16 sps:$4 sm:$0xff]  }
 0x4ad   :  { %2414 = vmatpush1.bf16.msra.mxu1 %v5043_v29  ;;  %2457 = vmatpush1.bf16.msra.mxu0 %v5045_v57  ;;  %v5102_v29 = vcombine.high %v1624_v24, %v1628_v25  ;;  %v5099_v57 = vcombine.low %v1623_v8, %v1627_v22  ;;  %v5824_v8 = vld [vmem:[#allocation13 + $0x140] ss:$16 sps:$4 sm:$0xff]   ;;  %v5827_v22 = vld [vmem:[#allocation13 + $0x148] ss:$16 sps:$4 sm:$0xff]  }
 0x4ae   :  { %2415 = vmatprep.subr.bf16.mxu1 %v5052_v30  ;;  %2458 = vmatprep.subr.bf16.mxu0 %v5054_v31  ;;  %v5101_v30 = vcombine.low %v1624_v24, %v1628_v25  ;;  %v5766_v31 = vld [vmem:[#allocation13 + $0x4] ss:$16 sps:$4 sm:$0xff]   ;;  %v5835_v25 = vld [vmem:[#allocation13 + $0x16c] ss:$16 sps:$4 sm:$0xff]  }
 0x4af   :  { %v5832_v24 = vld [vmem:[#allocation13 + $0x164] ss:$16 sps:$4 sm:$0xff]  }
 0x4b1   :  { %2416 = vmatpush1.bf16.msra.mxu1 %v5051_v38  ;;  %2459 = vmatpush1.bf16.msra.mxu0 %v5053_v39  ;;  %v5775_v38 = vld [vmem:[#allocation13 + $0x2c] ss:$16 sps:$4 sm:$0xff]   ;;  %v5770_v39 = vld [vmem:[#allocation13 + $0x20] ss:$16 sps:$4 sm:$0xff]  }
 0x4b2   :  { %2417 = vmatprep.subr.bf16.mxu1 %v5060_v40  ;;  %2460 = vmatprep.subr.bf16.mxu0 %v5062_v41  ;;  %v5773_v40 = vld [vmem:[#allocation13 + $0x28] ss:$16 sps:$4 sm:$0xff]   ;;  %v5778_v41 = vld [vmem:[#allocation13 + $0x44] ss:$16 sps:$4 sm:$0xff]  }
 0x4b5   :  { %2418 = vmatpush1.bf16.msra.mxu1 %v5059_v47  ;;  %2461 = vmatpush1.bf16.msra.mxu0 %v5061_v48  ;;  %v5787_v47 = vld [vmem:[#allocation13 + $0x6c] ss:$16 sps:$4 sm:$0xff]   ;;  %v5782_v48 = vld [vmem:[#allocation13 + $0x60] ss:$16 sps:$4 sm:$0xff]  }
 0x4b6   :  { %2419 = vmatprep.subr.bf16.mxu1 %v5068_v49  ;;  %2462 = vmatprep.subr.bf16.mxu0 %v5070_v54  ;;  %v5790_v49 = vld [vmem:[#allocation13 + $0x84] ss:$16 sps:$4 sm:$0xff]   ;;  %v5793_v54 = vld [vmem:[#allocation13 + $0x8c] ss:$16 sps:$4 sm:$0xff]  }
 0x4b9   :  { %2420 = vmatpush1.bf16.msra.mxu1 %v5067_v55  ;;  %2463 = vmatpush1.bf16.msra.mxu0 %v5069_v61  ;;  %v5794_v55 = vld [vmem:[#allocation13 + $0xa0] ss:$16 sps:$4 sm:$0xff]   ;;  %v5797_v61 = vld [vmem:[#allocation13 + $0xa8] ss:$16 sps:$4 sm:$0xff]  }
 0x4ba   :  { %2421 = vmatprep.subr.bf16.mxu1 %v5076_v62  ;;  %2464 = vmatprep.subr.bf16.mxu0 %v5078_v63  ;;  %v5802_v62 = vld [vmem:[#allocation13 + $0xc4] ss:$16 sps:$4 sm:$0xff]   ;;  %v5805_v63 = vld [vmem:[#allocation13 + $0xcc] ss:$16 sps:$4 sm:$0xff]  }
 0x4bd   :  { %2422 = vmatpush1.bf16.msra.mxu1 %v5075_v10  ;;  %2465 = vmatpush1.bf16.msra.mxu0 %v5077_v11  ;;  %v5806_v10 = vld [vmem:[#allocation13 + $0xe0] ss:$16 sps:$4 sm:$0xff]   ;;  %v5809_v11 = vld [vmem:[#allocation13 + $0xe8] ss:$16 sps:$4 sm:$0xff]  }
 0x4be   :  { %2423 = vmatprep.subr.bf16.mxu1 %v5084_v12  ;;  %2466 = vmatprep.subr.bf16.mxu0 %v5086_v13  ;;  %v5814_v12 = vld [vmem:[#allocation13 + $0x104] ss:$16 sps:$4 sm:$0xff]   ;;  %v5817_v13 = vld [vmem:[#allocation13 + $0x10c] ss:$16 sps:$4 sm:$0xff]  }
 0x4c1   :  { %2424 = vmatpush1.bf16.msra.mxu1 %v5083_v56  ;;  %2467 = vmatpush1.bf16.msra.mxu0 %v5085_v19  ;;  %v5818_v56 = vld [vmem:[#allocation13 + $0x120] ss:$16 sps:$4 sm:$0xff]   ;;  %v5821_v19 = vld [vmem:[#allocation13 + $0x128] ss:$16 sps:$4 sm:$0xff]  }
 0x4c2   :  { %2425 = vmatprep.subr.bf16.mxu1 %v5092_v58  ;;  %2468 = vmatprep.subr.bf16.mxu0 %v5094_v20  ;;  %v5826_v58 = vld [vmem:[#allocation13 + $0x144] ss:$16 sps:$4 sm:$0xff]   ;;  %v5829_v20 = vld [vmem:[#allocation13 + $0x14c] ss:$16 sps:$4 sm:$0xff]  }
 0x4c5   :  { %2426 = vmatpush1.bf16.msra.mxu1 %v5091_v26  ;;  %2469 = vmatpush1.bf16.msra.mxu0 %v5093_v27  ;;  %v5830_v26 = vld [vmem:[#allocation13 + $0x160] ss:$16 sps:$4 sm:$0xff]   ;;  %v5833_v27 = vld [vmem:[#allocation13 + $0x168] ss:$16 sps:$4 sm:$0xff]  }
 0x4c6   :  { %2427 = vmatprep.subr.bf16.mxu1 %v5100_v28  ;;  %2470 = vmatprep.subr.bf16.mxu0 %v5102_v29  ;;  %v5838_v28 = vld [vmem:[#allocation13 + $0x184] ss:$16 sps:$4 sm:$0xff]   ;;  %v5841_v29 = vld [vmem:[#allocation13 + $0x18c] ss:$16 sps:$4 sm:$0xff]  }
 0x4c9   :  { %2428 = vmatpush1.bf16.msra.mxu1 %v5099_v57  ;;  %2471 = vmatpush1.bf16.msra.mxu0 %v5101_v30  ;;  %v5836_v57 = vld [vmem:[#allocation13 + $0x180] ss:$16 sps:$4 sm:$0xff]   ;;  %v5839_v30 = vld [vmem:[#allocation13 + $0x188] ss:$16 sps:$4 sm:$0xff]  }
 0x4ca   :  { %4065 = vmatprep.subr.bf16.mxu1 %v5766_v31  ;;  %4237 = vmatprep.subr.bf16.mxu0 %v5769_v32  ;;  %v5844_v31 = vld [vmem:[#allocation13 + $0x1a4] ss:$16 sps:$4 sm:$0xff]   ;;  %v5847_v32 = vld [vmem:[#allocation13 + $0x1ac] ss:$16 sps:$4 sm:$0xff]  }
 0x4cc   :  { %2430 = vmatmul.mubr.bf16.vlgmr.msra.gmra.mrb[16].mxu1 %v6679_v18  ;;  %2473 = vmatmul.mubr.bf16.vlgmr.msra.gmra.mrb[16].mxu0 %v6679_v18  ;;  %v5785_v18 = vld [vmem:[#allocation13 + $0x68] ss:$16 sps:$4 sm:$0xff]  }
 0x4cd   :  { %4066 = vmatpush1.bf16.msra.mxu1 %v5764_v33  ;;  %4238 = vmatpush1.bf16.msra.mxu0 %v5767_v34  ;;  %v5842_v33 = vld [vmem:[#allocation13 + $0x1a0] ss:$16 sps:$4 sm:$0xff]   ;;  %v5845_v34 = vld [vmem:[#allocation13 + $0x1a8] ss:$16 sps:$4 sm:$0xff]  }
 0x4ce   :  { %4067 = vmatprep.subr.bf16.mxu1 %v5772_v35  ;;  %4239 = vmatprep.subr.bf16.mxu0 %v5775_v38  ;;  %v5850_v35 = vld [vmem:[#allocation13 + $0x1c4] ss:$16 sps:$4 sm:$0xff]   ;;  %v5853_v38 = vld [vmem:[#allocation13 + $0x1cc] ss:$16 sps:$4 sm:$0xff]  }
 0x4d1   :  { %4068 = vmatpush1.bf16.msra.mxu1 %v5770_v39  ;;  %4240 = vmatpush1.bf16.msra.mxu0 %v5773_v40  ;;  %v5848_v39 = vld [vmem:[#allocation13 + $0x1c0] ss:$16 sps:$4 sm:$0xff]   ;;  %v5851_v40 = vld [vmem:[#allocation13 + $0x1c8] ss:$16 sps:$4 sm:$0xff]  }
 0x4d2   :  { %4069 = vmatprep.subr.bf16.mxu1 %v5778_v41  ;;  %4241 = vmatprep.subr.bf16.mxu0 %v5781_v42  ;;  %v5856_v41 = vld [vmem:[#allocation13 + $0x1e4] ss:$16 sps:$4 sm:$0xff]   ;;  %v5859_v42 = vld [vmem:[#allocation13 + $0x1ec] ss:$16 sps:$4 sm:$0xff]  }
 0x4d5   :  { %4070 = vmatpush1.bf16.msra.mxu1 %v5776_v44  ;;  %4242 = vmatpush1.bf16.msra.mxu0 %v5779_v46  ;;  %v5854_v44 = vld [vmem:[#allocation13 + $0x1e0] ss:$16 sps:$4 sm:$0xff]   ;;  %v5857_v46 = vld [vmem:[#allocation13 + $0x1e8] ss:$16 sps:$4 sm:$0xff]  }
 0x4d6   :  { %4071 = vmatprep.subr.bf16.mxu1 %v5784_v5  ;;  %4243 = vmatprep.subr.bf16.mxu0 %v5787_v47  ;;  %v5862_v5 = vld [vmem:[#allocation13 + $0x204] ss:$16 sps:$4 sm:$0xff]   ;;  %v5865_v47 = vld [vmem:[#allocation13 + $0x20c] ss:$16 sps:$4 sm:$0xff]  }
 0x4d9   :  { %4072 = vmatpush1.bf16.msra.mxu1 %v5782_v48  ;;  %4244 = vmatpush1.bf16.msra.mxu0 %v5785_v18  ;;  %v6688_v48 = vld [vmem:[%s6774_s7] sm:$0xff] }
 0x4da   :  { %4073 = vmatprep.subr.bf16.mxu1 %v5790_v49  ;;  %4245 = vmatprep.subr.bf16.mxu0 %v5793_v54  ;;  %v1634_v18 = vrot.slane %v6688_v48, %v6601_v7  ;;  %v1642_v49 = vrot.slane %v6688_v48, %v6616_v21  ;;  %v1638_v54 = vrot.slane %v6688_v48, %v6609_v9 }
 0x4dd   :  { %4074 = vmatpush1.bf16.msra.mxu1 %v5788_v50  ;;  %4246 = vmatpush1.bf16.msra.mxu0 %v5791_v51  ;;  %v1646_v50 = vrot.slane %v6688_v48, %v6619_v23 }
 0x4de   :  { %4075 = vmatprep.subr.bf16.mxu1 %v5796_v52  ;;  %4247 = vmatprep.subr.bf16.mxu0 %v5799_v53 }
 0x4e1   :  { %4076 = vmatpush1.bf16.msra.mxu1 %v5794_v55  ;;  %4248 = vmatpush1.bf16.msra.mxu0 %v5797_v61 }
 0x4e2   :  { %4077 = vmatprep.subr.bf16.mxu1 %v5802_v62  ;;  %4249 = vmatprep.subr.bf16.mxu0 %v5805_v63 }
 0x4e5   :  { %4078 = vmatpush1.bf16.msra.mxu1 %v5800_v0  ;;  %4250 = vmatpush1.bf16.msra.mxu0 %v5803_v1 }
 0x4e6   :  { %4079 = vmatprep.subr.bf16.mxu1 %v5808_v2  ;;  %4251 = vmatprep.subr.bf16.mxu0 %v5811_v3 }
 0x4e9   :  { %4080 = vmatpush1.bf16.msra.mxu1 %v5806_v10  ;;  %4252 = vmatpush1.bf16.msra.mxu0 %v5809_v11 }
 0x4ea   :  { %4081 = vmatprep.subr.bf16.mxu1 %v5814_v12  ;;  %4253 = vmatprep.subr.bf16.mxu0 %v5817_v13 }
 0x4ed   :  { %4082 = vmatpush1.bf16.msra.mxu1 %v5812_v14  ;;  %4254 = vmatpush1.bf16.msra.mxu0 %v5815_v15 }
 0x4ee   :  { %4083 = vmatprep.subr.bf16.mxu1 %v5820_v16  ;;  %4255 = vmatprep.subr.bf16.mxu0 %v5823_v17 }
 0x4f1   :  { %4084 = vmatpush1.bf16.msra.mxu1 %v5818_v56  ;;  %4256 = vmatpush1.bf16.msra.mxu0 %v5821_v19 }
 0x4f2   :  { %4085 = vmatprep.subr.bf16.mxu1 %v5826_v58  ;;  %4257 = vmatprep.subr.bf16.mxu0 %v5829_v20 }
 0x4f5   :  { %4086 = vmatpush1.bf16.msra.mxu1 %v5824_v8  ;;  %4258 = vmatpush1.bf16.msra.mxu0 %v5827_v22 }
 0x4f6   :  { %4087 = vmatprep.subr.bf16.mxu1 %v5832_v24  ;;  %4259 = vmatprep.subr.bf16.mxu0 %v5835_v25 }
 0x4f9   :  { %4088 = vmatpush1.bf16.msra.mxu1 %v5830_v26  ;;  %4260 = vmatpush1.bf16.msra.mxu0 %v5833_v27  ;;  %v5860_v27 = vld [vmem:[#allocation13 + $0x200] ss:$16 sps:$4 sm:$0xff]  }
 0x4fa   :  { %4089 = vmatprep.subr.bf16.mxu1 %v5838_v28  ;;  %4261 = vmatprep.subr.bf16.mxu0 %v5841_v29  ;;  %v5863_v28 = vld [vmem:[#allocation13 + $0x208] ss:$16 sps:$4 sm:$0xff]   ;;  %v5868_v29 = vld [vmem:[#allocation13 + $0x224] ss:$16 sps:$4 sm:$0xff]  }
 0x4fd   :  { %4090 = vmatpush1.bf16.msra.mxu1 %v5836_v57  ;;  %4262 = vmatpush1.bf16.msra.mxu0 %v5839_v30  ;;  %v5871_v57 = vld [vmem:[#allocation13 + $0x22c] ss:$16 sps:$4 sm:$0xff]   ;;  %v5866_v30 = vld [vmem:[#allocation13 + $0x220] ss:$16 sps:$4 sm:$0xff]  }
 0x4fe   :  { %4091 = vmatprep.subr.bf16.mxu1 %v5844_v31  ;;  %4263 = vmatprep.subr.bf16.mxu0 %v5847_v32  ;;  %v5869_v31 = vld [vmem:[#allocation13 + $0x228] ss:$16 sps:$4 sm:$0xff]   ;;  %v5874_v32 = vld [vmem:[#allocation13 + $0x244] ss:$16 sps:$4 sm:$0xff]  }
 0x501   :  { %4092 = vmatpush1.bf16.msra.mxu1 %v5842_v33  ;;  %4264 = vmatpush1.bf16.msra.mxu0 %v5845_v34  ;;  %v5877_v33 = vld [vmem:[#allocation13 + $0x24c] ss:$16 sps:$4 sm:$0xff]   ;;  %v5872_v34 = vld [vmem:[#allocation13 + $0x240] ss:$16 sps:$4 sm:$0xff]  }
 0x502   :  { %4093 = vmatprep.subr.bf16.mxu1 %v5850_v35  ;;  %4265 = vmatprep.subr.bf16.mxu0 %v5853_v38  ;;  %v5875_v35 = vld [vmem:[#allocation13 + $0x248] ss:$16 sps:$4 sm:$0xff]   ;;  %v5880_v38 = vld [vmem:[#allocation13 + $0x264] ss:$16 sps:$4 sm:$0xff]  }
 0x505   :  { %4094 = vmatpush1.bf16.msra.mxu1 %v5848_v39  ;;  %4266 = vmatpush1.bf16.msra.mxu0 %v5851_v40  ;;  %v5883_v39 = vld [vmem:[#allocation13 + $0x26c] ss:$16 sps:$4 sm:$0xff]   ;;  %v5878_v40 = vld [vmem:[#allocation13 + $0x260] ss:$16 sps:$4 sm:$0xff]  }
 0x506   :  { %4095 = vmatprep.subr.bf16.mxu1 %v5856_v41  ;;  %4267 = vmatprep.subr.bf16.mxu0 %v5859_v42  ;;  %v5881_v41 = vld [vmem:[#allocation13 + $0x268] ss:$16 sps:$4 sm:$0xff]   ;;  %v5886_v42 = vld [vmem:[#allocation13 + $0x284] ss:$16 sps:$4 sm:$0xff]  }
 0x509   :  { %4096 = vmatpush1.bf16.msra.mxu1 %v5854_v44  ;;  %4268 = vmatpush1.bf16.msra.mxu0 %v5857_v46  ;;  %v5889_v44 = vld [vmem:[#allocation13 + $0x28c] ss:$16 sps:$4 sm:$0xff]   ;;  %v5884_v46 = vld [vmem:[#allocation13 + $0x280] ss:$16 sps:$4 sm:$0xff]  }
 0x50a   :  { %4108 = vmatprep.subr.bf16.mxu1 %v5862_v5  ;;  %4280 = vmatprep.subr.bf16.mxu0 %v5865_v47  ;;  %v5887_v5 = vld [vmem:[#allocation13 + $0x288] ss:$16 sps:$4 sm:$0xff]   ;;  %v5892_v47 = vld [vmem:[#allocation13 + $0x2a4] ss:$16 sps:$4 sm:$0xff]  }
 0x55f   :  { %v2345_v51 = vpop.f32.mrb[12].mxu1  ;;  %v2388_v52 = vpop.f32.mrb[12].mxu0 }
 0x560   :  { %v2346_v53 = vadd.f32 %v2345_v51, %v1634_v18  ;;  %v2389_v55 = vadd.f32 %v2388_v52, %v1642_v49  ;;  %v2347_v61 = vpop.f32.mrb[13].mxu1  ;;  %v2390_v62 = vpop.f32.mrb[13].mxu0  ;;  %v5901_v51 = vld [vmem:[#allocation13 + $0x2cc] ss:$16 sps:$4 sm:$0xff]   ;;  %v5896_v52 = vld [vmem:[#allocation13 + $0x2c0] ss:$16 sps:$4 sm:$0xff]  }
 0x561   :  { %v2348_v63 = vadd.f32 %v2347_v61, %v1638_v54  ;;  %v2391_v0 = vadd.f32 %v2390_v62, %v1646_v50  ;;  %v2349_v1 = vpop.f32.mrb[14].mxu1  ;;  %v2392_v2 = vpop.f32.mrb[14].mxu0  ;;  %v5907_v61 = vld [vmem:[#allocation13 + $0x2ec] ss:$16 sps:$4 sm:$0xff]   ;;  %v5902_v62 = vld [vmem:[#allocation13 + $0x2e0] ss:$16 sps:$4 sm:$0xff]  }
 0x562   :  { %v2350_v3 = vadd.f32 %v2349_v1, %v1634_v18  ;;  %v2393_v10 = vadd.f32 %v2392_v2, %v1642_v49  ;;  %v2351_v11 = vpop.f32.mrb[15].mxu1  ;;  %v2394_v12 = vpop.f32.mrb[15].mxu0  ;;  %v2483_v15 = vmax.f32 %v2346_v53, 0.0  ;;  %v2485_v16 = vmax.f32 %v2389_v55, 0.0  ;;  %v5895_v18 = vld [vmem:[#allocation13 + $0x2ac] ss:$16 sps:$4 sm:$0xff]  }
 0x563   :  { %v2352_v13 = vadd.f32 %v2351_v11, %v1638_v54  ;;  %v2395_v14 = vadd.f32 %v2394_v12, %v1646_v50  ;;  %v2484_v19 = vmax.f32 %v2348_v63, 0.0  ;;  %v2486_v58 = vmax.f32 %v2391_v0, 0.0  ;;  %v5890_v49 = vld [vmem:[#allocation13 + $0x2a0] ss:$16 sps:$4 sm:$0xff]   ;;  %v5893_v54 = vld [vmem:[#allocation13 + $0x2a8] ss:$16 sps:$4 sm:$0xff]  }
 0x564   :  { %v2491_v17 = vmax.f32 %v2350_v3, 0.0  ;;  %v2493_v56 = vmax.f32 %v2393_v10, 0.0  ;;  %v5898_v50 = vld [vmem:[#allocation13 + $0x2c4] ss:$16 sps:$4 sm:$0xff]   ;;  %v5899_v53 = vld [vmem:[#allocation13 + $0x2c8] ss:$16 sps:$4 sm:$0xff]  }
 0x565   :  { %v2492_v20 = vmax.f32 %v2352_v13, 0.0  ;;  %v2494_v8 = vmax.f32 %v2395_v14, 0.0  ;;  %v5904_v55 = vld [vmem:[#allocation13 + $0x2e4] ss:$16 sps:$4 sm:$0xff]   ;;  %v5905_v63 = vld [vmem:[#allocation13 + $0x2e8] ss:$16 sps:$4 sm:$0xff]  }
 0x566   :  { %v2499_v22 = vpack.c.bf16 %v2491_v17, %v2483_v15  ;;  %v6698_v24 = vpack.c.bf16 %v2493_v56, %v2485_v16  ;;  %v5910_v0 = vld [vmem:[#allocation13 + $0x304] ss:$16 sps:$4 sm:$0xff]   ;;  %v5913_v1 = vld [vmem:[#allocation13 + $0x30c] ss:$16 sps:$4 sm:$0xff]   ;;  %v5908_v2 = vld [vmem:[#allocation13 + $0x300] ss:$16 sps:$4 sm:$0xff]  }
 0x567   :  { %v2500_v25 = vpack.c.bf16 %v2492_v20, %v2484_v19  ;;  %v2502_v26 = vpack.c.bf16 %v2494_v8, %v2486_v58  ;;  %v5911_v3 = vld [vmem:[#allocation13 + $0x308] ss:$16 sps:$4 sm:$0xff]   ;;  %v5916_v10 = vld [vmem:[#allocation13 + $0x324] ss:$16 sps:$4 sm:$0xff]   ;;  %v5919_v11 = vld [vmem:[#allocation13 + $0x32c] ss:$16 sps:$4 sm:$0xff]  }
 0x568   :  { %v5914_v12 = vld [vmem:[#allocation13 + $0x320] ss:$16 sps:$4 sm:$0xff]   ;;  %v5917_v13 = vld [vmem:[#allocation13 + $0x328] ss:$16 sps:$4 sm:$0xff]   ;;  %v5922_v14 = vld [vmem:[#allocation13 + $0x344] ss:$16 sps:$4 sm:$0xff]  }
 0x569   :  { %4097 = vmatprep.mubr.bf16.mxu1 %v2500_v25  ;;  %4269 = vmatprep.mubr.bf16.mxu0 %v2500_v25  ;;  %v5925_v15 = vld [vmem:[#allocation13 + $0x34c] ss:$16 sps:$4 sm:$0xff]   ;;  %v5920_v16 = vld [vmem:[#allocation13 + $0x340] ss:$16 sps:$4 sm:$0xff]   ;;  %v5923_v17 = vld [vmem:[#allocation13 + $0x348] ss:$16 sps:$4 sm:$0xff]  }
 0x56a   :  { %4098 = vmatmul.mubr.bf16.vlgmr.msra.gmra.mrb[20].mxu1 %v2499_v22  ;;  %4270 = vmatmul.mubr.bf16.vlgmr.msra.gmra.mrb[20].mxu0 %v2499_v22  ;;  %v5928_v56 = vld [vmem:[#allocation13 + $0x364] ss:$16 sps:$4 sm:$0xff]   ;;  %v5931_v19 = vld [vmem:[#allocation13 + $0x36c] ss:$16 sps:$4 sm:$0xff]   ;;  %v5926_v58 = vld [vmem:[#allocation13 + $0x360] ss:$16 sps:$4 sm:$0xff]  }
 0x56b   :  { %4109 = vmatpush1.bf16.msra.mxu1 %v5860_v27  ;;  %4281 = vmatpush1.bf16.msra.mxu0 %v5863_v28  ;;  %v5929_v20 = vld [vmem:[#allocation13 + $0x368] ss:$16 sps:$4 sm:$0xff]   ;;  %v5934_v8 = vld [vmem:[#allocation13 + $0x384] ss:$16 sps:$4 sm:$0xff]   ;;  %v5937_v22 = vld [vmem:[#allocation13 + $0x38c] ss:$16 sps:$4 sm:$0xff]  }
 0x56c   :  { %4140 = vmatprep.mubr.bf16.mxu1 %v2502_v26  ;;  %4312 = vmatprep.mubr.bf16.mxu0 %v2502_v26  ;;  %v5932_v25 = vld [vmem:[#allocation13 + $0x380] ss:$16 sps:$4 sm:$0xff]   ;;  %v5935_v26 = vld [vmem:[#allocation13 + $0x388] ss:$16 sps:$4 sm:$0xff]   ;;  %v5940_v27 = vld [vmem:[#allocation13 + $0x3a4] ss:$16 sps:$4 sm:$0xff]  }
 0x56d   :  { %4110 = vmatprep.subr.bf16.mxu1 %v5868_v29  ;;  %4282 = vmatprep.subr.bf16.mxu0 %v5871_v57  ;;  %v5943_v28 = vld [vmem:[#allocation13 + $0x3ac] ss:$16 sps:$4 sm:$0xff]   ;;  %v1657_v29 = vsub.s32 6, %v6598_v6  ;;  %v1661_v57 = vsub.s32 7, %v6598_v6 }
 0x56f   :  { %4111 = vmatpush1.bf16.msra.mxu1 %v5866_v30  ;;  %4283 = vmatpush1.bf16.msra.mxu0 %v5869_v31  ;;  %v5938_v30 = vld [vmem:[#allocation13 + $0x3a0] ss:$16 sps:$4 sm:$0xff]   ;;  %v5941_v31 = vld [vmem:[#allocation13 + $0x3a8] ss:$16 sps:$4 sm:$0xff]  }
 0x570   :  { %4112 = vmatprep.subr.bf16.mxu1 %v5874_v32  ;;  %4284 = vmatprep.subr.bf16.mxu0 %v5877_v33  ;;  %v1650_v32 = vrot.slane %v6688_v48, %v251_v59  ;;  %v1658_v33 = vrot.slane %v6688_v48, %v1657_v29  ;;  %v5968_v29 = vld [vmem:[#allocation13 + $0x440] ss:$16 sps:$4 sm:$0xff]  }
 0x573   :  { %4113 = vmatpush1.bf16.msra.mxu1 %v5872_v34  ;;  %4285 = vmatpush1.bf16.msra.mxu0 %v5875_v35  ;;  %v5946_v34 = vld [vmem:[#allocation13 + $0x3c4] ss:$16 sps:$4 sm:$0xff]   ;;  %v5949_v35 = vld [vmem:[#allocation13 + $0x3cc] ss:$16 sps:$4 sm:$0xff]  }
 0x574   :  { %4114 = vmatprep.subr.bf16.mxu1 %v5880_v38  ;;  %4286 = vmatprep.subr.bf16.mxu0 %v5883_v39  ;;  %v1654_v38 = vrot.slane %v6688_v48, %v255_v60  ;;  %v1662_v39 = vrot.slane %v6688_v48, %v1661_v57  ;;  %v5971_v57 = vld [vmem:[#allocation13 + $0x448] ss:$16 sps:$4 sm:$0xff]  }
 0x577   :  { %4115 = vmatpush1.bf16.msra.mxu1 %v5878_v40  ;;  %4287 = vmatpush1.bf16.msra.mxu0 %v5881_v41 }
 0x578   :  { %4116 = vmatprep.subr.bf16.mxu1 %v5886_v42  ;;  %4288 = vmatprep.subr.bf16.mxu0 %v5889_v44  ;;  %v5944_v42 = vld [vmem:[#allocation13 + $0x3c0] ss:$16 sps:$4 sm:$0xff]   ;;  %v5947_v44 = vld [vmem:[#allocation13 + $0x3c8] ss:$16 sps:$4 sm:$0xff]  }
 0x57b   :  { %4117 = vmatpush1.bf16.msra.mxu1 %v5884_v46  ;;  %4289 = vmatpush1.bf16.msra.mxu0 %v5887_v5 }
 0x57c   :  { %4118 = vmatprep.subr.bf16.mxu1 %v5892_v47  ;;  %4290 = vmatprep.subr.bf16.mxu0 %v5895_v18  ;;  %v5952_v18 = vld [vmem:[#allocation13 + $0x3e4] ss:$16 sps:$4 sm:$0xff]  }
 0x57f   :  { %4119 = vmatpush1.bf16.msra.mxu1 %v5890_v49  ;;  %4291 = vmatpush1.bf16.msra.mxu0 %v5893_v54  ;;  %v5955_v49 = vld [vmem:[#allocation13 + $0x3ec] ss:$16 sps:$4 sm:$0xff]  }
 0x580   :  { %4120 = vmatprep.subr.bf16.mxu1 %v5898_v50  ;;  %4292 = vmatprep.subr.bf16.mxu0 %v5901_v51 }
 0x583   :  { %4121 = vmatpush1.bf16.msra.mxu1 %v5896_v52  ;;  %4293 = vmatpush1.bf16.msra.mxu0 %v5899_v53 }
 0x584   :  { %4122 = vmatprep.subr.bf16.mxu1 %v5904_v55  ;;  %4294 = vmatprep.subr.bf16.mxu0 %v5907_v61 }
 0x587   :  { %4123 = vmatpush1.bf16.msra.mxu1 %v5902_v62  ;;  %4295 = vmatpush1.bf16.msra.mxu0 %v5905_v63  ;;  %v5950_v62 = vld [vmem:[#allocation13 + $0x3e0] ss:$16 sps:$4 sm:$0xff]   ;;  %v5953_v63 = vld [vmem:[#allocation13 + $0x3e8] ss:$16 sps:$4 sm:$0xff]  }
 0x588   :  { %4124 = vmatprep.subr.bf16.mxu1 %v5910_v0  ;;  %4296 = vmatprep.subr.bf16.mxu0 %v5913_v1  ;;  %v5958_v0 = vld [vmem:[#allocation13 + $0x404] ss:$16 sps:$4 sm:$0xff]  }
 0x58b   :  { %4125 = vmatpush1.bf16.msra.mxu1 %v5908_v2  ;;  %4297 = vmatpush1.bf16.msra.mxu0 %v5911_v3 }
 0x58c   :  { %4126 = vmatprep.subr.bf16.mxu1 %v5916_v10  ;;  %4298 = vmatprep.subr.bf16.mxu0 %v5919_v11  ;;  %v5961_v11 = vld [vmem:[#allocation13 + $0x40c] ss:$16 sps:$4 sm:$0xff]  }
 0x58f   :  { %4127 = vmatpush1.bf16.msra.mxu1 %v5914_v12  ;;  %4299 = vmatpush1.bf16.msra.mxu0 %v5917_v13 }
 0x590   :  { %4128 = vmatprep.subr.bf16.mxu1 %v5922_v14  ;;  %4300 = vmatprep.subr.bf16.mxu0 %v5925_v15 }
 0x593   :  { %4129 = vmatpush1.bf16.msra.mxu1 %v5920_v16  ;;  %4301 = vmatpush1.bf16.msra.mxu0 %v5923_v17 }
 0x594   :  { %4130 = vmatprep.subr.bf16.mxu1 %v5928_v56  ;;  %4302 = vmatprep.subr.bf16.mxu0 %v5931_v19 }
 0x597   :  { %4131 = vmatpush1.bf16.msra.mxu1 %v5926_v58  ;;  %4303 = vmatpush1.bf16.msra.mxu0 %v5929_v20  ;;  %v5956_v58 = vld [vmem:[#allocation13 + $0x400] ss:$16 sps:$4 sm:$0xff]   ;;  %v5959_v20 = vld [vmem:[#allocation13 + $0x408] ss:$16 sps:$4 sm:$0xff]  }
 0x598   :  { %4132 = vmatprep.subr.bf16.mxu1 %v5934_v8  ;;  %4304 = vmatprep.subr.bf16.mxu0 %v5937_v22  ;;  %v5964_v8 = vld [vmem:[#allocation13 + $0x424] ss:$16 sps:$4 sm:$0xff]   ;;  %v5967_v22 = vld [vmem:[#allocation13 + $0x42c] ss:$16 sps:$4 sm:$0xff]  }
 0x59b   :  { %4133 = vmatpush1.bf16.msra.mxu1 %v5932_v25  ;;  %4305 = vmatpush1.bf16.msra.mxu0 %v5935_v26  ;;  %v5962_v25 = vld [vmem:[#allocation13 + $0x420] ss:$16 sps:$4 sm:$0xff]   ;;  %v5965_v26 = vld [vmem:[#allocation13 + $0x428] ss:$16 sps:$4 sm:$0xff]  }
 0x59c   :  { %4134 = vmatprep.subr.bf16.mxu1 %v5940_v27  ;;  %4306 = vmatprep.subr.bf16.mxu0 %v5943_v28  ;;  %v5970_v27 = vld [vmem:[#allocation13 + $0x444] ss:$16 sps:$4 sm:$0xff]   ;;  %v5973_v28 = vld [vmem:[#allocation13 + $0x44c] ss:$16 sps:$4 sm:$0xff]  }
 0x59f   :  { %v2431_v40 = vpop.f32.mrb[16].mxu1  ;;  %v2474_v41 = vpop.f32.mrb[16].mxu0  ;;  %4135 = vmatpush1.bf16.msra.mxu1 %v5938_v30  ;;  %4307 = vmatpush1.bf16.msra.mxu0 %v5941_v31  ;;  %v5976_v30 = vld [vmem:[#allocation13 + $0x464] ss:$16 sps:$4 sm:$0xff]   ;;  %v5979_v31 = vld [vmem:[#allocation13 + $0x46c] ss:$16 sps:$4 sm:$0xff]  }
 0x5a0   :  { %v2432_v46 = vadd.f32 %v2431_v40, %v1650_v32  ;;  %v2475_v5 = vadd.f32 %v2474_v41, %v1658_v33  ;;  %v2433_v47 = vpop.f32.mrb[17].mxu1  ;;  %v2476_v59 = vpop.f32.mrb[17].mxu0  ;;  %4136 = vmatprep.subr.bf16.mxu1 %v5946_v34  ;;  %4308 = vmatprep.subr.bf16.mxu0 %v5949_v35  ;;  %v5985_v34 = vld [vmem:[#allocation13 + $0x48c] ss:$16 sps:$4 sm:$0xff]   ;;  %v5980_v35 = vld [vmem:[#allocation13 + $0x480] ss:$16 sps:$4 sm:$0xff]  }
 0x5a1   :  { %v2434_v54 = vadd.f32 %v2433_v47, %v1654_v38  ;;  %v2477_v6 = vadd.f32 %v2476_v59, %v1662_v39  ;;  %v2435_v50 = vpop.f32.mrb[18].mxu1  ;;  %v2478_v60 = vpop.f32.mrb[18].mxu0  ;;  %v5991_v40 = vld [vmem:[#allocation13 + $0x4ac] ss:$16 sps:$4 sm:$0xff]   ;;  %v5986_v41 = vld [vmem:[#allocation13 + $0x4a0] ss:$16 sps:$4 sm:$0xff]  }
 0x5a2   :  { %v2436_v51 = vadd.f32 %v2435_v50, %v1650_v32  ;;  %v2479_v48 = vadd.f32 %v2478_v60, %v1658_v33  ;;  %v2437_v52 = vpop.f32.mrb[19].mxu1  ;;  %v2480_v53 = vpop.f32.mrb[19].mxu0  ;;  %v2487_v1 = vmax.f32 %v2432_v46, 0.0  ;;  %v2489_v2 = vmax.f32 %v2475_v5, 0.0  ;;  %v5977_v32 = vld [vmem:[#allocation13 + $0x468] ss:$16 sps:$4 sm:$0xff]  }
 0x5a3   :  { %v2438_v55 = vadd.f32 %v2437_v52, %v1654_v38  ;;  %v2481_v61 = vadd.f32 %v2480_v53, %v1662_v39  ;;  %4137 = vmatpush1.bf16.msra.mxu1 %v5944_v42  ;;  %4309 = vmatpush1.bf16.msra.mxu0 %v5947_v44  ;;  %v2488_v12 = vmax.f32 %v2434_v54, 0.0  ;;  %v2490_v13 = vmax.f32 %v2477_v6, 0.0  ;;  %v5982_v33 = vld [vmem:[#allocation13 + $0x484] ss:$16 sps:$4 sm:$0xff]   ;;  %v5983_v38 = vld [vmem:[#allocation13 + $0x488] ss:$16 sps:$4 sm:$0xff]  }
 0x5a4   :  { %v2495_v3 = vmax.f32 %v2436_v51, 0.0  ;;  %v2497_v10 = vmax.f32 %v2479_v48, 0.0  ;;  %4138 = vmatprep.subr.bf16.mxu1 %v5952_v18  ;;  %4310 = vmatprep.subr.bf16.mxu0 %v5955_v49  ;;  %v5988_v39 = vld [vmem:[#allocation13 + $0x4a4] ss:$16 sps:$4 sm:$0xff]   ;;  %v5989_v42 = vld [vmem:[#allocation13 + $0x4a8] ss:$16 sps:$4 sm:$0xff]  }
 0x5a5   :  { %v2496_v14 = vmax.f32 %v2438_v55, 0.0  ;;  %v2498_v15 = vmax.f32 %v2481_v61, 0.0  ;;  %v5994_v44 = vld [vmem:[#allocation13 + $0x4c4] ss:$16 sps:$4 sm:$0xff]   ;;  %v5997_v46 = vld [vmem:[#allocation13 + $0x4cc] ss:$16 sps:$4 sm:$0xff]  }
 0x5a6   :  { %v6710_v16 = vpack.c.bf16 %v2495_v3, %v2487_v1  ;;  %v6712_v17 = vpack.c.bf16 %v2497_v10, %v2489_v2  ;;  %v5992_v5 = vld [vmem:[#allocation13 + $0x4c0] ss:$16 sps:$4 sm:$0xff]   ;;  %v5995_v47 = vld [vmem:[#allocation13 + $0x4c8] ss:$16 sps:$4 sm:$0xff]   ;;  %v6000_v59 = vld [vmem:[#allocation13 + $0x4e4] ss:$16 sps:$4 sm:$0xff]  }
 0x5a7   :  { %v2504_v56 = vpack.c.bf16 %v2496_v14, %v2488_v12  ;;  %v6714_v19 = vpack.c.bf16 %v2498_v15, %v2490_v13  ;;  %4139 = vmatpush1.bf16.msra.mxu1 %v5950_v62  ;;  %4311 = vmatpush1.bf16.msra.mxu0 %v5953_v63  ;;  %v6003_v18 = vld [vmem:[#allocation13 + $0x4ec] ss:$16 sps:$4 sm:$0xff]   ;;  %v5998_v49 = vld [vmem:[#allocation13 + $0x4e0] ss:$16 sps:$4 sm:$0xff]   ;;  %v6001_v54 = vld [vmem:[#allocation13 + $0x4e8] ss:$16 sps:$4 sm:$0xff]  }
 0x5a8   :  { %4151 = vmatprep.subr.bf16.mxu1 %v5958_v0  ;;  %4323 = vmatprep.subr.bf16.mxu0 %v5961_v11  ;;  %v6006_v6 = vld [vmem:[#allocation13 + $0x504] ss:$16 sps:$4 sm:$0xff]   ;;  %v6009_v50 = vld [vmem:[#allocation13 + $0x50c] ss:$16 sps:$4 sm:$0xff]   ;;  %v6004_v60 = vld [vmem:[#allocation13 + $0x500] ss:$16 sps:$4 sm:$0xff]  }
 0x5a9   :  { %v6007_v51 = vld [vmem:[#allocation13 + $0x508] ss:$16 sps:$4 sm:$0xff]   ;;  %v6012_v48 = vld [vmem:[#allocation13 + $0x524] ss:$16 sps:$4 sm:$0xff]   ;;  %v6015_v52 = vld [vmem:[#allocation13 + $0x52c] ss:$16 sps:$4 sm:$0xff]  }
 0x5aa   :  { %4141 = vmatmul.mubr.bf16.vlgmr.msra.gmra.mrb[20].mxu1 %v6698_v24  ;;  %4313 = vmatmul.mubr.bf16.vlgmr.msra.gmra.mrb[20].mxu0 %v6698_v24  ;;  %v5974_v24 = vld [vmem:[#allocation13 + $0x460] ss:$16 sps:$4 sm:$0xff]   ;;  %v6013_v55 = vld [vmem:[#allocation13 + $0x528] ss:$16 sps:$4 sm:$0xff]   ;;  %v6018_v61 = vld [vmem:[#allocation13 + $0x544] ss:$16 sps:$4 sm:$0xff]  }
 0x5ab   :  { %4152 = vmatpush1.bf16.msra.mxu1 %v5956_v58  ;;  %4183 = vmatprep.mubr.bf16.mxu1 %v2504_v56  ;;  %v6010_v53 = vld [vmem:[#allocation13 + $0x520] ss:$16 sps:$4 sm:$0xff]   ;;  %v6021_v62 = vld [vmem:[#allocation13 + $0x54c] ss:$16 sps:$4 sm:$0xff]   ;;  %v6019_v0 = vld [vmem:[#allocation13 + $0x548] ss:$16 sps:$4 sm:$0xff]  }
 0x5ac   :  { %4324 = vmatpush1.bf16.msra.mxu0 %v5959_v20  ;;  %4355 = vmatprep.mubr.bf16.mxu0 %v2504_v56  ;;  %v6016_v63 = vld [vmem:[#allocation13 + $0x540] ss:$16 sps:$4 sm:$0xff]   ;;  %v6024_v1 = vld [vmem:[#allocation13 + $0x564] ss:$16 sps:$4 sm:$0xff]   ;;  %v6027_v2 = vld [vmem:[#allocation13 + $0x56c] ss:$16 sps:$4 sm:$0xff]  }
 0x5ad   :  { %4153 = vmatprep.subr.bf16.mxu1 %v5964_v8  ;;  %4325 = vmatprep.subr.bf16.mxu0 %v5967_v22  ;;  %v6022_v3 = vld [vmem:[#allocation13 + $0x560] ss:$16 sps:$4 sm:$0xff]   ;;  %v6025_v10 = vld [vmem:[#allocation13 + $0x568] ss:$16 sps:$4 sm:$0xff]   ;;  %v6030_v11 = vld [vmem:[#allocation13 + $0x584] ss:$16 sps:$4 sm:$0xff]  }
 0x5ae   :  { %v6033_v12 = vld [vmem:[#allocation13 + $0x58c] ss:$16 sps:$4 sm:$0xff]   ;;  %v6028_v13 = vld [vmem:[#allocation13 + $0x580] ss:$16 sps:$4 sm:$0xff]   ;;  %v6031_v14 = vld [vmem:[#allocation13 + $0x588] ss:$16 sps:$4 sm:$0xff]  }
 0x5af   :  { %4154 = vmatpush1.bf16.msra.mxu1 %v5962_v25  ;;  %v6036_v15 = vld [vmem:[#allocation13 + $0x5a4] ss:$16 sps:$4 sm:$0xff]   ;;  %v6039_v56 = vld [vmem:[#allocation13 + $0x5ac] ss:$16 sps:$4 sm:$0xff]   ;;  %v6034_v58 = vld [vmem:[#allocation13 + $0x5a0] ss:$16 sps:$4 sm:$0xff]  }
 0x5b0   :  { %4326 = vmatpush1.bf16.msra.mxu0 %v5965_v26  ;;  %4155 = vmatprep.subr.bf16.mxu1 %v5970_v27  ;;  %v6037_v20 = vld [vmem:[#allocation13 + $0x5a8] ss:$16 sps:$4 sm:$0xff]   ;;  %v6042_v8 = vld [vmem:[#allocation13 + $0x5c4] ss:$16 sps:$4 sm:$0xff]   ;;  %v6045_v22 = vld [vmem:[#allocation13 + $0x5cc] ss:$16 sps:$4 sm:$0xff]  }
 0x5b1   :  { %4327 = vmatprep.subr.bf16.mxu0 %v5973_v28  ;;  %v6040_v25 = vld [vmem:[#allocation13 + $0x5c0] ss:$16 sps:$4 sm:$0xff]   ;;  %v6043_v26 = vld [vmem:[#allocation13 + $0x5c8] ss:$16 sps:$4 sm:$0xff]   ;;  %v6048_v27 = vld [vmem:[#allocation13 + $0x5e4] ss:$16 sps:$4 sm:$0xff]  }
 0x5b2   :  { %v6051_v28 = vld [vmem:[#allocation13 + $0x5ec] ss:$16 sps:$4 sm:$0xff]  }
 0x5b3   :  { %4156 = vmatpush1.bf16.msra.mxu1 %v5968_v29  ;;  %v6046_v29 = vld [vmem:[#allocation13 + $0x5e0] ss:$16 sps:$4 sm:$0xff]  }
 0x5b4   :  { %4328 = vmatpush1.bf16.msra.mxu0 %v5971_v57  ;;  %4157 = vmatprep.subr.bf16.mxu1 %v5976_v30  ;;  %v6049_v57 = vld [vmem:[#allocation13 + $0x5e8] ss:$16 sps:$4 sm:$0xff]   ;;  %v6054_v30 = vld [vmem:[#allocation13 + $0x604] ss:$16 sps:$4 sm:$0xff]  }
 0x5b5   :  { %4329 = vmatprep.subr.bf16.mxu0 %v5979_v31  ;;  %v6057_v31 = vld [vmem:[#allocation13 + $0x60c] ss:$16 sps:$4 sm:$0xff]  }
 0x5b7   :  { %4158 = vmatpush1.bf16.msra.mxu1 %v5974_v24  ;;  %v6052_v24 = vld [vmem:[#allocation13 + $0x600] ss:$16 sps:$4 sm:$0xff]  }
 0x5b8   :  { %4330 = vmatpush1.bf16.msra.mxu0 %v5977_v32  ;;  %4159 = vmatprep.subr.bf16.mxu1 %v5982_v33  ;;  %v6055_v32 = vld [vmem:[#allocation13 + $0x608] ss:$16 sps:$4 sm:$0xff]   ;;  %v6060_v33 = vld [vmem:[#allocation13 + $0x624] ss:$16 sps:$4 sm:$0xff]  }
 0x5b9   :  { %4331 = vmatprep.subr.bf16.mxu0 %v5985_v34  ;;  %v6063_v34 = vld [vmem:[#allocation13 + $0x62c] ss:$16 sps:$4 sm:$0xff]  }
 0x5bb   :  { %4160 = vmatpush1.bf16.msra.mxu1 %v5980_v35  ;;  %v6058_v35 = vld [vmem:[#allocation13 + $0x620] ss:$16 sps:$4 sm:$0xff]  }
 0x5bc   :  { %4332 = vmatpush1.bf16.msra.mxu0 %v5983_v38  ;;  %4161 = vmatprep.subr.bf16.mxu1 %v5988_v39  ;;  %v6061_v38 = vld [vmem:[#allocation13 + $0x628] ss:$16 sps:$4 sm:$0xff]   ;;  %v6066_v39 = vld [vmem:[#allocation13 + $0x644] ss:$16 sps:$4 sm:$0xff]  }
 0x5bd   :  { %4333 = vmatprep.subr.bf16.mxu0 %v5991_v40  ;;  %v6069_v40 = vld [vmem:[#allocation13 + $0x64c] ss:$16 sps:$4 sm:$0xff]  }
 0x5bf   :  { %4162 = vmatpush1.bf16.msra.mxu1 %v5986_v41  ;;  %v6064_v41 = vld [vmem:[#allocation13 + $0x640] ss:$16 sps:$4 sm:$0xff]  }
 0x5c0   :  { %4334 = vmatpush1.bf16.msra.mxu0 %v5989_v42  ;;  %4163 = vmatprep.subr.bf16.mxu1 %v5994_v44  ;;  %v6067_v42 = vld [vmem:[#allocation13 + $0x648] ss:$16 sps:$4 sm:$0xff]   ;;  %v6072_v44 = vld [vmem:[#allocation13 + $0x664] ss:$16 sps:$4 sm:$0xff]  }
 0x5c1   :  { %4335 = vmatprep.subr.bf16.mxu0 %v5997_v46  ;;  %v6070_v46 = vld [vmem:[#allocation13 + $0x660] ss:$16 sps:$4 sm:$0xff]  }
 0x5c3   :  { %4164 = vmatpush1.bf16.msra.mxu1 %v5992_v5  ;;  %v6073_v5 = vld [vmem:[#allocation13 + $0x668] ss:$16 sps:$4 sm:$0xff]  }
 0x5c4   :  { %4336 = vmatpush1.bf16.msra.mxu0 %v5995_v47  ;;  %4165 = vmatprep.subr.bf16.mxu1 %v6000_v59  ;;  %v6078_v47 = vld [vmem:[#allocation13 + $0x684] ss:$16 sps:$4 sm:$0xff]   ;;  %v6081_v59 = vld [vmem:[#allocation13 + $0x68c] ss:$16 sps:$4 sm:$0xff]  }
 0x5c5   :  { %4337 = vmatprep.subr.bf16.mxu0 %v6003_v18  ;;  %v6079_v18 = vld [vmem:[#allocation13 + $0x688] ss:$16 sps:$4 sm:$0xff]  }
 0x5c7   :  { %4166 = vmatpush1.bf16.msra.mxu1 %v5998_v49  ;;  %v6084_v49 = vld [vmem:[#allocation13 + $0x6a4] ss:$16 sps:$4 sm:$0xff]  }
 0x5c8   :  { %4338 = vmatpush1.bf16.msra.mxu0 %v6001_v54  ;;  %4167 = vmatprep.subr.bf16.mxu1 %v6006_v6  ;;  %v6087_v54 = vld [vmem:[#allocation13 + $0x6ac] ss:$16 sps:$4 sm:$0xff]   ;;  %v6082_v6 = vld [vmem:[#allocation13 + $0x6a0] ss:$16 sps:$4 sm:$0xff]  }
 0x5c9   :  { %4339 = vmatprep.subr.bf16.mxu0 %v6009_v50  ;;  %v6085_v50 = vld [vmem:[#allocation13 + $0x6a8] ss:$16 sps:$4 sm:$0xff]  }
 0x5cb   :  { %4168 = vmatpush1.bf16.msra.mxu1 %v6004_v60  ;;  %v6090_v60 = vld [vmem:[#allocation13 + $0x6c4] ss:$16 sps:$4 sm:$0xff]  }
 0x5cc   :  { %4340 = vmatpush1.bf16.msra.mxu0 %v6007_v51  ;;  %4169 = vmatprep.subr.bf16.mxu1 %v6012_v48  ;;  %v6093_v51 = vld [vmem:[#allocation13 + $0x6cc] ss:$16 sps:$4 sm:$0xff]   ;;  %v6088_v48 = vld [vmem:[#allocation13 + $0x6c0] ss:$16 sps:$4 sm:$0xff]  }
 0x5cd   :  { %4341 = vmatprep.subr.bf16.mxu0 %v6015_v52  ;;  %v6091_v52 = vld [vmem:[#allocation13 + $0x6c8] ss:$16 sps:$4 sm:$0xff]  }
 0x5cf   :  { %4170 = vmatpush1.bf16.msra.mxu1 %v6010_v53  ;;  %v6096_v53 = vld [vmem:[#allocation13 + $0x6e4] ss:$16 sps:$4 sm:$0xff]  }
 0x5d0   :  { %4342 = vmatpush1.bf16.msra.mxu0 %v6013_v55  ;;  %4171 = vmatprep.subr.bf16.mxu1 %v6018_v61  ;;  %v6099_v55 = vld [vmem:[#allocation13 + $0x6ec] ss:$16 sps:$4 sm:$0xff]   ;;  %v6094_v61 = vld [vmem:[#allocation13 + $0x6e0] ss:$16 sps:$4 sm:$0xff]  }
 0x5d1   :  { %4343 = vmatprep.subr.bf16.mxu0 %v6021_v62  ;;  %v6097_v62 = vld [vmem:[#allocation13 + $0x6e8] ss:$16 sps:$4 sm:$0xff]  }
 0x5d3   :  { %4172 = vmatpush1.bf16.msra.mxu1 %v6016_v63  ;;  %v6102_v63 = vld [vmem:[#allocation13 + $0x704] ss:$16 sps:$4 sm:$0xff]  }
 0x5d4   :  { %4344 = vmatpush1.bf16.msra.mxu0 %v6019_v0  ;;  %4173 = vmatprep.subr.bf16.mxu1 %v6024_v1  ;;  %v6105_v0 = vld [vmem:[#allocation13 + $0x70c] ss:$16 sps:$4 sm:$0xff]   ;;  %v6100_v1 = vld [vmem:[#allocation13 + $0x700] ss:$16 sps:$4 sm:$0xff]  }
 0x5d5   :  { %4345 = vmatprep.subr.bf16.mxu0 %v6027_v2  ;;  %v6103_v2 = vld [vmem:[#allocation13 + $0x708] ss:$16 sps:$4 sm:$0xff]  }
 0x5d7   :  { %4174 = vmatpush1.bf16.msra.mxu1 %v6022_v3  ;;  %v6108_v3 = vld [vmem:[#allocation13 + $0x724] ss:$16 sps:$4 sm:$0xff]  }
 0x5d8   :  { %4346 = vmatpush1.bf16.msra.mxu0 %v6025_v10  ;;  %4175 = vmatprep.subr.bf16.mxu1 %v6030_v11  ;;  %v6111_v10 = vld [vmem:[#allocation13 + $0x72c] ss:$16 sps:$4 sm:$0xff]   ;;  %v6106_v11 = vld [vmem:[#allocation13 + $0x720] ss:$16 sps:$4 sm:$0xff]  }
 0x5d9   :  { %4347 = vmatprep.subr.bf16.mxu0 %v6033_v12  ;;  %v6109_v12 = vld [vmem:[#allocation13 + $0x728] ss:$16 sps:$4 sm:$0xff]  }
 0x5db   :  { %4176 = vmatpush1.bf16.msra.mxu1 %v6028_v13  ;;  %v6114_v13 = vld [vmem:[#allocation13 + $0x744] ss:$16 sps:$4 sm:$0xff]  }
 0x5dc   :  { %4348 = vmatpush1.bf16.msra.mxu0 %v6031_v14  ;;  %4177 = vmatprep.subr.bf16.mxu1 %v6036_v15  ;;  %v6117_v14 = vld [vmem:[#allocation13 + $0x74c] ss:$16 sps:$4 sm:$0xff]   ;;  %v6112_v15 = vld [vmem:[#allocation13 + $0x740] ss:$16 sps:$4 sm:$0xff]  }
 0x5dd   :  { %4349 = vmatprep.subr.bf16.mxu0 %v6039_v56  ;;  %v6115_v56 = vld [vmem:[#allocation13 + $0x748] ss:$16 sps:$4 sm:$0xff]  }
 0x5df   :  { %4178 = vmatpush1.bf16.msra.mxu1 %v6034_v58  ;;  %v6120_v58 = vld [vmem:[#allocation13 + $0x764] ss:$16 sps:$4 sm:$0xff]  }
 0x5e0   :  { %4350 = vmatpush1.bf16.msra.mxu0 %v6037_v20  ;;  %4179 = vmatprep.subr.bf16.mxu1 %v6042_v8  ;;  %v6123_v20 = vld [vmem:[#allocation13 + $0x76c] ss:$16 sps:$4 sm:$0xff]   ;;  %v6118_v8 = vld [vmem:[#allocation13 + $0x760] ss:$16 sps:$4 sm:$0xff]  }
 0x5e1   :  { %4351 = vmatprep.subr.bf16.mxu0 %v6045_v22  ;;  %v6121_v22 = vld [vmem:[#allocation13 + $0x768] ss:$16 sps:$4 sm:$0xff]  }
 0x5e3   :  { %4180 = vmatpush1.bf16.msra.mxu1 %v6040_v25  ;;  %v6126_v25 = vld [vmem:[#allocation13 + $0x784] ss:$16 sps:$4 sm:$0xff]  }
 0x5e4   :  { %4352 = vmatpush1.bf16.msra.mxu0 %v6043_v26  ;;  %4181 = vmatprep.subr.bf16.mxu1 %v6048_v27  ;;  %v6129_v26 = vld [vmem:[#allocation13 + $0x78c] ss:$16 sps:$4 sm:$0xff]   ;;  %v6124_v27 = vld [vmem:[#allocation13 + $0x780] ss:$16 sps:$4 sm:$0xff]  }
 0x5e5   :  { %4353 = vmatprep.subr.bf16.mxu0 %v6051_v28  ;;  %v6127_v28 = vld [vmem:[#allocation13 + $0x788] ss:$16 sps:$4 sm:$0xff]  }
 0x5e7   :  { %4182 = vmatpush1.bf16.msra.mxu1 %v6046_v29  ;;  %v6132_v29 = vld [vmem:[#allocation13 + $0x7a4] ss:$16 sps:$4 sm:$0xff]  }
 0x5e8   :  { %4354 = vmatpush1.bf16.msra.mxu0 %v6049_v57  ;;  %4194 = vmatprep.subr.bf16.mxu1 %v6054_v30  ;;  %v6135_v57 = vld [vmem:[#allocation13 + $0x7ac] ss:$16 sps:$4 sm:$0xff]   ;;  %v6130_v30 = vld [vmem:[#allocation13 + $0x7a0] ss:$16 sps:$4 sm:$0xff]  }
 0x5e9   :  { %4366 = vmatprep.subr.bf16.mxu0 %v6057_v31  ;;  %v6133_v31 = vld [vmem:[#allocation13 + $0x7a8] ss:$16 sps:$4 sm:$0xff]  }
 0x5ea   :  { %4184 = vmatmul.mubr.bf16.vlgmr.msra.gmra.mrb[20].mxu1 %v6710_v16 }
 0x5eb   :  { %4356 = vmatmul.mubr.bf16.vlgmr.msra.gmra.mrb[20].mxu0 %v6710_v16  ;;  %4195 = vmatpush1.bf16.msra.mxu1 %v6052_v24  ;;  %v6075_v16 = vld [vmem:[#allocation13 + $0x66c] ss:$16 sps:$4 sm:$0xff]   ;;  %v6138_v24 = vld [vmem:[#allocation13 + $0x7c4] ss:$16 sps:$4 sm:$0xff]  }
 0x5ec   :  { %4226 = vmatprep.mubr.bf16.mxu1 %v6714_v19  ;;  %4367 = vmatpush1.bf16.msra.mxu0 %v6055_v32  ;;  %v6141_v32 = vld [vmem:[#allocation13 + $0x7cc] ss:$16 sps:$4 sm:$0xff]  }
 0x5ed   :  { %4398 = vmatprep.mubr.bf16.mxu0 %v6714_v19  ;;  %4196 = vmatprep.subr.bf16.mxu1 %v6060_v33  ;;  %v6076_v19 = vld [vmem:[#allocation13 + $0x680] ss:$16 sps:$4 sm:$0xff]  }
 0x5ee   :  { %4368 = vmatprep.subr.bf16.mxu0 %v6063_v34  ;;  %v6136_v33 = vld [vmem:[#allocation13 + $0x7c0] ss:$16 sps:$4 sm:$0xff]   ;;  %v6139_v34 = vld [vmem:[#allocation13 + $0x7c8] ss:$16 sps:$4 sm:$0xff]  }
 0x5ef   :  { %4197 = vmatpush1.bf16.msra.mxu1 %v6058_v35  ;;  %v6144_v35 = vld [vmem:[#allocation13 + $0x7e4] ss:$16 sps:$4 sm:$0xff]  }
 0x5f0   :  { %4369 = vmatpush1.bf16.msra.mxu0 %v6061_v38  ;;  %4198 = vmatprep.subr.bf16.mxu1 %v6066_v39  ;;  %v6147_v38 = vld [vmem:[#allocation13 + $0x7ec] ss:$16 sps:$4 sm:$0xff]   ;;  %v6142_v39 = vld [vmem:[#allocation13 + $0x7e0] ss:$16 sps:$4 sm:$0xff]  }
 0x5f1   :  { %4370 = vmatprep.subr.bf16.mxu0 %v6069_v40  ;;  %v6145_v40 = vld [vmem:[#allocation13 + $0x7e8] ss:$16 sps:$4 sm:$0xff]  }
 0x5f3   :  { %4199 = vmatpush1.bf16.msra.mxu1 %v6064_v41  ;;  %v6148_v41 = vld [vmem:[#allocation8 + $0x40] sm:$0xff]  }
 0x5f4   :  { %4371 = vmatpush1.bf16.msra.mxu0 %v6067_v42  ;;  %4200 = vmatprep.subr.bf16.mxu1 %v6072_v44  ;;  %v6149_v42 = vld [vmem:[#allocation8 + $0xc0] sm:$0xff]  }
 0x5f5   :  { %4372 = vmatprep.subr.bf16.mxu0 %v6075_v16  ;;  %v6150_v44 = vld [vmem:[#allocation8] sm:$0xff]  }
 0x5f6   :  { %v6151_v16 = vld [vmem:[#allocation8 + $0x80] sm:$0xff]  }
 0x5f7   :  { %4201 = vmatpush1.bf16.msra.mxu1 %v6070_v46  ;;  %v6152_v46 = vld [vmem:[#allocation8 + $0x48] sm:$0xff]  }
 0x5f8   :  { %4373 = vmatpush1.bf16.msra.mxu0 %v6073_v5  ;;  %4202 = vmatprep.subr.bf16.mxu1 %v6078_v47  ;;  %v6153_v5 = vld [vmem:[#allocation8 + $0xc8] sm:$0xff]  }
 0x5f9   :  { %4374 = vmatprep.subr.bf16.mxu0 %v6081_v59  ;;  %v6154_v47 = vld [vmem:[#allocation8 + $0x8] sm:$0xff]  }
 0x5fa   :  { %v6155_v59 = vld [vmem:[#allocation8 + $0x88] sm:$0xff]  }
 0x5fb   :  { %4203 = vmatpush1.bf16.msra.mxu1 %v6076_v19  ;;  %v6156_v19 = vld [vmem:[#allocation8 + $0x50] sm:$0xff]  }
 0x5fc   :  { %4375 = vmatpush1.bf16.msra.mxu0 %v6079_v18  ;;  %4204 = vmatprep.subr.bf16.mxu1 %v6084_v49  ;;  %v6157_v18 = vld [vmem:[#allocation8 + $0xd0] sm:$0xff]  }
 0x5fd   :  { %4376 = vmatprep.subr.bf16.mxu0 %v6087_v54  ;;  %v6158_v49 = vld [vmem:[#allocation8 + $0x10] sm:$0xff]  }
 0x5fe   :  { %v6159_v54 = vld [vmem:[#allocation8 + $0x90] sm:$0xff]  }
 0x5ff   :  { %4205 = vmatpush1.bf16.msra.mxu1 %v6082_v6  ;;  %v6160_v6 = vld [vmem:[#allocation8 + $0x58] sm:$0xff]  }
 0x600   :  { %4377 = vmatpush1.bf16.msra.mxu0 %v6085_v50  ;;  %4206 = vmatprep.subr.bf16.mxu1 %v6090_v60  ;;  %v6161_v50 = vld [vmem:[#allocation8 + $0xd8] sm:$0xff]  }
 0x601   :  { %4378 = vmatprep.subr.bf16.mxu0 %v6093_v51  ;;  %v6162_v60 = vld [vmem:[#allocation8 + $0x18] sm:$0xff]   ;;  %v6164_v51 = vld [vmem:[#allocation8 + $0x60] sm:$0xff]  }
 0x603   :  { %4207 = vmatpush1.bf16.msra.mxu1 %v6088_v48  ;;  %v6165_v48 = vld [vmem:[#allocation8 + $0xe0] sm:$0xff]  }
 0x604   :  { %4379 = vmatpush1.bf16.msra.mxu0 %v6091_v52  ;;  %4208 = vmatprep.subr.bf16.mxu1 %v6096_v53  ;;  %v6166_v52 = vld [vmem:[#allocation8 + $0x20] sm:$0xff]  }
 0x605   :  { %4380 = vmatprep.subr.bf16.mxu0 %v6099_v55  ;;  %v6167_v53 = vld [vmem:[#allocation8 + $0xa0] sm:$0xff]   ;;  %v6168_v55 = vld [vmem:[#allocation8 + $0x68] sm:$0xff]  }
 0x607   :  { %4209 = vmatpush1.bf16.msra.mxu1 %v6094_v61  ;;  %v6169_v61 = vld [vmem:[#allocation8 + $0xe8] sm:$0xff]  }
 0x608   :  { %4381 = vmatpush1.bf16.msra.mxu0 %v6097_v62  ;;  %4210 = vmatprep.subr.bf16.mxu1 %v6102_v63  ;;  %v6170_v62 = vld [vmem:[#allocation8 + $0x28] sm:$0xff]  }
 0x609   :  { %4382 = vmatprep.subr.bf16.mxu0 %v6105_v0  ;;  %v6171_v63 = vld [vmem:[#allocation8 + $0xa8] sm:$0xff]   ;;  %v6172_v0 = vld [vmem:[#allocation8 + $0x70] sm:$0xff]  }
 0x60b   :  { %4211 = vmatpush1.bf16.msra.mxu1 %v6100_v1  ;;  %v6173_v1 = vld [vmem:[#allocation8 + $0xf0] sm:$0xff]  }
 0x60c   :  { %4383 = vmatpush1.bf16.msra.mxu0 %v6103_v2  ;;  %4212 = vmatprep.subr.bf16.mxu1 %v6108_v3  ;;  %v6174_v2 = vld [vmem:[#allocation8 + $0x30] sm:$0xff]  }
 0x60d   :  { %4384 = vmatprep.subr.bf16.mxu0 %v6111_v10  ;;  %v6175_v3 = vld [vmem:[#allocation8 + $0xb0] sm:$0xff]   ;;  %v6176_v10 = vld [vmem:[#allocation8 + $0x78] sm:$0xff]  }
 0x60f   :  { %4213 = vmatpush1.bf16.msra.mxu1 %v6106_v11  ;;  %v6177_v11 = vld [vmem:[#allocation8 + $0xf8] sm:$0xff]  }
 0x610   :  { %4385 = vmatpush1.bf16.msra.mxu0 %v6109_v12  ;;  %4214 = vmatprep.subr.bf16.mxu1 %v6114_v13  ;;  %v6178_v12 = vld [vmem:[#allocation8 + $0x38] sm:$0xff]  }
 0x611   :  { %4386 = vmatprep.subr.bf16.mxu0 %v6117_v14  ;;  %v6179_v13 = vld [vmem:[#allocation8 + $0xb8] sm:$0xff]   ;;  %v2763_v14 = vld [vmem:[%s6776_s9] sm:$0xf]  ;;  %s6429_s9 = smov [#allocation14]  }
 0x612   :  { %s4798_s14 = sshll.u32 %s6429_s9, 4  ;;  %s4799_s14 = int_to_ptr.vmem [resolvable:$true] %s4798_s14 }
 0x613   :  { %4215 = vmatpush1.bf16.msra.mxu1 %v6112_v15  ;;  %v2768_v15 = vrot.slane %v2763_v14, %v6601_v7  ;;  %s6353_s16 = scalar_lea.vmem %s4799_s14, 512  ;;  %p6358_p1 = scmp.lt.s32.totalorder %s4799_s14, %s4799_s14 }
 0x614   :  { %4387 = vmatpush1.bf16.msra.mxu0 %v6115_v56  ;;  %4216 = vmatprep.subr.bf16.mxu1 %v6120_v58  ;;  %v2776_v56 = vrot.slane %v2763_v14, %v6616_v21  ;;  %v2772_v58 = vrot.slane %v2763_v14, %v6609_v9  ;;  %p6354_p0 = scmp.ne.s32.totalorder %s4799_s14, %s6353_s16  ;;  %p6359_p2 = scmp.lt.s32.totalorder %s6353_s16, %s6353_s16 }
 0x615   :  { %4388 = vmatprep.subr.bf16.mxu0 %v6123_v20  ;;  %v2780_v20 = vrot.slane %v2763_v14, %v6619_v23 }
 0x616   :  { %p6360_p3 = por %p6359_p2, %p6358_p1 }
 0x617   :  { %4217 = vmatpush1.bf16.msra.mxu1 %v6118_v8 }
 0x618   :  { %4389 = vmatpush1.bf16.msra.mxu0 %v6121_v22  ;;  %4218 = vmatprep.subr.bf16.mxu1 %v6126_v25  ;;  %p6361_p4 = pnand %p6360_p3, %p6354_p0 }
 0x619   :  { %4390 = vmatprep.subr.bf16.mxu0 %v6129_v26 }
 0x61b   :  { %4219 = vmatpush1.bf16.msra.mxu1 %v6124_v27 }
 0x61c   :  { %4391 = vmatpush1.bf16.msra.mxu0 %v6127_v28  ;;  %4220 = vmatprep.subr.bf16.mxu1 %v6132_v29 }
 0x61d   :  { %4392 = vmatprep.subr.bf16.mxu0 %v6135_v57 }
 0x61f   :  { %4221 = vmatpush1.bf16.msra.mxu1 %v6130_v30 }
 0x620   :  { %4393 = vmatpush1.bf16.msra.mxu0 %v6133_v31  ;;  %4222 = vmatprep.subr.bf16.mxu1 %v6138_v24 }
 0x621   :  { %4394 = vmatprep.subr.bf16.mxu0 %v6141_v32 }
 0x623   :  { %4223 = vmatpush1.bf16.msra.mxu1 %v6136_v33 }
 0x624   :  { %4395 = vmatpush1.bf16.msra.mxu0 %v6139_v34  ;;  %4224 = vmatprep.subr.bf16.mxu1 %v6144_v35 }
 0x625   :  { %4396 = vmatprep.subr.bf16.mxu0 %v6147_v38 }
 0x627   :  { %4225 = vmatpush1.bf16.msra.mxu1 %v6142_v39 }
 0x628   :  { %4397 = vmatpush1.bf16.msra.mxu0 %v6145_v40  ;;  %5465 = vmatprep.subr.bf16.mxu1 %v6148_v41 }
 0x629   :  { %5487 = vmatprep.subr.bf16.mxu0 %v6149_v42 }
 0x62a   :  { %4227 = vmatmul.mubr.bf16.vlgmr.msra.gmra.mrb[20].mxu1 %v6712_v17 }
 0x62b   :  { %4399 = vmatmul.mubr.bf16.vlgmr.msra.gmra.mrb[20].mxu0 %v6712_v17  ;;  %5466 = vmatpush3.bf16.msra.mxu1 %v6150_v44  ;;  %v6163_v17 = vld [vmem:[#allocation8 + $0x98] sm:$0xff]  }
 0x62c   :  { %5488 = vmatpush3.bf16.msra.mxu0 %v6151_v16  ;;  %5467 = vmatprep.subr.bf16.mxu1 %v6152_v46 }
 0x62d   :  { %5489 = vmatprep.subr.bf16.mxu0 %v6153_v5 }
 0x62f   :  { %5468 = vmatpush3.bf16.msra.mxu1 %v6154_v47 }
 0x630   :  { %5490 = vmatpush3.bf16.msra.mxu0 %v6155_v59  ;;  %5469 = vmatprep.subr.bf16.mxu1 %v6156_v19 }
 0x631   :  { %5491 = vmatprep.subr.bf16.mxu0 %v6157_v18 }
 0x633   :  { %5470 = vmatpush3.bf16.msra.mxu1 %v6158_v49 }
 0x634   :  { %5492 = vmatpush3.bf16.msra.mxu0 %v6159_v54  ;;  %5471 = vmatprep.subr.bf16.mxu1 %v6160_v6 }
 0x635   :  { %5493 = vmatprep.subr.bf16.mxu0 %v6161_v50 }
 0x637   :  { %5472 = vmatpush3.bf16.msra.mxu1 %v6162_v60 }
 0x638   :  { %5494 = vmatpush3.bf16.msra.mxu0 %v6163_v17  ;;  %5473 = vmatprep.subr.bf16.mxu1 %v6164_v51 }
 0x639   :  { %5495 = vmatprep.subr.bf16.mxu0 %v6165_v48 }
 0x63b   :  { %5474 = vmatpush3.bf16.msra.mxu1 %v6166_v52 }
 0x63c   :  { %5496 = vmatpush3.bf16.msra.mxu0 %v6167_v53  ;;  %5475 = vmatprep.subr.bf16.mxu1 %v6168_v55 }
 0x63d   :  { %5497 = vmatprep.subr.bf16.mxu0 %v6169_v61 }
 0x63f   :  { %5476 = vmatpush3.bf16.msra.mxu1 %v6170_v62 }
 0x640   :  { %5498 = vmatpush3.bf16.msra.mxu0 %v6171_v63  ;;  %5477 = vmatprep.subr.bf16.mxu1 %v6172_v0 }
 0x641   :  { %5499 = vmatprep.subr.bf16.mxu0 %v6173_v1 }
 0x643   :  { %5478 = vmatpush3.bf16.msra.mxu1 %v6174_v2 }
 0x644   :  { %5500 = vmatpush3.bf16.msra.mxu0 %v6175_v3  ;;  %5479 = vmatprep.subr.bf16.mxu1 %v6176_v10 }
 0x645   :  { %5501 = vmatprep.subr.bf16.mxu0 %v6177_v11 }
 0x647   :  { %5480 = vmatpush3.bf16.msra.mxu1 %v6178_v12 }
 0x648   :  { %5502 = vmatpush3.bf16.msra.mxu0 %v6179_v13 }
 0x6fd   :  { %v4228_v8 = vpop.f32.mrb[20].mxu1 }
 0x6fe   :  { %v5509_v22 = vadd.f32 %v4228_v8, %v2768_v15  ;;  %v4400_v25 = vpop.f32.mrb[20].mxu0  ;;  %v4230_v26 = vpop.f32.mrb[21].mxu1 }
 0x6ff   :  { %v5513_v27 = vadd.f32 %v4400_v25, %v2776_v56  ;;  %v5510_v28 = vadd.f32 %v4230_v26, %v2772_v58  ;;  %v4402_v29 = vpop.f32.mrb[21].mxu0  ;;  %v4232_v57 = vpop.f32.mrb[22].mxu1 }
 0x700   :  { %v4409_v30 = vmax.f32 %v5509_v22, 0.0  ;;  %v5514_v31 = vadd.f32 %v4402_v29, %v2780_v20  ;;  %v5511_v24 = vadd.f32 %v4232_v57, %v2768_v15  ;;  %v4404_v32 = vpop.f32.mrb[22].mxu0  ;;  %v4234_v33 = vpop.f32.mrb[23].mxu1 }
 0x701   :  { %v4411_v7 = vmax.f32 %v5513_v27, 0.0  ;;  %v4410_v34 = vmax.f32 %v5510_v28, 0.0  ;;  %v5515_v21 = vadd.f32 %v4404_v32, %v2776_v56  ;;  %v5512_v35 = vadd.f32 %v4234_v33, %v2772_v58  ;;  %v4406_v38 = vpop.f32.mrb[23].mxu0 }
 0x702   :  { %v4412_v39 = vmax.f32 %v5514_v31, 0.0  ;;  %v4413_v23 = vmax.f32 %v5511_v24, 0.0  ;;  %v5516_v40 = vadd.f32 %v4406_v38, %v2780_v20 }
 0x703   :  { %v5395_v41 = vpack.c.bf16 %v4410_v34, %v4409_v30  ;;  %v4415_v42 = vmax.f32 %v5515_v21, 0.0  ;;  %v4414_v44 = vmax.f32 %v5512_v35, 0.0 }
 0x704   :  { %v5396_v16 = vpack.c.bf16 %v4412_v39, %v4411_v7  ;;  %v4417_v46 = vpack.c.bf16 %v4413_v23, %v4409_v30  ;;  %v4416_v5 = vmax.f32 %v5516_v40, 0.0 }
 0x705   :  { %4441 = vst [vmem:[#allocation14] sm:$0xff] %v5395_v41  ;;  %v4419_v47 = vpack.c.bf16 %v4415_v42, %v4411_v7  ;;  %v4418_v59 = vpack.c.bf16 %v4414_v44, %v4410_v34  ;;  %v5397_v19 = vpack.c.bf16 %v4414_v44, %v4413_v23 }
 0x706   :  { %4442 = vst [vmem:[#allocation14 + $0x8] sm:$0xff] %v5396_v16  ;;  %v4420_v18 = vpack.c.bf16 %v4416_v5, %v4412_v39  ;;  %v5398_v49 = vpack.c.bf16 %v4416_v5, %v4415_v42 }
 0x707   :  { %4443 = vst [vmem:[#allocation14 + $0x10] sm:$0xff] %v5397_v19  ;;  %4737 = vmatprep.mubr.bf16.mxu1 %v4418_v59 }
 0x708   :  { %4444 = vst [vmem:[#allocation14 + $0x18] sm:$0xff] %v5398_v49  ;;  %4778 = vmatprep.mubr.bf16.mxu0 %v4420_v18  ;;  %4738 = vmatmul.mubr.bf16.vlgmr.msra.gmra.mrb[24].mxu1 %v4417_v46 }
 0x709   :  { %4779 = vmatmul.mubr.bf16.vlgmr.msra.gmra.mrb[24].mxu0 %v4419_v47 }
 0x70a   :  { %6364 = shalt.err (!%p6361_p4)
}
 0x70b   :  { %s6365_s3 = scalar_lea.hbm %s6777_s10, 512 }
 0x70c   :  { %p6366_p5 = scmp.ne.s32.totalorder %s6777_s10, %s6365_s3  ;;  %p6369_p6 = scmp.lt.u32.totalorder %s6365_s3, %s6777_s10 }
 0x70e   :  { %p6371_p7 = pnand %p6369_p6, %p6366_p5 }
 0x710   :  { %6374 = shalt.err (!%p6371_p7)
}
 0x711   :  { %4804 = dma.vmem_to_hbm [thread:$0]  %s4799_s14, 512, %s6777_s10, [#allocation4], %s6424_s5, %s6424_s5, %s6425_s13   ;;  %v1438_v54 = vsub.f32 0.0, %v6638_v43  ;;  %v1439_v6 = vsub.f32 0.0, %v6640_v45  ;;  %v6198_v55 = vld [vmem:[#allocation10] sm:$0x3] }
 0x712   :  { %v4512_v61 = vrot.slane %v6198_v55, %v6609_v9  ;;  %vm1437_vm3 = vcmp.eq.s32.totalorder %v6635_v37, 3  ;;  %s6430_s10 = smov [#allocation15]  }
 0x713   :  { %v1440_v50 = vmul.f32 1.442695, %v1438_v54  ;;  %v1442_v60 = vmul.f32 1.442695, %v1439_v6  ;;  %s4810_s1 = sshll.u32 %s6430_s10, 4  ;;  %s4811_s1 = int_to_ptr.vmem [resolvable:$true] %s4810_s1 }
 0x714   :  { %s6375_s25 = scalar_lea.vmem %s4811_s1, 256  ;;  %p6380_p9 = scmp.lt.s32.totalorder %s4811_s1, %s4811_s1 }
 0x715   :  { %6188 = vpow2.f32 %v1440_v50  ;;  %p6376_p8 = scmp.ne.s32.totalorder %s4811_s1, %s6375_s25  ;;  %p6381_p10 = scmp.lt.s32.totalorder %s6375_s25, %s6375_s25 }
 0x716   :  { %6190 = vpow2.f32 %v1442_v60 }
 0x717   :  { %p6382_p11 = por %p6381_p10, %p6380_p9 }
 0x719   :  { %p6383_p12 = pnand %p6382_p11, %p6376_p8 }
 0x71f   :  { %v6189_v17 = vpop.eup %6188 }
 0x720   :  { %v6191_v51 = vpop.eup %6190  ;;  %v1444_v48 = vadd.f32 1.0, %v6189_v17 }
 0x721   :  { %v1445_v52 = vadd.f32 1.0, %v6191_v51 }
 0x722   :  { %6192 = vrcp.f32 %v1444_v48 }
 0x723   :  { %6194 = vrcp.f32 %v1445_v52 }
 0x72c   :  { %v6193_v0 = vpop.eup %6192 }
 0x72d   :  { %v6195_v11 = vpop.eup %6194  ;;  %v1450_v15 = vsel %vm1437_vm3, %v6193_v0, 0.0 }
 0x72e   :  { %v4787_v9 = vadd.f32 %v1450_v15, %v6663_v36  ;;  %v1451_v8 = vsel %vm1437_vm3, %v6195_v11, 0.0 }
 0x72f   :  { %v4788_v25 = vadd.f32 %v1451_v8, %v6670_v4 }
 0x7db   :  { %v5481_v53 = vpop.f32.mrb[24].mxu1 }
 0x7dc   :  { %v5503_v62 = vpop.f32.mrb[24].mxu0  ;;  %v5482_v63 = vpop.f32.mrb[25].mxu1 }
 0x7dd   :  { %v5483_v43 = vadd.f32 %v5482_v63, %v5481_v53  ;;  %v5504_v45 = vpop.f32.mrb[25].mxu0  ;;  %v5484_v1 = vpop.f32.mrb[26].mxu1 }
 0x7de   :  { %v5505_v2 = vadd.f32 %v5504_v45, %v5503_v62  ;;  %v5506_v3 = vpop.f32.mrb[26].mxu0  ;;  %v5485_v10 = vpop.f32.mrb[27].mxu1 }
 0x7df   :  { %v4740_v12 = vadd.f32 %v5483_v43, %v4512_v61  ;;  %v5486_v13 = vadd.f32 %v5485_v10, %v5484_v1  ;;  %v5507_v14 = vpop.f32.mrb[27].mxu0 }
 0x7e0   :  { %v5508_v56 = vadd.f32 %v5507_v14, %v5506_v3 }
 0x7e1   :  { %v4781_v58 = vadd.f32 %v5505_v2, %v4740_v12  ;;  %v4743_v20 = vadd.f32 %v5486_v13, %v4512_v61 }
 0x7e3   :  { %v4789_v22 = vadd.f32 %v4787_v9, %v4781_v58  ;;  %v4784_v37 = vadd.f32 %v5508_v56, %v4743_v20 }
 0x7e5   :  { %4791 = vst [vmem:[#allocation15] sm:$0xff] %v4789_v22  ;;  %v4790_v26 = vadd.f32 %v4788_v25, %v4784_v37 }
 0x7e7   :  { %4792 = vst [vmem:[#allocation15 + $0x8] sm:$0xff] %v4790_v26 }
 0x7e8   :  { %6386 = shalt.err (!%p6383_p12)
}
 0x7e9   :  { %s6387_s22 = scalar_lea.hbm %s6778_s11, 256 }
 0x7ea   :  { %p6388_p13 = scmp.ne.s32.totalorder %s6778_s11, %s6387_s22  ;;  %p6391_p0 = scmp.lt.u32.totalorder %s6387_s22, %s6778_s11 }
 0x7ec   :  { %p6393_p1 = pnand %p6391_p0, %p6388_p13 }
 0x7ee   :  { %6396 = shalt.err (!%p6393_p1)
}
 0x7ef   :  { %4816 = dma.vmem_to_hbm [thread:$0]  %s4811_s1, 256, %s6778_s11, [#allocation16], %s6419_s6, %s6419_s6, %s6420_s15  }
 0x7f0   :  { %6405 = dma.done.wait [#allocation4], 512  }
 0x7f1   :  { %6406 = vsyncadd [#allocation4], 4294966784 }
 0x7f2   :  { %6407 = dma.done.wait [#allocation16], 256  }
 0x7f3   :  { %6408 = vsyncadd [#allocation16], 4294967040 }
 0x7f4   :  { %4823 = vsyncpa [#allocation3], 1 }
 0x7f5   :  { %4824 = vsyncpa [#allocation6], 1 }
 0x7f6   :  { %4825 = vsyncpa [#allocation9], 1 }
 0x7f7   :  { %4826 = vsyncpa [#allocation12], 1 }
 0x7f8   :  { %4827 = vsyncpa [#allocation4], 1 }
 0x7f9   :  { %4828 = vsyncpa [#allocation16], 1 }

</bundles_post_ra>
